<compile_context>
chip_gen: v7x
topology: tpu7x:2x2x1
jax: 0.10.0
libtpu: 0.0.40
codegen_flags: <defaults>
</compile_context>

<pallas_src>
import functools
import math

import jax
import jax.numpy as jnp
from jax.experimental import pallas as pl
from jax.experimental.pallas import tpu as pltpu


_VMEM_LIMIT_BYTES = 32 * 1024 * 1024      # safe scoped-VMEM request on v5e/v6e/v7x
_INPUT_BLOCK_BUDGET = 4 * 1024 * 1024     # padded bytes per input block (x2 for double buffer)


def _scale_geometry(length, scale):
    """Static per-window [start, end) bounds for 1-D pooling, kernel == stride.

    Mirrors nn.MaxPool3d(kernel=wid, stride=wid, padding=pad) with
    pad = (wid*scale - length + 1) // 2 and ceil_mode=False.  Padding is -inf
    for max pooling, so each output window reduces to a max over its (never
    empty) intersection with the valid range [0, length).
    """
    wid = int(math.ceil(length / scale))
    pad = (wid * scale - length + 1) // 2
    if 2 * pad > wid:
        raise ValueError(
            f"pad={pad} exceeds kernel//2={wid // 2} (nn.MaxPool3d would reject this)")
    n_out = (length + 2 * pad - wid) // wid + 1
    bounds = []
    for i in range(n_out):
        start = i * wid - pad
        bounds.append((max(0, start), min(length, start + wid)))
    return tuple(bounds)


def _make_spp3d_kernel(geoms):
    """geoms: per scale, a tuple (h_bounds, w_bounds, t_bounds) of static windows."""

    def kernel(x_ref, *out_refs):
        # x_ref: (TC, H, W, T) channel slab in VMEM.
        # out_refs[s]: (TC, oh*ow*ot) pooled windows for scale s.
        for (h_b, w_b, t_b), o_ref in zip(geoms, out_refs):
            n_w, n_t = len(w_b), len(t_b)
            for i, (h0, h1) in enumerate(h_b):
                # H window: unrolled per-row maximum tree (VPU elementwise).
                xh = x_ref[:, h0]                              # (TC, W, T)
                for h in range(h0 + 1, h1):
                    xh = jnp.maximum(xh, x_ref[:, h])
                for j, (w0, w1) in enumerate(w_b):
                    # W window: sublane reduce of the small (TC, ww, T) slab.
                    xw = jnp.max(xh[:, w0:w1, :], axis=1)      # (TC, T)
                    for k, (t0, t1) in enumerate(t_b):
                        col = (i * n_w + j) * n_t + k
                        # T window: lane reduce -> one pooled value per channel.
                        o_ref[:, col:col + 1] = jnp.max(
                            xw[:, t0:t1], axis=1, keepdims=True)

    return kernel


def _pick_channel_tile(C, H, W, T, itemsize, budget_bytes):
    """Largest channel tile whose VMEM-padded block fits the per-buffer budget."""
    sublane = {4: 8, 2: 16, 1: 32}.get(itemsize, 8)
    w_pad = -(-W // sublane) * sublane
    t_pad = -(-T // 128) * 128               # minor dim padded to a full lane tile
    per_channel = H * w_pad * t_pad * itemsize
    # TC must divide C and, for the pooled-output BlockSpec's second-to-last dim,
    # be a multiple of 8 or equal to C.
    cands = [d for d in range(1, C + 1) if C % d == 0 and (d == C or d % 8 == 0)]
    fitting = [d for d in cands if d * per_channel <= budget_bytes]
    return max(fitting) if fitting else min(cands)


@functools.partial(jax.jit, static_argnames=("scale_list", "channel_tile"))
def spp3d_forward(x, scale_list, channel_tile=None):
    """Pallas TPU implementation of SPP3DLayer.forward.

    x: (B, C, H, W, T).  Returns (B, C * sum_s oh_s*ow_s*ot_s) with the same
    ordering as torch.cat([maxpool_s(x).view(B, -1) for s in scale_list], 1).
    """
    B, C, H, W, T = x.shape
    scale_list = tuple(int(s) for s in scale_list)

    geoms, n_windows = [], []
    for s in scale_list:
        h_b = _scale_geometry(H, s)
        w_b = _scale_geometry(W, s)
        t_b = _scale_geometry(T, s)
        geoms.append((h_b, w_b, t_b))
        n_windows.append(len(h_b) * len(w_b) * len(t_b))

    if channel_tile is None:
        tc = _pick_channel_tile(C, H, W, T, x.dtype.itemsize, _INPUT_BLOCK_BUDGET)
    else:
        tc = int(channel_tile)
        if C % tc != 0 or not (tc == C or tc % 8 == 0):
            raise ValueError(f"channel_tile={tc} incompatible with C={C}")

    grid = (B, C // tc)

    outs = pl.pallas_call(
        _make_spp3d_kernel(tuple(geoms)),
        grid=grid,
        in_specs=[
            pl.BlockSpec((None, tc, H, W, T), lambda b, c: (b, c, 0, 0, 0)),
        ],
        out_specs=tuple(
            pl.BlockSpec((None, tc, n), lambda b, c: (b, c, 0)) for n in n_windows
        ),
        out_shape=tuple(
            jax.ShapeDtypeStruct((B, C, n), x.dtype) for n in n_windows
        ),
        compiler_params=pltpu.CompilerParams(
            dimension_semantics=("parallel", "parallel"),
            vmem_limit_bytes=_VMEM_LIMIT_BYTES,
        ),
    )(x)

    # Tiny epilogue: (B, C, n) -> (B, C*n) per scale, concatenated in scale order.
    # The pooled features are only a few percent of the input bytes, so this
    # final copy is negligible next to the single HBM read of x.
    return jnp.concatenate([o.reshape(B, -1) for o in outs], axis=1)


def spp3d_reference(x, scale_list):
    """Pure-JAX reference via lax.reduce_window (independent of the kernel path)."""
    B, C, H, W, T = x.shape
    chunks = []
    for s in scale_list:
        hw, ww, tw = (int(math.ceil(d / s)) for d in (H, W, T))
        hp = (hw * s - H + 1) // 2
        wp = (ww * s - W + 1) // 2
        tp = (tw * s - T + 1) // 2
        pooled = jax.lax.reduce_window(
            x, -jnp.inf, jax.lax.max,
            window_dimensions=(1, 1, hw, ww, tw),
            window_strides=(1, 1, hw, ww, tw),
            padding=((0, 0), (0, 0), (hp, hp), (wp, wp), (tp, tp)))
        chunks.append(pooled.reshape(B, -1))
    return jnp.concatenate(chunks, axis=1)


if __name__ == "__main__":
    key = jax.random.PRNGKey(0)
    k1, k2 = jax.random.split(key)

    # Main check: divisible dims (the common SPP configuration).
    scale_list = (1, 2, 4)
    B, C, H, W, T = 2, 4, 16, 16, 8
    x = jax.random.normal(k1, (B, C, H, W, T), dtype=jnp.float32)

    out = jax.block_until_ready(spp3d_forward(x, scale_list=scale_list))
    expected = spp3d_reference(x, scale_list)
    assert out.shape == (B, C * sum(s ** 3 for s in scale_list)), out.shape
    assert jnp.allclose(out, expected), "mismatch vs reference (divisible case)"

    # Secondary check: non-divisible dims exercise the clipped-window path
    # (equivalent to MaxPool3d's -inf padding) with no padded HBM copy.
    scales2 = (1, 2, 3)
    x2 = jax.random.normal(k2, (2, 5, 10, 12, 7), dtype=jnp.float32)
    out2 = jax.block_until_ready(spp3d_forward(x2, scale_list=scales2))
    expected2 = spp3d_reference(x2, scales2)
    assert out2.shape == expected2.shape, (out2.shape, expected2.shape)
    assert jnp.allclose(out2, expected2), "mismatch vs reference (padded case)"

    print("KERNEL_OK")
</pallas_src>

<mosaic_0001>
module attributes {stable_mosaic.version = 11 : i64} {
  func.func @kernel(%arg0: i32, %arg1: i32, %arg2: memref<1x4x16x16x8xf32, #tpu.memory_space<vmem>>, %arg3: memref<1x4x1xf32, #tpu.memory_space<vmem>>, %arg4: memref<1x4x8xf32, #tpu.memory_space<vmem>>, %arg5: memref<1x4x64xf32, #tpu.memory_space<vmem>>) attributes {dimension_semantics = [#tpu.dimension_semantics<parallel>, #tpu.dimension_semantics<parallel>], iteration_bounds = array<i64: 2, 1>, scalar_prefetch = 0 : i64, scratch_operands = 0 : i64, tpu.core_type = #tpu.core_type<tc>, window_params = [{transform_indices = @transform_0, window_bounds = array<i64: 1, 4, 16, 16, 8>}, {transform_indices = @transform_1, window_bounds = array<i64: 1, 4, 1>}, {transform_indices = @transform_2, window_bounds = array<i64: 1, 4, 8>}, {transform_indices = @transform_3, window_bounds = array<i64: 1, 4, 64>}]} {
    %c0 = arith.constant 0 : index
    %c0_0 = arith.constant 0 : index
    %c0_1 = arith.constant 0 : index
    %c0_2 = arith.constant 0 : index
    %c0_3 = arith.constant 0 : index
    %0 = vector.load %arg2[%c0, %c0_0, %c0_1, %c0_2, %c0_3] : memref<1x4x16x16x8xf32, #tpu.memory_space<vmem>>, vector<1x4x1x16x8xf32>
    %1 = vector.shape_cast %0 : vector<1x4x1x16x8xf32> to vector<4x16x8xf32>
    %c0_4 = arith.constant 0 : index
    %c0_5 = arith.constant 0 : index
    %c1 = arith.constant 1 : index
    %c0_6 = arith.constant 0 : index
    %c0_7 = arith.constant 0 : index
    %2 = vector.load %arg2[%c0_4, %c0_5, %c1, %c0_6, %c0_7] : memref<1x4x16x16x8xf32, #tpu.memory_space<vmem>>, vector<1x4x1x16x8xf32>
    %3 = vector.shape_cast %2 : vector<1x4x1x16x8xf32> to vector<4x16x8xf32>
    %4 = arith.maximumf %1, %3 : vector<4x16x8xf32>
    %c0_8 = arith.constant 0 : index
    %c0_9 = arith.constant 0 : index
    %c2 = arith.constant 2 : index
    %c0_10 = arith.constant 0 : index
    %c0_11 = arith.constant 0 : index
    %5 = vector.load %arg2[%c0_8, %c0_9, %c2, %c0_10, %c0_11] : memref<1x4x16x16x8xf32, #tpu.memory_space<vmem>>, vector<1x4x1x16x8xf32>
    %6 = vector.shape_cast %5 : vector<1x4x1x16x8xf32> to vector<4x16x8xf32>
    %7 = arith.maximumf %4, %6 : vector<4x16x8xf32>
    %c0_12 = arith.constant 0 : index
    %c0_13 = arith.constant 0 : index
    %c3 = arith.constant 3 : index
    %c0_14 = arith.constant 0 : index
    %c0_15 = arith.constant 0 : index
    %8 = vector.load %arg2[%c0_12, %c0_13, %c3, %c0_14, %c0_15] : memref<1x4x16x16x8xf32, #tpu.memory_space<vmem>>, vector<1x4x1x16x8xf32>
    %9 = vector.shape_cast %8 : vector<1x4x1x16x8xf32> to vector<4x16x8xf32>
    %10 = arith.maximumf %7, %9 : vector<4x16x8xf32>
    %c0_16 = arith.constant 0 : index
    %c0_17 = arith.constant 0 : index
    %c4 = arith.constant 4 : index
    %c0_18 = arith.constant 0 : index
    %c0_19 = arith.constant 0 : index
    %11 = vector.load %arg2[%c0_16, %c0_17, %c4, %c0_18, %c0_19] : memref<1x4x16x16x8xf32, #tpu.memory_space<vmem>>, vector<1x4x1x16x8xf32>
    %12 = vector.shape_cast %11 : vector<1x4x1x16x8xf32> to vector<4x16x8xf32>
    %13 = arith.maximumf %10, %12 : vector<4x16x8xf32>
    %c0_20 = arith.constant 0 : index
    %c0_21 = arith.constant 0 : index
    %c5 = arith.constant 5 : index
    %c0_22 = arith.constant 0 : index
    %c0_23 = arith.constant 0 : index
    %14 = vector.load %arg2[%c0_20, %c0_21, %c5, %c0_22, %c0_23] : memref<1x4x16x16x8xf32, #tpu.memory_space<vmem>>, vector<1x4x1x16x8xf32>
    %15 = vector.shape_cast %14 : vector<1x4x1x16x8xf32> to vector<4x16x8xf32>
    %16 = arith.maximumf %13, %15 : vector<4x16x8xf32>
    %c0_24 = arith.constant 0 : index
    %c0_25 = arith.constant 0 : index
    %c6 = arith.constant 6 : index
    %c0_26 = arith.constant 0 : index
    %c0_27 = arith.constant 0 : index
    %17 = vector.load %arg2[%c0_24, %c0_25, %c6, %c0_26, %c0_27] : memref<1x4x16x16x8xf32, #tpu.memory_space<vmem>>, vector<1x4x1x16x8xf32>
    %18 = vector.shape_cast %17 : vector<1x4x1x16x8xf32> to vector<4x16x8xf32>
    %19 = arith.maximumf %16, %18 : vector<4x16x8xf32>
    %c0_28 = arith.constant 0 : index
    %c0_29 = arith.constant 0 : index
    %c7 = arith.constant 7 : index
    %c0_30 = arith.constant 0 : index
    %c0_31 = arith.constant 0 : index
    %20 = vector.load %arg2[%c0_28, %c0_29, %c7, %c0_30, %c0_31] : memref<1x4x16x16x8xf32, #tpu.memory_space<vmem>>, vector<1x4x1x16x8xf32>
    %21 = vector.shape_cast %20 : vector<1x4x1x16x8xf32> to vector<4x16x8xf32>
    %22 = arith.maximumf %19, %21 : vector<4x16x8xf32>
    %c0_32 = arith.constant 0 : index
    %c0_33 = arith.constant 0 : index
    %c8 = arith.constant 8 : index
    %c0_34 = arith.constant 0 : index
    %c0_35 = arith.constant 0 : index
    %23 = vector.load %arg2[%c0_32, %c0_33, %c8, %c0_34, %c0_35] : memref<1x4x16x16x8xf32, #tpu.memory_space<vmem>>, vector<1x4x1x16x8xf32>
    %24 = vector.shape_cast %23 : vector<1x4x1x16x8xf32> to vector<4x16x8xf32>
    %25 = arith.maximumf %22, %24 : vector<4x16x8xf32>
    %c0_36 = arith.constant 0 : index
    %c0_37 = arith.constant 0 : index
    %c9 = arith.constant 9 : index
    %c0_38 = arith.constant 0 : index
    %c0_39 = arith.constant 0 : index
    %26 = vector.load %arg2[%c0_36, %c0_37, %c9, %c0_38, %c0_39] : memref<1x4x16x16x8xf32, #tpu.memory_space<vmem>>, vector<1x4x1x16x8xf32>
    %27 = vector.shape_cast %26 : vector<1x4x1x16x8xf32> to vector<4x16x8xf32>
    %28 = arith.maximumf %25, %27 : vector<4x16x8xf32>
    %c0_40 = arith.constant 0 : index
    %c0_41 = arith.constant 0 : index
    %c10 = arith.constant 10 : index
    %c0_42 = arith.constant 0 : index
    %c0_43 = arith.constant 0 : index
    %29 = vector.load %arg2[%c0_40, %c0_41, %c10, %c0_42, %c0_43] : memref<1x4x16x16x8xf32, #tpu.memory_space<vmem>>, vector<1x4x1x16x8xf32>
    %30 = vector.shape_cast %29 : vector<1x4x1x16x8xf32> to vector<4x16x8xf32>
    %31 = arith.maximumf %28, %30 : vector<4x16x8xf32>
    %c0_44 = arith.constant 0 : index
    %c0_45 = arith.constant 0 : index
    %c11 = arith.constant 11 : index
    %c0_46 = arith.constant 0 : index
    %c0_47 = arith.constant 0 : index
    %32 = vector.load %arg2[%c0_44, %c0_45, %c11, %c0_46, %c0_47] : memref<1x4x16x16x8xf32, #tpu.memory_space<vmem>>, vector<1x4x1x16x8xf32>
    %33 = vector.shape_cast %32 : vector<1x4x1x16x8xf32> to vector<4x16x8xf32>
    %34 = arith.maximumf %31, %33 : vector<4x16x8xf32>
    %c0_48 = arith.constant 0 : index
    %c0_49 = arith.constant 0 : index
    %c12 = arith.constant 12 : index
    %c0_50 = arith.constant 0 : index
    %c0_51 = arith.constant 0 : index
    %35 = vector.load %arg2[%c0_48, %c0_49, %c12, %c0_50, %c0_51] : memref<1x4x16x16x8xf32, #tpu.memory_space<vmem>>, vector<1x4x1x16x8xf32>
    %36 = vector.shape_cast %35 : vector<1x4x1x16x8xf32> to vector<4x16x8xf32>
    %37 = arith.maximumf %34, %36 : vector<4x16x8xf32>
    %c0_52 = arith.constant 0 : index
    %c0_53 = arith.constant 0 : index
    %c13 = arith.constant 13 : index
    %c0_54 = arith.constant 0 : index
    %c0_55 = arith.constant 0 : index
    %38 = vector.load %arg2[%c0_52, %c0_53, %c13, %c0_54, %c0_55] : memref<1x4x16x16x8xf32, #tpu.memory_space<vmem>>, vector<1x4x1x16x8xf32>
    %39 = vector.shape_cast %38 : vector<1x4x1x16x8xf32> to vector<4x16x8xf32>
    %40 = arith.maximumf %37, %39 : vector<4x16x8xf32>
    %c0_56 = arith.constant 0 : index
    %c0_57 = arith.constant 0 : index
    %c14 = arith.constant 14 : index
    %c0_58 = arith.constant 0 : index
    %c0_59 = arith.constant 0 : index
    %41 = vector.load %arg2[%c0_56, %c0_57, %c14, %c0_58, %c0_59] : memref<1x4x16x16x8xf32, #tpu.memory_space<vmem>>, vector<1x4x1x16x8xf32>
    %42 = vector.shape_cast %41 : vector<1x4x1x16x8xf32> to vector<4x16x8xf32>
    %43 = arith.maximumf %40, %42 : vector<4x16x8xf32>
    %c0_60 = arith.constant 0 : index
    %c0_61 = arith.constant 0 : index
    %c15 = arith.constant 15 : index
    %c0_62 = arith.constant 0 : index
    %c0_63 = arith.constant 0 : index
    %44 = vector.load %arg2[%c0_60, %c0_61, %c15, %c0_62, %c0_63] : memref<1x4x16x16x8xf32, #tpu.memory_space<vmem>>, vector<1x4x1x16x8xf32>
    %45 = vector.shape_cast %44 : vector<1x4x1x16x8xf32> to vector<4x16x8xf32>
    %46 = arith.maximumf %43, %45 : vector<4x16x8xf32>
    %cst = arith.constant dense<0xFF800000> : vector<4x8xf32>
    %47 = vector.multi_reduction <maximumf>, %46, %cst [1] : vector<4x16x8xf32> to vector<4x8xf32>
    %cst_64 = arith.constant dense<0xFF800000> : vector<4xf32>
    %48 = vector.multi_reduction <maximumf>, %47, %cst_64 [1] : vector<4x8xf32> to vector<4xf32>
    %49 = vector.shape_cast %48 : vector<4xf32> to vector<4x1xf32>
    %c0_65 = arith.constant 0 : index
    %c0_66 = arith.constant 0 : index
    %c0_67 = arith.constant 0 : index
    %50 = vector.load %arg3[%c0_65, %c0_66, %c0_67] : memref<1x4x1xf32, #tpu.memory_space<vmem>>, vector<1x4x1xf32>
    %51 = vector.shape_cast %50 : vector<1x4x1xf32> to vector<4x1xf32>
    %52 = vector.shape_cast %49 : vector<4x1xf32> to vector<1x4x1xf32>
    tpu.vector_store %arg3[%c0_65, %c0_66, %c0_67], %52 {strides = array<i32>} : memref<1x4x1xf32, #tpu.memory_space<vmem>>, vector<1x4x1xf32>,
    %c0_68 = arith.constant 0 : index
    %c0_69 = arith.constant 0 : index
    %c0_70 = arith.constant 0 : index
    %c0_71 = arith.constant 0 : index
    %c0_72 = arith.constant 0 : index
    %53 = vector.load %arg2[%c0_68, %c0_69, %c0_70, %c0_71, %c0_72] : memref<1x4x16x16x8xf32, #tpu.memory_space<vmem>>, vector<1x4x1x16x8xf32>
    %54 = vector.shape_cast %53 : vector<1x4x1x16x8xf32> to vector<4x16x8xf32>
    %c0_73 = arith.constant 0 : index
    %c0_74 = arith.constant 0 : index
    %c1_75 = arith.constant 1 : index
    %c0_76 = arith.constant 0 : index
    %c0_77 = arith.constant 0 : index
    %55 = vector.load %arg2[%c0_73, %c0_74, %c1_75, %c0_76, %c0_77] : memref<1x4x16x16x8xf32, #tpu.memory_space<vmem>>, vector<1x4x1x16x8xf32>
    %56 = vector.shape_cast %55 : vector<1x4x1x16x8xf32> to vector<4x16x8xf32>
    %57 = arith.maximumf %54, %56 : vector<4x16x8xf32>
    %c0_78 = arith.constant 0 : index
    %c0_79 = arith.constant 0 : index
    %c2_80 = arith.constant 2 : index
    %c0_81 = arith.constant 0 : index
    %c0_82 = arith.constant 0 : index
    %58 = vector.load %arg2[%c0_78, %c0_79, %c2_80, %c0_81, %c0_82] : memref<1x4x16x16x8xf32, #tpu.memory_space<vmem>>, vector<1x4x1x16x8xf32>
    %59 = vector.shape_cast %58 : vector<1x4x1x16x8xf32> to vector<4x16x8xf32>
    %60 = arith.maximumf %57, %59 : vector<4x16x8xf32>
    %c0_83 = arith.constant 0 : index
    %c0_84 = arith.constant 0 : index
    %c3_85 = arith.constant 3 : index
    %c0_86 = arith.constant 0 : index
    %c0_87 = arith.constant 0 : index
    %61 = vector.load %arg2[%c0_83, %c0_84, %c3_85, %c0_86, %c0_87] : memref<1x4x16x16x8xf32, #tpu.memory_space<vmem>>, vector<1x4x1x16x8xf32>
    %62 = vector.shape_cast %61 : vector<1x4x1x16x8xf32> to vector<4x16x8xf32>
    %63 = arith.maximumf %60, %62 : vector<4x16x8xf32>
    %c0_88 = arith.constant 0 : index
    %c0_89 = arith.constant 0 : index
    %c4_90 = arith.constant 4 : index
    %c0_91 = arith.constant 0 : index
    %c0_92 = arith.constant 0 : index
    %64 = vector.load %arg2[%c0_88, %c0_89, %c4_90, %c0_91, %c0_92] : memref<1x4x16x16x8xf32, #tpu.memory_space<vmem>>, vector<1x4x1x16x8xf32>
    %65 = vector.shape_cast %64 : vector<1x4x1x16x8xf32> to vector<4x16x8xf32>
    %66 = arith.maximumf %63, %65 : vector<4x16x8xf32>
    %c0_93 = arith.constant 0 : index
    %c0_94 = arith.constant 0 : index
    %c5_95 = arith.constant 5 : index
    %c0_96 = arith.constant 0 : index
    %c0_97 = arith.constant 0 : index
    %67 = vector.load %arg2[%c0_93, %c0_94, %c5_95, %c0_96, %c0_97] : memref<1x4x16x16x8xf32, #tpu.memory_space<vmem>>, vector<1x4x1x16x8xf32>
    %68 = vector.shape_cast %67 : vector<1x4x1x16x8xf32> to vector<4x16x8xf32>
    %69 = arith.maximumf %66, %68 : vector<4x16x8xf32>
    %c0_98 = arith.constant 0 : index
    %c0_99 = arith.constant 0 : index
    %c6_100 = arith.constant 6 : index
    %c0_101 = arith.constant 0 : index
    %c0_102 = arith.constant 0 : index
    %70 = vector.load %arg2[%c0_98, %c0_99, %c6_100, %c0_101, %c0_102] : memref<1x4x16x16x8xf32, #tpu.memory_space<vmem>>, vector<1x4x1x16x8xf32>
    %71 = vector.shape_cast %70 : vector<1x4x1x16x8xf32> to vector<4x16x8xf32>
    %72 = arith.maximumf %69, %71 : vector<4x16x8xf32>
    %c0_103 = arith.constant 0 : index
    %c0_104 = arith.constant 0 : index
    %c7_105 = arith.constant 7 : index
    %c0_106 = arith.constant 0 : index
    %c0_107 = arith.constant 0 : index
    %73 = vector.load %arg2[%c0_103, %c0_104, %c7_105, %c0_106, %c0_107] : memref<1x4x16x16x8xf32, #tpu.memory_space<vmem>>, vector<1x4x1x16x8xf32>
    %74 = vector.shape_cast %73 : vector<1x4x1x16x8xf32> to vector<4x16x8xf32>
    %75 = arith.maximumf %72, %74 : vector<4x16x8xf32>
    %76 = vector.extract_strided_slice %75 {offsets = [0, 0, 0], sizes = [4, 8, 8], strides = [1, 1, 1]} : vector<4x16x8xf32> to vector<4x8x8xf32>
    %cst_108 = arith.constant dense<0xFF800000> : vector<4x8xf32>
    %77 = vector.multi_reduction <maximumf>, %76, %cst_108 [1] : vector<4x8x8xf32> to vector<4x8xf32>
    %78 = vector.extract_strided_slice %77 {offsets = [0, 0], sizes = [4, 4], strides = [1, 1]} : vector<4x8xf32> to vector<4x4xf32>
    %cst_109 = arith.constant dense<0xFF800000> : vector<4xf32>
    %79 = vector.multi_reduction <maximumf>, %78, %cst_109 [1] : vector<4x4xf32> to vector<4xf32>
    %80 = vector.shape_cast %79 : vector<4xf32> to vector<4x1xf32>
    %c0_110 = arith.constant 0 : index
    %c0_111 = arith.constant 0 : index
    %c0_112 = arith.constant 0 : index
    %81 = vector.load %arg4[%c0_110, %c0_111, %c0_112] : memref<1x4x8xf32, #tpu.memory_space<vmem>>, vector<1x4x1xf32>
    %82 = vector.shape_cast %81 : vector<1x4x1xf32> to vector<4x1xf32>
    %83 = vector.shape_cast %80 : vector<4x1xf32> to vector<1x4x1xf32>
    tpu.vector_store %arg4[%c0_110, %c0_111, %c0_112], %83 {strides = array<i32>} : memref<1x4x8xf32, #tpu.memory_space<vmem>>, vector<1x4x1xf32>,
    %84 = vector.extract_strided_slice %77 {offsets = [0, 4], sizes = [4, 4], strides = [1, 1]} : vector<4x8xf32> to vector<4x4xf32>
    %cst_113 = arith.constant dense<0xFF800000> : vector<4xf32>
    %85 = vector.multi_reduction <maximumf>, %84, %cst_113 [1] : vector<4x4xf32> to vector<4xf32>
    %86 = vector.shape_cast %85 : vector<4xf32> to vector<4x1xf32>
    %c0_114 = arith.constant 0 : index
    %c0_115 = arith.constant 0 : index
    %c1_116 = arith.constant 1 : index
    %87 = vector.load %arg4[%c0_114, %c0_115, %c1_116] : memref<1x4x8xf32, #tpu.memory_space<vmem>>, vector<1x4x1xf32>
    %88 = vector.shape_cast %87 : vector<1x4x1xf32> to vector<4x1xf32>
    %89 = vector.shape_cast %86 : vector<4x1xf32> to vector<1x4x1xf32>
    tpu.vector_store %arg4[%c0_114, %c0_115, %c1_116], %89 {strides = array<i32>} : memref<1x4x8xf32, #tpu.memory_space<vmem>>, vector<1x4x1xf32>,
    %90 = vector.extract_strided_slice %75 {offsets = [0, 8, 0], sizes = [4, 8, 8], strides = [1, 1, 1]} : vector<4x16x8xf32> to vector<4x8x8xf32>
    %cst_117 = arith.constant dense<0xFF800000> : vector<4x8xf32>
    %91 = vector.multi_reduction <maximumf>, %90, %cst_117 [1] : vector<4x8x8xf32> to vector<4x8xf32>
    %92 = vector.extract_strided_slice %91 {offsets = [0, 0], sizes = [4, 4], strides = [1, 1]} : vector<4x8xf32> to vector<4x4xf32>
    %cst_118 = arith.constant dense<0xFF800000> : vector<4xf32>
    %93 = vector.multi_reduction <maximumf>, %92, %cst_118 [1] : vector<4x4xf32> to vector<4xf32>
    %94 = vector.shape_cast %93 : vector<4xf32> to vector<4x1xf32>
    %c0_119 = arith.constant 0 : index
    %c0_120 = arith.constant 0 : index
    %c2_121 = arith.constant 2 : index
    %95 = vector.load %arg4[%c0_119, %c0_120, %c2_121] : memref<1x4x8xf32, #tpu.memory_space<vmem>>, vector<1x4x1xf32>
    %96 = vector.shape_cast %95 : vector<1x4x1xf32> to vector<4x1xf32>
    %97 = vector.shape_cast %94 : vector<4x1xf32> to vector<1x4x1xf32>
    tpu.vector_store %arg4[%c0_119, %c0_120, %c2_121], %97 {strides = array<i32>} : memref<1x4x8xf32, #tpu.memory_space<vmem>>, vector<1x4x1xf32>,
    %98 = vector.extract_strided_slice %91 {offsets = [0, 4], sizes = [4, 4], strides = [1, 1]} : vector<4x8xf32> to vector<4x4xf32>
    %cst_122 = arith.constant dense<0xFF800000> : vector<4xf32>
    %99 = vector.multi_reduction <maximumf>, %98, %cst_122 [1] : vector<4x4xf32> to vector<4xf32>
    %100 = vector.shape_cast %99 : vector<4xf32> to vector<4x1xf32>
    %c0_123 = arith.constant 0 : index
    %c0_124 = arith.constant 0 : index
    %c3_125 = arith.constant 3 : index
    %101 = vector.load %arg4[%c0_123, %c0_124, %c3_125] : memref<1x4x8xf32, #tpu.memory_space<vmem>>, vector<1x4x1xf32>
    %102 = vector.shape_cast %101 : vector<1x4x1xf32> to vector<4x1xf32>
    %103 = vector.shape_cast %100 : vector<4x1xf32> to vector<1x4x1xf32>
    tpu.vector_store %arg4[%c0_123, %c0_124, %c3_125], %103 {strides = array<i32>} : memref<1x4x8xf32, #tpu.memory_space<vmem>>, vector<1x4x1xf32>,
    %c0_126 = arith.constant 0 : index
    %c0_127 = arith.constant 0 : index
    %c8_128 = arith.constant 8 : index
    %c0_129 = arith.constant 0 : index
    %c0_130 = arith.constant 0 : index
    %104 = vector.load %arg2[%c0_126, %c0_127, %c8_128, %c0_129, %c0_130] : memref<1x4x16x16x8xf32, #tpu.memory_space<vmem>>, vector<1x4x1x16x8xf32>
    %105 = vector.shape_cast %104 : vector<1x4x1x16x8xf32> to vector<4x16x8xf32>
    %c0_131 = arith.constant 0 : index
    %c0_132 = arith.constant 0 : index
    %c9_133 = arith.constant 9 : index
    %c0_134 = arith.constant 0 : index
    %c0_135 = arith.constant 0 : index
    %106 = vector.load %arg2[%c0_131, %c0_132, %c9_133, %c0_134, %c0_135] : memref<1x4x16x16x8xf32, #tpu.memory_space<vmem>>, vector<1x4x1x16x8xf32>
    %107 = vector.shape_cast %106 : vector<1x4x1x16x8xf32> to vector<4x16x8xf32>
    %108 = arith.maximumf %105, %107 : vector<4x16x8xf32>
    %c0_136 = arith.constant 0 : index
    %c0_137 = arith.constant 0 : index
    %c10_138 = arith.constant 10 : index
    %c0_139 = arith.constant 0 : index
    %c0_140 = arith.constant 0 : index
    %109 = vector.load %arg2[%c0_136, %c0_137, %c10_138, %c0_139, %c0_140] : memref<1x4x16x16x8xf32, #tpu.memory_space<vmem>>, vector<1x4x1x16x8xf32>
    %110 = vector.shape_cast %109 : vector<1x4x1x16x8xf32> to vector<4x16x8xf32>
    %111 = arith.maximumf %108, %110 : vector<4x16x8xf32>
    %c0_141 = arith.constant 0 : index
    %c0_142 = arith.constant 0 : index
    %c11_143 = arith.constant 11 : index
    %c0_144 = arith.constant 0 : index
    %c0_145 = arith.constant 0 : index
    %112 = vector.load %arg2[%c0_141, %c0_142, %c11_143, %c0_144, %c0_145] : memref<1x4x16x16x8xf32, #tpu.memory_space<vmem>>, vector<1x4x1x16x8xf32>
    %113 = vector.shape_cast %112 : vector<1x4x1x16x8xf32> to vector<4x16x8xf32>
    %114 = arith.maximumf %111, %113 : vector<4x16x8xf32>
    %c0_146 = arith.constant 0 : index
    %c0_147 = arith.constant 0 : index
    %c12_148 = arith.constant 12 : index
    %c0_149 = arith.constant 0 : index
    %c0_150 = arith.constant 0 : index
    %115 = vector.load %arg2[%c0_146, %c0_147, %c12_148, %c0_149, %c0_150] : memref<1x4x16x16x8xf32, #tpu.memory_space<vmem>>, vector<1x4x1x16x8xf32>
    %116 = vector.shape_cast %115 : vector<1x4x1x16x8xf32> to vector<4x16x8xf32>
    %117 = arith.maximumf %114, %116 : vector<4x16x8xf32>
    %c0_151 = arith.constant 0 : index
    %c0_152 = arith.constant 0 : index
    %c13_153 = arith.constant 13 : index
    %c0_154 = arith.constant 0 : index
    %c0_155 = arith.constant 0 : index
    %118 = vector.load %arg2[%c0_151, %c0_152, %c13_153, %c0_154, %c0_155] : memref<1x4x16x16x8xf32, #tpu.memory_space<vmem>>, vector<1x4x1x16x8xf32>
    %119 = vector.shape_cast %118 : vector<1x4x1x16x8xf32> to vector<4x16x8xf32>
    %120 = arith.maximumf %117, %119 : vector<4x16x8xf32>
    %c0_156 = arith.constant 0 : index
    %c0_157 = arith.constant 0 : index
    %c14_158 = arith.constant 14 : index
    %c0_159 = arith.constant 0 : index
    %c0_160 = arith.constant 0 : index
    %121 = vector.load %arg2[%c0_156, %c0_157, %c14_158, %c0_159, %c0_160] : memref<1x4x16x16x8xf32, #tpu.memory_space<vmem>>, vector<1x4x1x16x8xf32>
    %122 = vector.shape_cast %121 : vector<1x4x1x16x8xf32> to vector<4x16x8xf32>
    %123 = arith.maximumf %120, %122 : vector<4x16x8xf32>
    %c0_161 = arith.constant 0 : index
    %c0_162 = arith.constant 0 : index
    %c15_163 = arith.constant 15 : index
    %c0_164 = arith.constant 0 : index
    %c0_165 = arith.constant 0 : index
    %124 = vector.load %arg2[%c0_161, %c0_162, %c15_163, %c0_164, %c0_165] : memref<1x4x16x16x8xf32, #tpu.memory_space<vmem>>, vector<1x4x1x16x8xf32>
    %125 = vector.shape_cast %124 : vector<1x4x1x16x8xf32> to vector<4x16x8xf32>
    %126 = arith.maximumf %123, %125 : vector<4x16x8xf32>
    %127 = vector.extract_strided_slice %126 {offsets = [0, 0, 0], sizes = [4, 8, 8], strides = [1, 1, 1]} : vector<4x16x8xf32> to vector<4x8x8xf32>
    %cst_166 = arith.constant dense<0xFF800000> : vector<4x8xf32>
    %128 = vector.multi_reduction <maximumf>, %127, %cst_166 [1] : vector<4x8x8xf32> to vector<4x8xf32>
    %129 = vector.extract_strided_slice %128 {offsets = [0, 0], sizes = [4, 4], strides = [1, 1]} : vector<4x8xf32> to vector<4x4xf32>
    %cst_167 = arith.constant dense<0xFF800000> : vector<4xf32>
    %130 = vector.multi_reduction <maximumf>, %129, %cst_167 [1] : vector<4x4xf32> to vector<4xf32>
    %131 = vector.shape_cast %130 : vector<4xf32> to vector<4x1xf32>
    %c0_168 = arith.constant 0 : index
    %c0_169 = arith.constant 0 : index
    %c4_170 = arith.constant 4 : index
    %132 = vector.load %arg4[%c0_168, %c0_169, %c4_170] : memref<1x4x8xf32, #tpu.memory_space<vmem>>, vector<1x4x1xf32>
    %133 = vector.shape_cast %132 : vector<1x4x1xf32> to vector<4x1xf32>
    %134 = vector.shape_cast %131 : vector<4x1xf32> to vector<1x4x1xf32>
    tpu.vector_store %arg4[%c0_168, %c0_169, %c4_170], %134 {strides = array<i32>} : memref<1x4x8xf32, #tpu.memory_space<vmem>>, vector<1x4x1xf32>,
    %135 = vector.extract_strided_slice %128 {offsets = [0, 4], sizes = [4, 4], strides = [1, 1]} : vector<4x8xf32> to vector<4x4xf32>
    %cst_171 = arith.constant dense<0xFF800000> : vector<4xf32>
    %136 = vector.multi_reduction <maximumf>, %135, %cst_171 [1] : vector<4x4xf32> to vector<4xf32>
    %137 = vector.shape_cast %136 : vector<4xf32> to vector<4x1xf32>
    %c0_172 = arith.constant 0 : index
    %c0_173 = arith.constant 0 : index
    %c5_174 = arith.constant 5 : index
    %138 = vector.load %arg4[%c0_172, %c0_173, %c5_174] : memref<1x4x8xf32, #tpu.memory_space<vmem>>, vector<1x4x1xf32>
    %139 = vector.shape_cast %138 : vector<1x4x1xf32> to vector<4x1xf32>
    %140 = vector.shape_cast %137 : vector<4x1xf32> to vector<1x4x1xf32>
    tpu.vector_store %arg4[%c0_172, %c0_173, %c5_174], %140 {strides = array<i32>} : memref<1x4x8xf32, #tpu.memory_space<vmem>>, vector<1x4x1xf32>,
    %141 = vector.extract_strided_slice %126 {offsets = [0, 8, 0], sizes = [4, 8, 8], strides = [1, 1, 1]} : vector<4x16x8xf32> to vector<4x8x8xf32>
    %cst_175 = arith.constant dense<0xFF800000> : vector<4x8xf32>
    %142 = vector.multi_reduction <maximumf>, %141, %cst_175 [1] : vector<4x8x8xf32> to vector<4x8xf32>
    %143 = vector.extract_strided_slice %142 {offsets = [0, 0], sizes = [4, 4], strides = [1, 1]} : vector<4x8xf32> to vector<4x4xf32>
    %cst_176 = arith.constant dense<0xFF800000> : vector<4xf32>
    %144 = vector.multi_reduction <maximumf>, %143, %cst_176 [1] : vector<4x4xf32> to vector<4xf32>
    %145 = vector.shape_cast %144 : vector<4xf32> to vector<4x1xf32>
    %c0_177 = arith.constant 0 : index
    %c0_178 = arith.constant 0 : index
    %c6_179 = arith.constant 6 : index
    %146 = vector.load %arg4[%c0_177, %c0_178, %c6_179] : memref<1x4x8xf32, #tpu.memory_space<vmem>>, vector<1x4x1xf32>
    %147 = vector.shape_cast %146 : vector<1x4x1xf32> to vector<4x1xf32>
    %148 = vector.shape_cast %145 : vector<4x1xf32> to vector<1x4x1xf32>
    tpu.vector_store %arg4[%c0_177, %c0_178, %c6_179], %148 {strides = array<i32>} : memref<1x4x8xf32, #tpu.memory_space<vmem>>, vector<1x4x1xf32>,
    %149 = vector.extract_strided_slice %142 {offsets = [0, 4], sizes = [4, 4], strides = [1, 1]} : vector<4x8xf32> to vector<4x4xf32>
    %cst_180 = arith.constant dense<0xFF800000> : vector<4xf32>
    %150 = vector.multi_reduction <maximumf>, %149, %cst_180 [1] : vector<4x4xf32> to vector<4xf32>
    %151 = vector.shape_cast %150 : vector<4xf32> to vector<4x1xf32>
    %c0_181 = arith.constant 0 : index
    %c0_182 = arith.constant 0 : index
    %c7_183 = arith.constant 7 : index
    %152 = vector.load %arg4[%c0_181, %c0_182, %c7_183] : memref<1x4x8xf32, #tpu.memory_space<vmem>>, vector<1x4x1xf32>
    %153 = vector.shape_cast %152 : vector<1x4x1xf32> to vector<4x1xf32>
    %154 = vector.shape_cast %151 : vector<4x1xf32> to vector<1x4x1xf32>
    tpu.vector_store %arg4[%c0_181, %c0_182, %c7_183], %154 {strides = array<i32>} : memref<1x4x8xf32, #tpu.memory_space<vmem>>, vector<1x4x1xf32>,
    %c0_184 = arith.constant 0 : index
    %c0_185 = arith.constant 0 : index
    %c0_186 = arith.constant 0 : index
    %c0_187 = arith.constant 0 : index
    %c0_188 = arith.constant 0 : index
    %155 = vector.load %arg2[%c0_184, %c0_185, %c0_186, %c0_187, %c0_188] : memref<1x4x16x16x8xf32, #tpu.memory_space<vmem>>, vector<1x4x1x16x8xf32>
    %156 = vector.shape_cast %155 : vector<1x4x1x16x8xf32> to vector<4x16x8xf32>
    %c0_189 = arith.constant 0 : index
    %c0_190 = arith.constant 0 : index
    %c1_191 = arith.constant 1 : index
    %c0_192 = arith.constant 0 : index
    %c0_193 = arith.constant 0 : index
    %157 = vector.load %arg2[%c0_189, %c0_190, %c1_191, %c0_192, %c0_193] : memref<1x4x16x16x8xf32, #tpu.memory_space<vmem>>, vector<1x4x1x16x8xf32>
    %158 = vector.shape_cast %157 : vector<1x4x1x16x8xf32> to vector<4x16x8xf32>
    %159 = arith.maximumf %156, %158 : vector<4x16x8xf32>
    %c0_194 = arith.constant 0 : index
    %c0_195 = arith.constant 0 : index
    %c2_196 = arith.constant 2 : index
    %c0_197 = arith.constant 0 : index
    %c0_198 = arith.constant 0 : index
    %160 = vector.load %arg2[%c0_194, %c0_195, %c2_196, %c0_197, %c0_198] : memref<1x4x16x16x8xf32, #tpu.memory_space<vmem>>, vector<1x4x1x16x8xf32>
    %161 = vector.shape_cast %160 : vector<1x4x1x16x8xf32> to vector<4x16x8xf32>
    %162 = arith.maximumf %159, %161 : vector<4x16x8xf32>
    %c0_199 = arith.constant 0 : index
    %c0_200 = arith.constant 0 : index
    %c3_201 = arith.constant 3 : index
    %c0_202 = arith.constant 0 : index
    %c0_203 = arith.constant 0 : index
    %163 = vector.load %arg2[%c0_199, %c0_200, %c3_201, %c0_202, %c0_203] : memref<1x4x16x16x8xf32, #tpu.memory_space<vmem>>, vector<1x4x1x16x8xf32>
    %164 = vector.shape_cast %163 : vector<1x4x1x16x8xf32> to vector<4x16x8xf32>
    %165 = arith.maximumf %162, %164 : vector<4x16x8xf32>
    %166 = vector.extract_strided_slice %165 {offsets = [0, 0, 0], sizes = [4, 4, 8], strides = [1, 1, 1]} : vector<4x16x8xf32> to vector<4x4x8xf32>
    %cst_204 = arith.constant dense<0xFF800000> : vector<4x8xf32>
    %167 = vector.multi_reduction <maximumf>, %166, %cst_204 [1] : vector<4x4x8xf32> to vector<4x8xf32>
    %168 = vector.extract_strided_slice %167 {offsets = [0, 0], sizes = [4, 2], strides = [1, 1]} : vector<4x8xf32> to vector<4x2xf32>
    %cst_205 = arith.constant dense<0xFF800000> : vector<4xf32>
    %169 = vector.multi_reduction <maximumf>, %168, %cst_205 [1] : vector<4x2xf32> to vector<4xf32>
    %170 = vector.shape_cast %169 : vector<4xf32> to vector<4x1xf32>
    %c0_206 = arith.constant 0 : index
    %c0_207 = arith.constant 0 : index
    %c0_208 = arith.constant 0 : index
    %171 = vector.load %arg5[%c0_206, %c0_207, %c0_208] : memref<1x4x64xf32, #tpu.memory_space<vmem>>, vector<1x4x1xf32>
    %172 = vector.shape_cast %171 : vector<1x4x1xf32> to vector<4x1xf32>
    %173 = vector.shape_cast %170 : vector<4x1xf32> to vector<1x4x1xf32>
    tpu.vector_store %arg5[%c0_206, %c0_207, %c0_208], %173 {strides = array<i32>} : memref<1x4x64xf32, #tpu.memory_space<vmem>>, vector<1x4x1xf32>,
    %174 = vector.extract_strided_slice %167 {offsets = [0, 2], sizes = [4, 2], strides = [1, 1]} : vector<4x8xf32> to vector<4x2xf32>
    %cst_209 = arith.constant dense<0xFF800000> : vector<4xf32>
    %175 = vector.multi_reduction <maximumf>, %174, %cst_209 [1] : vector<4x2xf32> to vector<4xf32>
    %176 = vector.shape_cast %175 : vector<4xf32> to vector<4x1xf32>
    %c0_210 = arith.constant 0 : index
    %c0_211 = arith.constant 0 : index
    %c1_212 = arith.constant 1 : index
    %177 = vector.load %arg5[%c0_210, %c0_211, %c1_212] : memref<1x4x64xf32, #tpu.memory_space<vmem>>, vector<1x4x1xf32>
    %178 = vector.shape_cast %177 : vector<1x4x1xf32> to vector<4x1xf32>
    %179 = vector.shape_cast %176 : vector<4x1xf32> to vector<1x4x1xf32>
    tpu.vector_store %arg5[%c0_210, %c0_211, %c1_212], %179 {strides = array<i32>} : memref<1x4x64xf32, #tpu.memory_space<vmem>>, vector<1x4x1xf32>,
    %180 = vector.extract_strided_slice %167 {offsets = [0, 4], sizes = [4, 2], strides = [1, 1]} : vector<4x8xf32> to vector<4x2xf32>
    %cst_213 = arith.constant dense<0xFF800000> : vector<4xf32>
    %181 = vector.multi_reduction <maximumf>, %180, %cst_213 [1] : vector<4x2xf32> to vector<4xf32>
    %182 = vector.shape_cast %181 : vector<4xf32> to vector<4x1xf32>
    %c0_214 = arith.constant 0 : index
    %c0_215 = arith.constant 0 : index
    %c2_216 = arith.constant 2 : index
    %183 = vector.load %arg5[%c0_214, %c0_215, %c2_216] : memref<1x4x64xf32, #tpu.memory_space<vmem>>, vector<1x4x1xf32>
    %184 = vector.shape_cast %183 : vector<1x4x1xf32> to vector<4x1xf32>
    %185 = vector.shape_cast %182 : vector<4x1xf32> to vector<1x4x1xf32>
    tpu.vector_store %arg5[%c0_214, %c0_215, %c2_216], %185 {strides = array<i32>} : memref<1x4x64xf32, #tpu.memory_space<vmem>>, vector<1x4x1xf32>,
    %186 = vector.extract_strided_slice %167 {offsets = [0, 6], sizes = [4, 2], strides = [1, 1]} : vector<4x8xf32> to vector<4x2xf32>
    %cst_217 = arith.constant dense<0xFF800000> : vector<4xf32>
    %187 = vector.multi_reduction <maximumf>, %186, %cst_217 [1] : vector<4x2xf32> to vector<4xf32>
    %188 = vector.shape_cast %187 : vector<4xf32> to vector<4x1xf32>
    %c0_218 = arith.constant 0 : index
    %c0_219 = arith.constant 0 : index
    %c3_220 = arith.constant 3 : index
    %189 = vector.load %arg5[%c0_218, %c0_219, %c3_220] : memref<1x4x64xf32, #tpu.memory_space<vmem>>, vector<1x4x1xf32>
    %190 = vector.shape_cast %189 : vector<1x4x1xf32> to vector<4x1xf32>
    %191 = vector.shape_cast %188 : vector<4x1xf32> to vector<1x4x1xf32>
    tpu.vector_store %arg5[%c0_218, %c0_219, %c3_220], %191 {strides = array<i32>} : memref<1x4x64xf32, #tpu.memory_space<vmem>>, vector<1x4x1xf32>,
    %192 = vector.extract_strided_slice %165 {offsets = [0, 4, 0], sizes = [4, 4, 8], strides = [1, 1, 1]} : vector<4x16x8xf32> to vector<4x4x8xf32>
    %cst_221 = arith.constant dense<0xFF800000> : vector<4x8xf32>
    %193 = vector.multi_reduction <maximumf>, %192, %cst_221 [1] : vector<4x4x8xf32> to vector<4x8xf32>
    %194 = vector.extract_strided_slice %193 {offsets = [0, 0], sizes = [4, 2], strides = [1, 1]} : vector<4x8xf32> to vector<4x2xf32>
    %cst_222 = arith.constant dense<0xFF800000> : vector<4xf32>
    %195 = vector.multi_reduction <maximumf>, %194, %cst_222 [1] : vector<4x2xf32> to vector<4xf32>
    %196 = vector.shape_cast %195 : vector<4xf32> to vector<4x1xf32>
    %c0_223 = arith.constant 0 : index
    %c0_224 = arith.constant 0 : index
    %c4_225 = arith.constant 4 : index
    %197 = vector.load %arg5[%c0_223, %c0_224, %c4_225] : memref<1x4x64xf32, #tpu.memory_space<vmem>>, vector<1x4x1xf32>
    %198 = vector.shape_cast %197 : vector<1x4x1xf32> to vector<4x1xf32>
    %199 = vector.shape_cast %196 : vector<4x1xf32> to vector<1x4x1xf32>
    tpu.vector_store %arg5[%c0_223, %c0_224, %c4_225], %199 {strides = array<i32>} : memref<1x4x64xf32, #tpu.memory_space<vmem>>, vector<1x4x1xf32>,
    %200 = vector.extract_strided_slice %193 {offsets = [0, 2], sizes = [4, 2], strides = [1, 1]} : vector<4x8xf32> to vector<4x2xf32>
    %cst_226 = arith.constant dense<0xFF800000> : vector<4xf32>
    %201 = vector.multi_reduction <maximumf>, %200, %cst_226 [1] : vector<4x2xf32> to vector<4xf32>
    %202 = vector.shape_cast %201 : vector<4xf32> to vector<4x1xf32>
    %c0_227 = arith.constant 0 : index
    %c0_228 = arith.constant 0 : index
    %c5_229 = arith.constant 5 : index
    %203 = vector.load %arg5[%c0_227, %c0_228, %c5_229] : memref<1x4x64xf32, #tpu.memory_space<vmem>>, vector<1x4x1xf32>
    %204 = vector.shape_cast %203 : vector<1x4x1xf32> to vector<4x1xf32>
    %205 = vector.shape_cast %202 : vector<4x1xf32> to vector<1x4x1xf32>
    tpu.vector_store %arg5[%c0_227, %c0_228, %c5_229], %205 {strides = array<i32>} : memref<1x4x64xf32, #tpu.memory_space<vmem>>, vector<1x4x1xf32>,
    %206 = vector.extract_strided_slice %193 {offsets = [0, 4], sizes = [4, 2], strides = [1, 1]} : vector<4x8xf32> to vector<4x2xf32>
    %cst_230 = arith.constant dense<0xFF800000> : vector<4xf32>
    %207 = vector.multi_reduction <maximumf>, %206, %cst_230 [1] : vector<4x2xf32> to vector<4xf32>
    %208 = vector.shape_cast %207 : vector<4xf32> to vector<4x1xf32>
    %c0_231 = arith.constant 0 : index
    %c0_232 = arith.constant 0 : index
    %c6_233 = arith.constant 6 : index
    %209 = vector.load %arg5[%c0_231, %c0_232, %c6_233] : memref<1x4x64xf32, #tpu.memory_space<vmem>>, vector<1x4x1xf32>
    %210 = vector.shape_cast %209 : vector<1x4x1xf32> to vector<4x1xf32>
    %211 = vector.shape_cast %208 : vector<4x1xf32> to vector<1x4x1xf32>
    tpu.vector_store %arg5[%c0_231, %c0_232, %c6_233], %211 {strides = array<i32>} : memref<1x4x64xf32, #tpu.memory_space<vmem>>, vector<1x4x1xf32>,
    %212 = vector.extract_strided_slice %193 {offsets = [0, 6], sizes = [4, 2], strides = [1, 1]} : vector<4x8xf32> to vector<4x2xf32>
    %cst_234 = arith.constant dense<0xFF800000> : vector<4xf32>
    %213 = vector.multi_reduction <maximumf>, %212, %cst_234 [1] : vector<4x2xf32> to vector<4xf32>
    %214 = vector.shape_cast %213 : vector<4xf32> to vector<4x1xf32>
    %c0_235 = arith.constant 0 : index
    %c0_236 = arith.constant 0 : index
    %c7_237 = arith.constant 7 : index
    %215 = vector.load %arg5[%c0_235, %c0_236, %c7_237] : memref<1x4x64xf32, #tpu.memory_space<vmem>>, vector<1x4x1xf32>
    %216 = vector.shape_cast %215 : vector<1x4x1xf32> to vector<4x1xf32>
    %217 = vector.shape_cast %214 : vector<4x1xf32> to vector<1x4x1xf32>
    tpu.vector_store %arg5[%c0_235, %c0_236, %c7_237], %217 {strides = array<i32>} : memref<1x4x64xf32, #tpu.memory_space<vmem>>, vector<1x4x1xf32>,
    %218 = vector.extract_strided_slice %165 {offsets = [0, 8, 0], sizes = [4, 4, 8], strides = [1, 1, 1]} : vector<4x16x8xf32> to vector<4x4x8xf32>
    %cst_238 = arith.constant dense<0xFF800000> : vector<4x8xf32>
    %219 = vector.multi_reduction <maximumf>, %218, %cst_238 [1] : vector<4x4x8xf32> to vector<4x8xf32>
    %220 = vector.extract_strided_slice %219 {offsets = [0, 0], sizes = [4, 2], strides = [1, 1]} : vector<4x8xf32> to vector<4x2xf32>
    %cst_239 = arith.constant dense<0xFF800000> : vector<4xf32>
    %221 = vector.multi_reduction <maximumf>, %220, %cst_239 [1] : vector<4x2xf32> to vector<4xf32>
    %222 = vector.shape_cast %221 : vector<4xf32> to vector<4x1xf32>
    %c0_240 = arith.constant 0 : index
    %c0_241 = arith.constant 0 : index
    %c8_242 = arith.constant 8 : index
    %223 = vector.load %arg5[%c0_240, %c0_241, %c8_242] : memref<1x4x64xf32, #tpu.memory_space<vmem>>, vector<1x4x1xf32>
    %224 = vector.shape_cast %223 : vector<1x4x1xf32> to vector<4x1xf32>
    %225 = vector.shape_cast %222 : vector<4x1xf32> to vector<1x4x1xf32>
    tpu.vector_store %arg5[%c0_240, %c0_241, %c8_242], %225 {strides = array<i32>} : memref<1x4x64xf32, #tpu.memory_space<vmem>>, vector<1x4x1xf32>,
    %226 = vector.extract_strided_slice %219 {offsets = [0, 2], sizes = [4, 2], strides = [1, 1]} : vector<4x8xf32> to vector<4x2xf32>
    %cst_243 = arith.constant dense<0xFF800000> : vector<4xf32>
    %227 = vector.multi_reduction <maximumf>, %226, %cst_243 [1] : vector<4x2xf32> to vector<4xf32>
    %228 = vector.shape_cast %227 : vector<4xf32> to vector<4x1xf32>
    %c0_244 = arith.constant 0 : index
    %c0_245 = arith.constant 0 : index
    %c9_246 = arith.constant 9 : index
    %229 = vector.load %arg5[%c0_244, %c0_245, %c9_246] : memref<1x4x64xf32, #tpu.memory_space<vmem>>, vector<1x4x1xf32>
    %230 = vector.shape_cast %229 : vector<1x4x1xf32> to vector<4x1xf32>
    %231 = vector.shape_cast %228 : vector<4x1xf32> to vector<1x4x1xf32>
    tpu.vector_store %arg5[%c0_244, %c0_245, %c9_246], %231 {strides = array<i32>} : memref<1x4x64xf32, #tpu.memory_space<vmem>>, vector<1x4x1xf32>,
    %232 = vector.extract_strided_slice %219 {offsets = [0, 4], sizes = [4, 2], strides = [1, 1]} : vector<4x8xf32> to vector<4x2xf32>
    %cst_247 = arith.constant dense<0xFF800000> : vector<4xf32>
    %233 = vector.multi_reduction <maximumf>, %232, %cst_247 [1] : vector<4x2xf32> to vector<4xf32>
    %234 = vector.shape_cast %233 : vector<4xf32> to vector<4x1xf32>
    %c0_248 = arith.constant 0 : index
    %c0_249 = arith.constant 0 : index
    %c10_250 = arith.constant 10 : index
    %235 = vector.load %arg5[%c0_248, %c0_249, %c10_250] : memref<1x4x64xf32, #tpu.memory_space<vmem>>, vector<1x4x1xf32>
    %236 = vector.shape_cast %235 : vector<1x4x1xf32> to vector<4x1xf32>
    %237 = vector.shape_cast %234 : vector<4x1xf32> to vector<1x4x1xf32>
    tpu.vector_store %arg5[%c0_248, %c0_249, %c10_250], %237 {strides = array<i32>} : memref<1x4x64xf32, #tpu.memory_space<vmem>>, vector<1x4x1xf32>,
    %238 = vector.extract_strided_slice %219 {offsets = [0, 6], sizes = [4, 2], strides = [1, 1]} : vector<4x8xf32> to vector<4x2xf32>
    %cst_251 = arith.constant dense<0xFF800000> : vector<4xf32>
    %239 = vector.multi_reduction <maximumf>, %238, %cst_251 [1] : vector<4x2xf32> to vector<4xf32>
    %240 = vector.shape_cast %239 : vector<4xf32> to vector<4x1xf32>
    %c0_252 = arith.constant 0 : index
    %c0_253 = arith.constant 0 : index
    %c11_254 = arith.constant 11 : index
    %241 = vector.load %arg5[%c0_252, %c0_253, %c11_254] : memref<1x4x64xf32, #tpu.memory_space<vmem>>, vector<1x4x1xf32>
    %242 = vector.shape_cast %241 : vector<1x4x1xf32> to vector<4x1xf32>
    %243 = vector.shape_cast %240 : vector<4x1xf32> to vector<1x4x1xf32>
    tpu.vector_store %arg5[%c0_252, %c0_253, %c11_254], %243 {strides = array<i32>} : memref<1x4x64xf32, #tpu.memory_space<vmem>>, vector<1x4x1xf32>,
    %244 = vector.extract_strided_slice %165 {offsets = [0, 12, 0], sizes = [4, 4, 8], strides = [1, 1, 1]} : vector<4x16x8xf32> to vector<4x4x8xf32>
    %cst_255 = arith.constant dense<0xFF800000> : vector<4x8xf32>
    %245 = vector.multi_reduction <maximumf>, %244, %cst_255 [1] : vector<4x4x8xf32> to vector<4x8xf32>
    %246 = vector.extract_strided_slice %245 {offsets = [0, 0], sizes = [4, 2], strides = [1, 1]} : vector<4x8xf32> to vector<4x2xf32>
    %cst_256 = arith.constant dense<0xFF800000> : vector<4xf32>
    %247 = vector.multi_reduction <maximumf>, %246, %cst_256 [1] : vector<4x2xf32> to vector<4xf32>
    %248 = vector.shape_cast %247 : vector<4xf32> to vector<4x1xf32>
    %c0_257 = arith.constant 0 : index
    %c0_258 = arith.constant 0 : index
    %c12_259 = arith.constant 12 : index
    %249 = vector.load %arg5[%c0_257, %c0_258, %c12_259] : memref<1x4x64xf32, #tpu.memory_space<vmem>>, vector<1x4x1xf32>
    %250 = vector.shape_cast %249 : vector<1x4x1xf32> to vector<4x1xf32>
    %251 = vector.shape_cast %248 : vector<4x1xf32> to vector<1x4x1xf32>
    tpu.vector_store %arg5[%c0_257, %c0_258, %c12_259], %251 {strides = array<i32>} : memref<1x4x64xf32, #tpu.memory_space<vmem>>, vector<1x4x1xf32>,
    %252 = vector.extract_strided_slice %245 {offsets = [0, 2], sizes = [4, 2], strides = [1, 1]} : vector<4x8xf32> to vector<4x2xf32>
    %cst_260 = arith.constant dense<0xFF800000> : vector<4xf32>
    %253 = vector.multi_reduction <maximumf>, %252, %cst_260 [1] : vector<4x2xf32> to vector<4xf32>
    %254 = vector.shape_cast %253 : vector<4xf32> to vector<4x1xf32>
    %c0_261 = arith.constant 0 : index
    %c0_262 = arith.constant 0 : index
    %c13_263 = arith.constant 13 : index
    %255 = vector.load %arg5[%c0_261, %c0_262, %c13_263] : memref<1x4x64xf32, #tpu.memory_space<vmem>>, vector<1x4x1xf32>
    %256 = vector.shape_cast %255 : vector<1x4x1xf32> to vector<4x1xf32>
    %257 = vector.shape_cast %254 : vector<4x1xf32> to vector<1x4x1xf32>
    tpu.vector_store %arg5[%c0_261, %c0_262, %c13_263], %257 {strides = array<i32>} : memref<1x4x64xf32, #tpu.memory_space<vmem>>, vector<1x4x1xf32>,
    %258 = vector.extract_strided_slice %245 {offsets = [0, 4], sizes = [4, 2], strides = [1, 1]} : vector<4x8xf32> to vector<4x2xf32>
    %cst_264 = arith.constant dense<0xFF800000> : vector<4xf32>
    %259 = vector.multi_reduction <maximumf>, %258, %cst_264 [1] : vector<4x2xf32> to vector<4xf32>
    %260 = vector.shape_cast %259 : vector<4xf32> to vector<4x1xf32>
    %c0_265 = arith.constant 0 : index
    %c0_266 = arith.constant 0 : index
    %c14_267 = arith.constant 14 : index
    %261 = vector.load %arg5[%c0_265, %c0_266, %c14_267] : memref<1x4x64xf32, #tpu.memory_space<vmem>>, vector<1x4x1xf32>
    %262 = vector.shape_cast %261 : vector<1x4x1xf32> to vector<4x1xf32>
    %263 = vector.shape_cast %260 : vector<4x1xf32> to vector<1x4x1xf32>
    tpu.vector_store %arg5[%c0_265, %c0_266, %c14_267], %263 {strides = array<i32>} : memref<1x4x64xf32, #tpu.memory_space<vmem>>, vector<1x4x1xf32>,
    %264 = vector.extract_strided_slice %245 {offsets = [0, 6], sizes = [4, 2], strides = [1, 1]} : vector<4x8xf32> to vector<4x2xf32>
    %cst_268 = arith.constant dense<0xFF800000> : vector<4xf32>
    %265 = vector.multi_reduction <maximumf>, %264, %cst_268 [1] : vector<4x2xf32> to vector<4xf32>
    %266 = vector.shape_cast %265 : vector<4xf32> to vector<4x1xf32>
    %c0_269 = arith.constant 0 : index
    %c0_270 = arith.constant 0 : index
    %c15_271 = arith.constant 15 : index
    %267 = vector.load %arg5[%c0_269, %c0_270, %c15_271] : memref<1x4x64xf32, #tpu.memory_space<vmem>>, vector<1x4x1xf32>
    %268 = vector.shape_cast %267 : vector<1x4x1xf32> to vector<4x1xf32>
    %269 = vector.shape_cast %266 : vector<4x1xf32> to vector<1x4x1xf32>
    tpu.vector_store %arg5[%c0_269, %c0_270, %c15_271], %269 {strides = array<i32>} : memref<1x4x64xf32, #tpu.memory_space<vmem>>, vector<1x4x1xf32>,
    %c0_272 = arith.constant 0 : index
    %c0_273 = arith.constant 0 : index
    %c4_274 = arith.constant 4 : index
    %c0_275 = arith.constant 0 : index
    %c0_276 = arith.constant 0 : index
    %270 = vector.load %arg2[%c0_272, %c0_273, %c4_274, %c0_275, %c0_276] : memref<1x4x16x16x8xf32, #tpu.memory_space<vmem>>, vector<1x4x1x16x8xf32>
    %271 = vector.shape_cast %270 : vector<1x4x1x16x8xf32> to vector<4x16x8xf32>
    %c0_277 = arith.constant 0 : index
    %c0_278 = arith.constant 0 : index
    %c5_279 = arith.constant 5 : index
    %c0_280 = arith.constant 0 : index
    %c0_281 = arith.constant 0 : index
    %272 = vector.load %arg2[%c0_277, %c0_278, %c5_279, %c0_280, %c0_281] : memref<1x4x16x16x8xf32, #tpu.memory_space<vmem>>, vector<1x4x1x16x8xf32>
    %273 = vector.shape_cast %272 : vector<1x4x1x16x8xf32> to vector<4x16x8xf32>
    %274 = arith.maximumf %271, %273 : vector<4x16x8xf32>
    %c0_282 = arith.constant 0 : index
    %c0_283 = arith.constant 0 : index
    %c6_284 = arith.constant 6 : index
    %c0_285 = arith.constant 0 : index
    %c0_286 = arith.constant 0 : index
    %275 = vector.load %arg2[%c0_282, %c0_283, %c6_284, %c0_285, %c0_286] : memref<1x4x16x16x8xf32, #tpu.memory_space<vmem>>, vector<1x4x1x16x8xf32>
    %276 = vector.shape_cast %275 : vector<1x4x1x16x8xf32> to vector<4x16x8xf32>
    %277 = arith.maximumf %274, %276 : vector<4x16x8xf32>
    %c0_287 = arith.constant 0 : index
    %c0_288 = arith.constant 0 : index
    %c7_289 = arith.constant 7 : index
    %c0_290 = arith.constant 0 : index
    %c0_291 = arith.constant 0 : index
    %278 = vector.load %arg2[%c0_287, %c0_288, %c7_289, %c0_290, %c0_291] : memref<1x4x16x16x8xf32, #tpu.memory_space<vmem>>, vector<1x4x1x16x8xf32>
    %279 = vector.shape_cast %278 : vector<1x4x1x16x8xf32> to vector<4x16x8xf32>
    %280 = arith.maximumf %277, %279 : vector<4x16x8xf32>
    %281 = vector.extract_strided_slice %280 {offsets = [0, 0, 0], sizes = [4, 4, 8], strides = [1, 1, 1]} : vector<4x16x8xf32> to vector<4x4x8xf32>
    %cst_292 = arith.constant dense<0xFF800000> : vector<4x8xf32>
    %282 = vector.multi_reduction <maximumf>, %281, %cst_292 [1] : vector<4x4x8xf32> to vector<4x8xf32>
    %283 = vector.extract_strided_slice %282 {offsets = [0, 0], sizes = [4, 2], strides = [1, 1]} : vector<4x8xf32> to vector<4x2xf32>
    %cst_293 = arith.constant dense<0xFF800000> : vector<4xf32>
    %284 = vector.multi_reduction <maximumf>, %283, %cst_293 [1] : vector<4x2xf32> to vector<4xf32>
    %285 = vector.shape_cast %284 : vector<4xf32> to vector<4x1xf32>
    %c0_294 = arith.constant 0 : index
    %c0_295 = arith.constant 0 : index
    %c16 = arith.constant 16 : index
    %286 = vector.load %arg5[%c0_294, %c0_295, %c16] : memref<1x4x64xf32, #tpu.memory_space<vmem>>, vector<1x4x1xf32>
    %287 = vector.shape_cast %286 : vector<1x4x1xf32> to vector<4x1xf32>
    %288 = vector.shape_cast %285 : vector<4x1xf32> to vector<1x4x1xf32>
    tpu.vector_store %arg5[%c0_294, %c0_295, %c16], %288 {strides = array<i32>} : memref<1x4x64xf32, #tpu.memory_space<vmem>>, vector<1x4x1xf32>,
    %289 = vector.extract_strided_slice %282 {offsets = [0, 2], sizes = [4, 2], strides = [1, 1]} : vector<4x8xf32> to vector<4x2xf32>
    %cst_296 = arith.constant dense<0xFF800000> : vector<4xf32>
    %290 = vector.multi_reduction <maximumf>, %289, %cst_296 [1] : vector<4x2xf32> to vector<4xf32>
    %291 = vector.shape_cast %290 : vector<4xf32> to vector<4x1xf32>
    %c0_297 = arith.constant 0 : index
    %c0_298 = arith.constant 0 : index
    %c17 = arith.constant 17 : index
    %292 = vector.load %arg5[%c0_297, %c0_298, %c17] : memref<1x4x64xf32, #tpu.memory_space<vmem>>, vector<1x4x1xf32>
    %293 = vector.shape_cast %292 : vector<1x4x1xf32> to vector<4x1xf32>
    %294 = vector.shape_cast %291 : vector<4x1xf32> to vector<1x4x1xf32>
    tpu.vector_store %arg5[%c0_297, %c0_298, %c17], %294 {strides = array<i32>} : memref<1x4x64xf32, #tpu.memory_space<vmem>>, vector<1x4x1xf32>,
    %295 = vector.extract_strided_slice %282 {offsets = [0, 4], sizes = [4, 2], strides = [1, 1]} : vector<4x8xf32> to vector<4x2xf32>
    %cst_299 = arith.constant dense<0xFF800000> : vector<4xf32>
    %296 = vector.multi_reduction <maximumf>, %295, %cst_299 [1] : vector<4x2xf32> to vector<4xf32>
    %297 = vector.shape_cast %296 : vector<4xf32> to vector<4x1xf32>
    %c0_300 = arith.constant 0 : index
    %c0_301 = arith.constant 0 : index
    %c18 = arith.constant 18 : index
    %298 = vector.load %arg5[%c0_300, %c0_301, %c18] : memref<1x4x64xf32, #tpu.memory_space<vmem>>, vector<1x4x1xf32>
    %299 = vector.shape_cast %298 : vector<1x4x1xf32> to vector<4x1xf32>
    %300 = vector.shape_cast %297 : vector<4x1xf32> to vector<1x4x1xf32>
    tpu.vector_store %arg5[%c0_300, %c0_301, %c18], %300 {strides = array<i32>} : memref<1x4x64xf32, #tpu.memory_space<vmem>>, vector<1x4x1xf32>,
    %301 = vector.extract_strided_slice %282 {offsets = [0, 6], sizes = [4, 2], strides = [1, 1]} : vector<4x8xf32> to vector<4x2xf32>
    %cst_302 = arith.constant dense<0xFF800000> : vector<4xf32>
    %302 = vector.multi_reduction <maximumf>, %301, %cst_302 [1] : vector<4x2xf32> to vector<4xf32>
    %303 = vector.shape_cast %302 : vector<4xf32> to vector<4x1xf32>
    %c0_303 = arith.constant 0 : index
    %c0_304 = arith.constant 0 : index
    %c19 = arith.constant 19 : index
    %304 = vector.load %arg5[%c0_303, %c0_304, %c19] : memref<1x4x64xf32, #tpu.memory_space<vmem>>, vector<1x4x1xf32>
    %305 = vector.shape_cast %304 : vector<1x4x1xf32> to vector<4x1xf32>
    %306 = vector.shape_cast %303 : vector<4x1xf32> to vector<1x4x1xf32>
    tpu.vector_store %arg5[%c0_303, %c0_304, %c19], %306 {strides = array<i32>} : memref<1x4x64xf32, #tpu.memory_space<vmem>>, vector<1x4x1xf32>,
    %307 = vector.extract_strided_slice %280 {offsets = [0, 4, 0], sizes = [4, 4, 8], strides = [1, 1, 1]} : vector<4x16x8xf32> to vector<4x4x8xf32>
    %cst_305 = arith.constant dense<0xFF800000> : vector<4x8xf32>
    %308 = vector.multi_reduction <maximumf>, %307, %cst_305 [1] : vector<4x4x8xf32> to vector<4x8xf32>
    %309 = vector.extract_strided_slice %308 {offsets = [0, 0], sizes = [4, 2], strides = [1, 1]} : vector<4x8xf32> to vector<4x2xf32>
    %cst_306 = arith.constant dense<0xFF800000> : vector<4xf32>
    %310 = vector.multi_reduction <maximumf>, %309, %cst_306 [1] : vector<4x2xf32> to vector<4xf32>
    %311 = vector.shape_cast %310 : vector<4xf32> to vector<4x1xf32>
    %c0_307 = arith.constant 0 : index
    %c0_308 = arith.constant 0 : index
    %c20 = arith.constant 20 : index
    %312 = vector.load %arg5[%c0_307, %c0_308, %c20] : memref<1x4x64xf32, #tpu.memory_space<vmem>>, vector<1x4x1xf32>
    %313 = vector.shape_cast %312 : vector<1x4x1xf32> to vector<4x1xf32>
    %314 = vector.shape_cast %311 : vector<4x1xf32> to vector<1x4x1xf32>
    tpu.vector_store %arg5[%c0_307, %c0_308, %c20], %314 {strides = array<i32>} : memref<1x4x64xf32, #tpu.memory_space<vmem>>, vector<1x4x1xf32>,
    %315 = vector.extract_strided_slice %308 {offsets = [0, 2], sizes = [4, 2], strides = [1, 1]} : vector<4x8xf32> to vector<4x2xf32>
    %cst_309 = arith.constant dense<0xFF800000> : vector<4xf32>
    %316 = vector.multi_reduction <maximumf>, %315, %cst_309 [1] : vector<4x2xf32> to vector<4xf32>
    %317 = vector.shape_cast %316 : vector<4xf32> to vector<4x1xf32>
    %c0_310 = arith.constant 0 : index
    %c0_311 = arith.constant 0 : index
    %c21 = arith.constant 21 : index
    %318 = vector.load %arg5[%c0_310, %c0_311, %c21] : memref<1x4x64xf32, #tpu.memory_space<vmem>>, vector<1x4x1xf32>
    %319 = vector.shape_cast %318 : vector<1x4x1xf32> to vector<4x1xf32>
    %320 = vector.shape_cast %317 : vector<4x1xf32> to vector<1x4x1xf32>
    tpu.vector_store %arg5[%c0_310, %c0_311, %c21], %320 {strides = array<i32>} : memref<1x4x64xf32, #tpu.memory_space<vmem>>, vector<1x4x1xf32>,
    %321 = vector.extract_strided_slice %308 {offsets = [0, 4], sizes = [4, 2], strides = [1, 1]} : vector<4x8xf32> to vector<4x2xf32>
    %cst_312 = arith.constant dense<0xFF800000> : vector<4xf32>
    %322 = vector.multi_reduction <maximumf>, %321, %cst_312 [1] : vector<4x2xf32> to vector<4xf32>
    %323 = vector.shape_cast %322 : vector<4xf32> to vector<4x1xf32>
    %c0_313 = arith.constant 0 : index
    %c0_314 = arith.constant 0 : index
    %c22 = arith.constant 22 : index
    %324 = vector.load %arg5[%c0_313, %c0_314, %c22] : memref<1x4x64xf32, #tpu.memory_space<vmem>>, vector<1x4x1xf32>
    %325 = vector.shape_cast %324 : vector<1x4x1xf32> to vector<4x1xf32>
    %326 = vector.shape_cast %323 : vector<4x1xf32> to vector<1x4x1xf32>
    tpu.vector_store %arg5[%c0_313, %c0_314, %c22], %326 {strides = array<i32>} : memref<1x4x64xf32, #tpu.memory_space<vmem>>, vector<1x4x1xf32>,
    %327 = vector.extract_strided_slice %308 {offsets = [0, 6], sizes = [4, 2], strides = [1, 1]} : vector<4x8xf32> to vector<4x2xf32>
    %cst_315 = arith.constant dense<0xFF800000> : vector<4xf32>
    %328 = vector.multi_reduction <maximumf>, %327, %cst_315 [1] : vector<4x2xf32> to vector<4xf32>
    %329 = vector.shape_cast %328 : vector<4xf32> to vector<4x1xf32>
    %c0_316 = arith.constant 0 : index
    %c0_317 = arith.constant 0 : index
    %c23 = arith.constant 23 : index
    %330 = vector.load %arg5[%c0_316, %c0_317, %c23] : memref<1x4x64xf32, #tpu.memory_space<vmem>>, vector<1x4x1xf32>
    %331 = vector.shape_cast %330 : vector<1x4x1xf32> to vector<4x1xf32>
    %332 = vector.shape_cast %329 : vector<4x1xf32> to vector<1x4x1xf32>
    tpu.vector_store %arg5[%c0_316, %c0_317, %c23], %332 {strides = array<i32>} : memref<1x4x64xf32, #tpu.memory_space<vmem>>, vector<1x4x1xf32>,
    %333 = vector.extract_strided_slice %280 {offsets = [0, 8, 0], sizes = [4, 4, 8], strides = [1, 1, 1]} : vector<4x16x8xf32> to vector<4x4x8xf32>
    %cst_318 = arith.constant dense<0xFF800000> : vector<4x8xf32>
    %334 = vector.multi_reduction <maximumf>, %333, %cst_318 [1] : vector<4x4x8xf32> to vector<4x8xf32>
    %335 = vector.extract_strided_slice %334 {offsets = [0, 0], sizes = [4, 2], strides = [1, 1]} : vector<4x8xf32> to vector<4x2xf32>
    %cst_319 = arith.constant dense<0xFF800000> : vector<4xf32>
    %336 = vector.multi_reduction <maximumf>, %335, %cst_319 [1] : vector<4x2xf32> to vector<4xf32>
    %337 = vector.shape_cast %336 : vector<4xf32> to vector<4x1xf32>
    %c0_320 = arith.constant 0 : index
    %c0_321 = arith.constant 0 : index
    %c24 = arith.constant 24 : index
    %338 = vector.load %arg5[%c0_320, %c0_321, %c24] : memref<1x4x64xf32, #tpu.memory_space<vmem>>, vector<1x4x1xf32>
    %339 = vector.shape_cast %338 : vector<1x4x1xf32> to vector<4x1xf32>
    %340 = vector.shape_cast %337 : vector<4x1xf32> to vector<1x4x1xf32>
    tpu.vector_store %arg5[%c0_320, %c0_321, %c24], %340 {strides = array<i32>} : memref<1x4x64xf32, #tpu.memory_space<vmem>>, vector<1x4x1xf32>,
    %341 = vector.extract_strided_slice %334 {offsets = [0, 2], sizes = [4, 2], strides = [1, 1]} : vector<4x8xf32> to vector<4x2xf32>
    %cst_322 = arith.constant dense<0xFF800000> : vector<4xf32>
    %342 = vector.multi_reduction <maximumf>, %341, %cst_322 [1] : vector<4x2xf32> to vector<4xf32>
    %343 = vector.shape_cast %342 : vector<4xf32> to vector<4x1xf32>
    %c0_323 = arith.constant 0 : index
    %c0_324 = arith.constant 0 : index
    %c25 = arith.constant 25 : index
    %344 = vector.load %arg5[%c0_323, %c0_324, %c25] : memref<1x4x64xf32, #tpu.memory_space<vmem>>, vector<1x4x1xf32>
    %345 = vector.shape_cast %344 : vector<1x4x1xf32> to vector<4x1xf32>
    %346 = vector.shape_cast %343 : vector<4x1xf32> to vector<1x4x1xf32>
    tpu.vector_store %arg5[%c0_323, %c0_324, %c25], %346 {strides = array<i32>} : memref<1x4x64xf32, #tpu.memory_space<vmem>>, vector<1x4x1xf32>,
    %347 = vector.extract_strided_slice %334 {offsets = [0, 4], sizes = [4, 2], strides = [1, 1]} : vector<4x8xf32> to vector<4x2xf32>
    %cst_325 = arith.constant dense<0xFF800000> : vector<4xf32>
    %348 = vector.multi_reduction <maximumf>, %347, %cst_325 [1] : vector<4x2xf32> to vector<4xf32>
    %349 = vector.shape_cast %348 : vector<4xf32> to vector<4x1xf32>
    %c0_326 = arith.constant 0 : index
    %c0_327 = arith.constant 0 : index
    %c26 = arith.constant 26 : index
    %350 = vector.load %arg5[%c0_326, %c0_327, %c26] : memref<1x4x64xf32, #tpu.memory_space<vmem>>, vector<1x4x1xf32>
    %351 = vector.shape_cast %350 : vector<1x4x1xf32> to vector<4x1xf32>
    %352 = vector.shape_cast %349 : vector<4x1xf32> to vector<1x4x1xf32>
    tpu.vector_store %arg5[%c0_326, %c0_327, %c26], %352 {strides = array<i32>} : memref<1x4x64xf32, #tpu.memory_space<vmem>>, vector<1x4x1xf32>,
    %353 = vector.extract_strided_slice %334 {offsets = [0, 6], sizes = [4, 2], strides = [1, 1]} : vector<4x8xf32> to vector<4x2xf32>
    %cst_328 = arith.constant dense<0xFF800000> : vector<4xf32>
    %354 = vector.multi_reduction <maximumf>, %353, %cst_328 [1] : vector<4x2xf32> to vector<4xf32>
    %355 = vector.shape_cast %354 : vector<4xf32> to vector<4x1xf32>
    %c0_329 = arith.constant 0 : index
    %c0_330 = arith.constant 0 : index
    %c27 = arith.constant 27 : index
    %356 = vector.load %arg5[%c0_329, %c0_330, %c27] : memref<1x4x64xf32, #tpu.memory_space<vmem>>, vector<1x4x1xf32>
    %357 = vector.shape_cast %356 : vector<1x4x1xf32> to vector<4x1xf32>
    %358 = vector.shape_cast %355 : vector<4x1xf32> to vector<1x4x1xf32>
    tpu.vector_store %arg5[%c0_329, %c0_330, %c27], %358 {strides = array<i32>} : memref<1x4x64xf32, #tpu.memory_space<vmem>>, vector<1x4x1xf32>,
    %359 = vector.extract_strided_slice %280 {offsets = [0, 12, 0], sizes = [4, 4, 8], strides = [1, 1, 1]} : vector<4x16x8xf32> to vector<4x4x8xf32>
    %cst_331 = arith.constant dense<0xFF800000> : vector<4x8xf32>
    %360 = vector.multi_reduction <maximumf>, %359, %cst_331 [1] : vector<4x4x8xf32> to vector<4x8xf32>
    %361 = vector.extract_strided_slice %360 {offsets = [0, 0], sizes = [4, 2], strides = [1, 1]} : vector<4x8xf32> to vector<4x2xf32>
    %cst_332 = arith.constant dense<0xFF800000> : vector<4xf32>
    %362 = vector.multi_reduction <maximumf>, %361, %cst_332 [1] : vector<4x2xf32> to vector<4xf32>
    %363 = vector.shape_cast %362 : vector<4xf32> to vector<4x1xf32>
    %c0_333 = arith.constant 0 : index
    %c0_334 = arith.constant 0 : index
    %c28 = arith.constant 28 : index
    %364 = vector.load %arg5[%c0_333, %c0_334, %c28] : memref<1x4x64xf32, #tpu.memory_space<vmem>>, vector<1x4x1xf32>
    %365 = vector.shape_cast %364 : vector<1x4x1xf32> to vector<4x1xf32>
    %366 = vector.shape_cast %363 : vector<4x1xf32> to vector<1x4x1xf32>
    tpu.vector_store %arg5[%c0_333, %c0_334, %c28], %366 {strides = array<i32>} : memref<1x4x64xf32, #tpu.memory_space<vmem>>, vector<1x4x1xf32>,
    %367 = vector.extract_strided_slice %360 {offsets = [0, 2], sizes = [4, 2], strides = [1, 1]} : vector<4x8xf32> to vector<4x2xf32>
    %cst_335 = arith.constant dense<0xFF800000> : vector<4xf32>
    %368 = vector.multi_reduction <maximumf>, %367, %cst_335 [1] : vector<4x2xf32> to vector<4xf32>
    %369 = vector.shape_cast %368 : vector<4xf32> to vector<4x1xf32>
    %c0_336 = arith.constant 0 : index
    %c0_337 = arith.constant 0 : index
    %c29 = arith.constant 29 : index
    %370 = vector.load %arg5[%c0_336, %c0_337, %c29] : memref<1x4x64xf32, #tpu.memory_space<vmem>>, vector<1x4x1xf32>
    %371 = vector.shape_cast %370 : vector<1x4x1xf32> to vector<4x1xf32>
    %372 = vector.shape_cast %369 : vector<4x1xf32> to vector<1x4x1xf32>
    tpu.vector_store %arg5[%c0_336, %c0_337, %c29], %372 {strides = array<i32>} : memref<1x4x64xf32, #tpu.memory_space<vmem>>, vector<1x4x1xf32>,
    %373 = vector.extract_strided_slice %360 {offsets = [0, 4], sizes = [4, 2], strides = [1, 1]} : vector<4x8xf32> to vector<4x2xf32>
    %cst_338 = arith.constant dense<0xFF800000> : vector<4xf32>
    %374 = vector.multi_reduction <maximumf>, %373, %cst_338 [1] : vector<4x2xf32> to vector<4xf32>
    %375 = vector.shape_cast %374 : vector<4xf32> to vector<4x1xf32>
    %c0_339 = arith.constant 0 : index
    %c0_340 = arith.constant 0 : index
    %c30 = arith.constant 30 : index
    %376 = vector.load %arg5[%c0_339, %c0_340, %c30] : memref<1x4x64xf32, #tpu.memory_space<vmem>>, vector<1x4x1xf32>
    %377 = vector.shape_cast %376 : vector<1x4x1xf32> to vector<4x1xf32>
    %378 = vector.shape_cast %375 : vector<4x1xf32> to vector<1x4x1xf32>
    tpu.vector_store %arg5[%c0_339, %c0_340, %c30], %378 {strides = array<i32>} : memref<1x4x64xf32, #tpu.memory_space<vmem>>, vector<1x4x1xf32>,
    %379 = vector.extract_strided_slice %360 {offsets = [0, 6], sizes = [4, 2], strides = [1, 1]} : vector<4x8xf32> to vector<4x2xf32>
    %cst_341 = arith.constant dense<0xFF800000> : vector<4xf32>
    %380 = vector.multi_reduction <maximumf>, %379, %cst_341 [1] : vector<4x2xf32> to vector<4xf32>
    %381 = vector.shape_cast %380 : vector<4xf32> to vector<4x1xf32>
    %c0_342 = arith.constant 0 : index
    %c0_343 = arith.constant 0 : index
    %c31 = arith.constant 31 : index
    %382 = vector.load %arg5[%c0_342, %c0_343, %c31] : memref<1x4x64xf32, #tpu.memory_space<vmem>>, vector<1x4x1xf32>
    %383 = vector.shape_cast %382 : vector<1x4x1xf32> to vector<4x1xf32>
    %384 = vector.shape_cast %381 : vector<4x1xf32> to vector<1x4x1xf32>
    tpu.vector_store %arg5[%c0_342, %c0_343, %c31], %384 {strides = array<i32>} : memref<1x4x64xf32, #tpu.memory_space<vmem>>, vector<1x4x1xf32>,
    %c0_344 = arith.constant 0 : index
    %c0_345 = arith.constant 0 : index
    %c8_346 = arith.constant 8 : index
    %c0_347 = arith.constant 0 : index
    %c0_348 = arith.constant 0 : index
    %385 = vector.load %arg2[%c0_344, %c0_345, %c8_346, %c0_347, %c0_348] : memref<1x4x16x16x8xf32, #tpu.memory_space<vmem>>, vector<1x4x1x16x8xf32>
    %386 = vector.shape_cast %385 : vector<1x4x1x16x8xf32> to vector<4x16x8xf32>
    %c0_349 = arith.constant 0 : index
    %c0_350 = arith.constant 0 : index
    %c9_351 = arith.constant 9 : index
    %c0_352 = arith.constant 0 : index
    %c0_353 = arith.constant 0 : index
    %387 = vector.load %arg2[%c0_349, %c0_350, %c9_351, %c0_352, %c0_353] : memref<1x4x16x16x8xf32, #tpu.memory_space<vmem>>, vector<1x4x1x16x8xf32>
    %388 = vector.shape_cast %387 : vector<1x4x1x16x8xf32> to vector<4x16x8xf32>
    %389 = arith.maximumf %386, %388 : vector<4x16x8xf32>
    %c0_354 = arith.constant 0 : index
    %c0_355 = arith.constant 0 : index
    %c10_356 = arith.constant 10 : index
    %c0_357 = arith.constant 0 : index
    %c0_358 = arith.constant 0 : index
    %390 = vector.load %arg2[%c0_354, %c0_355, %c10_356, %c0_357, %c0_358] : memref<1x4x16x16x8xf32, #tpu.memory_space<vmem>>, vector<1x4x1x16x8xf32>
    %391 = vector.shape_cast %390 : vector<1x4x1x16x8xf32> to vector<4x16x8xf32>
    %392 = arith.maximumf %389, %391 : vector<4x16x8xf32>
    %c0_359 = arith.constant 0 : index
    %c0_360 = arith.constant 0 : index
    %c11_361 = arith.constant 11 : index
    %c0_362 = arith.constant 0 : index
    %c0_363 = arith.constant 0 : index
    %393 = vector.load %arg2[%c0_359, %c0_360, %c11_361, %c0_362, %c0_363] : memref<1x4x16x16x8xf32, #tpu.memory_space<vmem>>, vector<1x4x1x16x8xf32>
    %394 = vector.shape_cast %393 : vector<1x4x1x16x8xf32> to vector<4x16x8xf32>
    %395 = arith.maximumf %392, %394 : vector<4x16x8xf32>
    %396 = vector.extract_strided_slice %395 {offsets = [0, 0, 0], sizes = [4, 4, 8], strides = [1, 1, 1]} : vector<4x16x8xf32> to vector<4x4x8xf32>
    %cst_364 = arith.constant dense<0xFF800000> : vector<4x8xf32>
    %397 = vector.multi_reduction <maximumf>, %396, %cst_364 [1] : vector<4x4x8xf32> to vector<4x8xf32>
    %398 = vector.extract_strided_slice %397 {offsets = [0, 0], sizes = [4, 2], strides = [1, 1]} : vector<4x8xf32> to vector<4x2xf32>
    %cst_365 = arith.constant dense<0xFF800000> : vector<4xf32>
    %399 = vector.multi_reduction <maximumf>, %398, %cst_365 [1] : vector<4x2xf32> to vector<4xf32>
    %400 = vector.shape_cast %399 : vector<4xf32> to vector<4x1xf32>
    %c0_366 = arith.constant 0 : index
    %c0_367 = arith.constant 0 : index
    %c32 = arith.constant 32 : index
    %401 = vector.load %arg5[%c0_366, %c0_367, %c32] : memref<1x4x64xf32, #tpu.memory_space<vmem>>, vector<1x4x1xf32>
    %402 = vector.shape_cast %401 : vector<1x4x1xf32> to vector<4x1xf32>
    %403 = vector.shape_cast %400 : vector<4x1xf32> to vector<1x4x1xf32>
    tpu.vector_store %arg5[%c0_366, %c0_367, %c32], %403 {strides = array<i32>} : memref<1x4x64xf32, #tpu.memory_space<vmem>>, vector<1x4x1xf32>,
    %404 = vector.extract_strided_slice %397 {offsets = [0, 2], sizes = [4, 2], strides = [1, 1]} : vector<4x8xf32> to vector<4x2xf32>
    %cst_368 = arith.constant dense<0xFF800000> : vector<4xf32>
    %405 = vector.multi_reduction <maximumf>, %404, %cst_368 [1] : vector<4x2xf32> to vector<4xf32>
    %406 = vector.shape_cast %405 : vector<4xf32> to vector<4x1xf32>
    %c0_369 = arith.constant 0 : index
    %c0_370 = arith.constant 0 : index
    %c33 = arith.constant 33 : index
    %407 = vector.load %arg5[%c0_369, %c0_370, %c33] : memref<1x4x64xf32, #tpu.memory_space<vmem>>, vector<1x4x1xf32>
    %408 = vector.shape_cast %407 : vector<1x4x1xf32> to vector<4x1xf32>
    %409 = vector.shape_cast %406 : vector<4x1xf32> to vector<1x4x1xf32>
    tpu.vector_store %arg5[%c0_369, %c0_370, %c33], %409 {strides = array<i32>} : memref<1x4x64xf32, #tpu.memory_space<vmem>>, vector<1x4x1xf32>,
    %410 = vector.extract_strided_slice %397 {offsets = [0, 4], sizes = [4, 2], strides = [1, 1]} : vector<4x8xf32> to vector<4x2xf32>
    %cst_371 = arith.constant dense<0xFF800000> : vector<4xf32>
    %411 = vector.multi_reduction <maximumf>, %410, %cst_371 [1] : vector<4x2xf32> to vector<4xf32>
    %412 = vector.shape_cast %411 : vector<4xf32> to vector<4x1xf32>
    %c0_372 = arith.constant 0 : index
    %c0_373 = arith.constant 0 : index
    %c34 = arith.constant 34 : index
    %413 = vector.load %arg5[%c0_372, %c0_373, %c34] : memref<1x4x64xf32, #tpu.memory_space<vmem>>, vector<1x4x1xf32>
    %414 = vector.shape_cast %413 : vector<1x4x1xf32> to vector<4x1xf32>
    %415 = vector.shape_cast %412 : vector<4x1xf32> to vector<1x4x1xf32>
    tpu.vector_store %arg5[%c0_372, %c0_373, %c34], %415 {strides = array<i32>} : memref<1x4x64xf32, #tpu.memory_space<vmem>>, vector<1x4x1xf32>,
    %416 = vector.extract_strided_slice %397 {offsets = [0, 6], sizes = [4, 2], strides = [1, 1]} : vector<4x8xf32> to vector<4x2xf32>
    %cst_374 = arith.constant dense<0xFF800000> : vector<4xf32>
    %417 = vector.multi_reduction <maximumf>, %416, %cst_374 [1] : vector<4x2xf32> to vector<4xf32>
    %418 = vector.shape_cast %417 : vector<4xf32> to vector<4x1xf32>
    %c0_375 = arith.constant 0 : index
    %c0_376 = arith.constant 0 : index
    %c35 = arith.constant 35 : index
    %419 = vector.load %arg5[%c0_375, %c0_376, %c35] : memref<1x4x64xf32, #tpu.memory_space<vmem>>, vector<1x4x1xf32>
    %420 = vector.shape_cast %419 : vector<1x4x1xf32> to vector<4x1xf32>
    %421 = vector.shape_cast %418 : vector<4x1xf32> to vector<1x4x1xf32>
    tpu.vector_store %arg5[%c0_375, %c0_376, %c35], %421 {strides = array<i32>} : memref<1x4x64xf32, #tpu.memory_space<vmem>>, vector<1x4x1xf32>,
    %422 = vector.extract_strided_slice %395 {offsets = [0, 4, 0], sizes = [4, 4, 8], strides = [1, 1, 1]} : vector<4x16x8xf32> to vector<4x4x8xf32>
    %cst_377 = arith.constant dense<0xFF800000> : vector<4x8xf32>
    %423 = vector.multi_reduction <maximumf>, %422, %cst_377 [1] : vector<4x4x8xf32> to vector<4x8xf32>
    %424 = vector.extract_strided_slice %423 {offsets = [0, 0], sizes = [4, 2], strides = [1, 1]} : vector<4x8xf32> to vector<4x2xf32>
    %cst_378 = arith.constant dense<0xFF800000> : vector<4xf32>
    %425 = vector.multi_reduction <maximumf>, %424, %cst_378 [1] : vector<4x2xf32> to vector<4xf32>
    %426 = vector.shape_cast %425 : vector<4xf32> to vector<4x1xf32>
    %c0_379 = arith.constant 0 : index
    %c0_380 = arith.constant 0 : index
    %c36 = arith.constant 36 : index
    %427 = vector.load %arg5[%c0_379, %c0_380, %c36] : memref<1x4x64xf32, #tpu.memory_space<vmem>>, vector<1x4x1xf32>
    %428 = vector.shape_cast %427 : vector<1x4x1xf32> to vector<4x1xf32>
    %429 = vector.shape_cast %426 : vector<4x1xf32> to vector<1x4x1xf32>
    tpu.vector_store %arg5[%c0_379, %c0_380, %c36], %429 {strides = array<i32>} : memref<1x4x64xf32, #tpu.memory_space<vmem>>, vector<1x4x1xf32>,
    %430 = vector.extract_strided_slice %423 {offsets = [0, 2], sizes = [4, 2], strides = [1, 1]} : vector<4x8xf32> to vector<4x2xf32>
    %cst_381 = arith.constant dense<0xFF800000> : vector<4xf32>
    %431 = vector.multi_reduction <maximumf>, %430, %cst_381 [1] : vector<4x2xf32> to vector<4xf32>
    %432 = vector.shape_cast %431 : vector<4xf32> to vector<4x1xf32>
    %c0_382 = arith.constant 0 : index
    %c0_383 = arith.constant 0 : index
    %c37 = arith.constant 37 : index
    %433 = vector.load %arg5[%c0_382, %c0_383, %c37] : memref<1x4x64xf32, #tpu.memory_space<vmem>>, vector<1x4x1xf32>
    %434 = vector.shape_cast %433 : vector<1x4x1xf32> to vector<4x1xf32>
    %435 = vector.shape_cast %432 : vector<4x1xf32> to vector<1x4x1xf32>
    tpu.vector_store %arg5[%c0_382, %c0_383, %c37], %435 {strides = array<i32>} : memref<1x4x64xf32, #tpu.memory_space<vmem>>, vector<1x4x1xf32>,
    %436 = vector.extract_strided_slice %423 {offsets = [0, 4], sizes = [4, 2], strides = [1, 1]} : vector<4x8xf32> to vector<4x2xf32>
    %cst_384 = arith.constant dense<0xFF800000> : vector<4xf32>
    %437 = vector.multi_reduction <maximumf>, %436, %cst_384 [1] : vector<4x2xf32> to vector<4xf32>
    %438 = vector.shape_cast %437 : vector<4xf32> to vector<4x1xf32>
    %c0_385 = arith.constant 0 : index
    %c0_386 = arith.constant 0 : index
    %c38 = arith.constant 38 : index
    %439 = vector.load %arg5[%c0_385, %c0_386, %c38] : memref<1x4x64xf32, #tpu.memory_space<vmem>>, vector<1x4x1xf32>
    %440 = vector.shape_cast %439 : vector<1x4x1xf32> to vector<4x1xf32>
    %441 = vector.shape_cast %438 : vector<4x1xf32> to vector<1x4x1xf32>
    tpu.vector_store %arg5[%c0_385, %c0_386, %c38], %441 {strides = array<i32>} : memref<1x4x64xf32, #tpu.memory_space<vmem>>, vector<1x4x1xf32>,
    %442 = vector.extract_strided_slice %423 {offsets = [0, 6], sizes = [4, 2], strides = [1, 1]} : vector<4x8xf32> to vector<4x2xf32>
    %cst_387 = arith.constant dense<0xFF800000> : vector<4xf32>
    %443 = vector.multi_reduction <maximumf>, %442, %cst_387 [1] : vector<4x2xf32> to vector<4xf32>
    %444 = vector.shape_cast %443 : vector<4xf32> to vector<4x1xf32>
    %c0_388 = arith.constant 0 : index
    %c0_389 = arith.constant 0 : index
    %c39 = arith.constant 39 : index
    %445 = vector.load %arg5[%c0_388, %c0_389, %c39] : memref<1x4x64xf32, #tpu.memory_space<vmem>>, vector<1x4x1xf32>
    %446 = vector.shape_cast %445 : vector<1x4x1xf32> to vector<4x1xf32>
    %447 = vector.shape_cast %444 : vector<4x1xf32> to vector<1x4x1xf32>
    tpu.vector_store %arg5[%c0_388, %c0_389, %c39], %447 {strides = array<i32>} : memref<1x4x64xf32, #tpu.memory_space<vmem>>, vector<1x4x1xf32>,
    %448 = vector.extract_strided_slice %395 {offsets = [0, 8, 0], sizes = [4, 4, 8], strides = [1, 1, 1]} : vector<4x16x8xf32> to vector<4x4x8xf32>
    %cst_390 = arith.constant dense<0xFF800000> : vector<4x8xf32>
    %449 = vector.multi_reduction <maximumf>, %448, %cst_390 [1] : vector<4x4x8xf32> to vector<4x8xf32>
    %450 = vector.extract_strided_slice %449 {offsets = [0, 0], sizes = [4, 2], strides = [1, 1]} : vector<4x8xf32> to vector<4x2xf32>
    %cst_391 = arith.constant dense<0xFF800000> : vector<4xf32>
    %451 = vector.multi_reduction <maximumf>, %450, %cst_391 [1] : vector<4x2xf32> to vector<4xf32>
    %452 = vector.shape_cast %451 : vector<4xf32> to vector<4x1xf32>
    %c0_392 = arith.constant 0 : index
    %c0_393 = arith.constant 0 : index
    %c40 = arith.constant 40 : index
    %453 = vector.load %arg5[%c0_392, %c0_393, %c40] : memref<1x4x64xf32, #tpu.memory_space<vmem>>, vector<1x4x1xf32>
    %454 = vector.shape_cast %453 : vector<1x4x1xf32> to vector<4x1xf32>
    %455 = vector.shape_cast %452 : vector<4x1xf32> to vector<1x4x1xf32>
    tpu.vector_store %arg5[%c0_392, %c0_393, %c40], %455 {strides = array<i32>} : memref<1x4x64xf32, #tpu.memory_space<vmem>>, vector<1x4x1xf32>,
    %456 = vector.extract_strided_slice %449 {offsets = [0, 2], sizes = [4, 2], strides = [1, 1]} : vector<4x8xf32> to vector<4x2xf32>
    %cst_394 = arith.constant dense<0xFF800000> : vector<4xf32>
    %457 = vector.multi_reduction <maximumf>, %456, %cst_394 [1] : vector<4x2xf32> to vector<4xf32>
    %458 = vector.shape_cast %457 : vector<4xf32> to vector<4x1xf32>
    %c0_395 = arith.constant 0 : index
    %c0_396 = arith.constant 0 : index
    %c41 = arith.constant 41 : index
    %459 = vector.load %arg5[%c0_395, %c0_396, %c41] : memref<1x4x64xf32, #tpu.memory_space<vmem>>, vector<1x4x1xf32>
    %460 = vector.shape_cast %459 : vector<1x4x1xf32> to vector<4x1xf32>
    %461 = vector.shape_cast %458 : vector<4x1xf32> to vector<1x4x1xf32>
    tpu.vector_store %arg5[%c0_395, %c0_396, %c41], %461 {strides = array<i32>} : memref<1x4x64xf32, #tpu.memory_space<vmem>>, vector<1x4x1xf32>,
    %462 = vector.extract_strided_slice %449 {offsets = [0, 4], sizes = [4, 2], strides = [1, 1]} : vector<4x8xf32> to vector<4x2xf32>
    %cst_397 = arith.constant dense<0xFF800000> : vector<4xf32>
    %463 = vector.multi_reduction <maximumf>, %462, %cst_397 [1] : vector<4x2xf32> to vector<4xf32>
    %464 = vector.shape_cast %463 : vector<4xf32> to vector<4x1xf32>
    %c0_398 = arith.constant 0 : index
    %c0_399 = arith.constant 0 : index
    %c42 = arith.constant 42 : index
    %465 = vector.load %arg5[%c0_398, %c0_399, %c42] : memref<1x4x64xf32, #tpu.memory_space<vmem>>, vector<1x4x1xf32>
    %466 = vector.shape_cast %465 : vector<1x4x1xf32> to vector<4x1xf32>
    %467 = vector.shape_cast %464 : vector<4x1xf32> to vector<1x4x1xf32>
    tpu.vector_store %arg5[%c0_398, %c0_399, %c42], %467 {strides = array<i32>} : memref<1x4x64xf32, #tpu.memory_space<vmem>>, vector<1x4x1xf32>,
    %468 = vector.extract_strided_slice %449 {offsets = [0, 6], sizes = [4, 2], strides = [1, 1]} : vector<4x8xf32> to vector<4x2xf32>
    %cst_400 = arith.constant dense<0xFF800000> : vector<4xf32>
    %469 = vector.multi_reduction <maximumf>, %468, %cst_400 [1] : vector<4x2xf32> to vector<4xf32>
    %470 = vector.shape_cast %469 : vector<4xf32> to vector<4x1xf32>
    %c0_401 = arith.constant 0 : index
    %c0_402 = arith.constant 0 : index
    %c43 = arith.constant 43 : index
    %471 = vector.load %arg5[%c0_401, %c0_402, %c43] : memref<1x4x64xf32, #tpu.memory_space<vmem>>, vector<1x4x1xf32>
    %472 = vector.shape_cast %471 : vector<1x4x1xf32> to vector<4x1xf32>
    %473 = vector.shape_cast %470 : vector<4x1xf32> to vector<1x4x1xf32>
    tpu.vector_store %arg5[%c0_401, %c0_402, %c43], %473 {strides = array<i32>} : memref<1x4x64xf32, #tpu.memory_space<vmem>>, vector<1x4x1xf32>,
    %474 = vector.extract_strided_slice %395 {offsets = [0, 12, 0], sizes = [4, 4, 8], strides = [1, 1, 1]} : vector<4x16x8xf32> to vector<4x4x8xf32>
    %cst_403 = arith.constant dense<0xFF800000> : vector<4x8xf32>
    %475 = vector.multi_reduction <maximumf>, %474, %cst_403 [1] : vector<4x4x8xf32> to vector<4x8xf32>
    %476 = vector.extract_strided_slice %475 {offsets = [0, 0], sizes = [4, 2], strides = [1, 1]} : vector<4x8xf32> to vector<4x2xf32>
    %cst_404 = arith.constant dense<0xFF800000> : vector<4xf32>
    %477 = vector.multi_reduction <maximumf>, %476, %cst_404 [1] : vector<4x2xf32> to vector<4xf32>
    %478 = vector.shape_cast %477 : vector<4xf32> to vector<4x1xf32>
    %c0_405 = arith.constant 0 : index
    %c0_406 = arith.constant 0 : index
    %c44 = arith.constant 44 : index
    %479 = vector.load %arg5[%c0_405, %c0_406, %c44] : memref<1x4x64xf32, #tpu.memory_space<vmem>>, vector<1x4x1xf32>
    %480 = vector.shape_cast %479 : vector<1x4x1xf32> to vector<4x1xf32>
    %481 = vector.shape_cast %478 : vector<4x1xf32> to vector<1x4x1xf32>
    tpu.vector_store %arg5[%c0_405, %c0_406, %c44], %481 {strides = array<i32>} : memref<1x4x64xf32, #tpu.memory_space<vmem>>, vector<1x4x1xf32>,
    %482 = vector.extract_strided_slice %475 {offsets = [0, 2], sizes = [4, 2], strides = [1, 1]} : vector<4x8xf32> to vector<4x2xf32>
    %cst_407 = arith.constant dense<0xFF800000> : vector<4xf32>
    %483 = vector.multi_reduction <maximumf>, %482, %cst_407 [1] : vector<4x2xf32> to vector<4xf32>
    %484 = vector.shape_cast %483 : vector<4xf32> to vector<4x1xf32>
    %c0_408 = arith.constant 0 : index
    %c0_409 = arith.constant 0 : index
    %c45 = arith.constant 45 : index
    %485 = vector.load %arg5[%c0_408, %c0_409, %c45] : memref<1x4x64xf32, #tpu.memory_space<vmem>>, vector<1x4x1xf32>
    %486 = vector.shape_cast %485 : vector<1x4x1xf32> to vector<4x1xf32>
    %487 = vector.shape_cast %484 : vector<4x1xf32> to vector<1x4x1xf32>
    tpu.vector_store %arg5[%c0_408, %c0_409, %c45], %487 {strides = array<i32>} : memref<1x4x64xf32, #tpu.memory_space<vmem>>, vector<1x4x1xf32>,
    %488 = vector.extract_strided_slice %475 {offsets = [0, 4], sizes = [4, 2], strides = [1, 1]} : vector<4x8xf32> to vector<4x2xf32>
    %cst_410 = arith.constant dense<0xFF800000> : vector<4xf32>
    %489 = vector.multi_reduction <maximumf>, %488, %cst_410 [1] : vector<4x2xf32> to vector<4xf32>
    %490 = vector.shape_cast %489 : vector<4xf32> to vector<4x1xf32>
    %c0_411 = arith.constant 0 : index
    %c0_412 = arith.constant 0 : index
    %c46 = arith.constant 46 : index
    %491 = vector.load %arg5[%c0_411, %c0_412, %c46] : memref<1x4x64xf32, #tpu.memory_space<vmem>>, vector<1x4x1xf32>
    %492 = vector.shape_cast %491 : vector<1x4x1xf32> to vector<4x1xf32>
    %493 = vector.shape_cast %490 : vector<4x1xf32> to vector<1x4x1xf32>
    tpu.vector_store %arg5[%c0_411, %c0_412, %c46], %493 {strides = array<i32>} : memref<1x4x64xf32, #tpu.memory_space<vmem>>, vector<1x4x1xf32>,
    %494 = vector.extract_strided_slice %475 {offsets = [0, 6], sizes = [4, 2], strides = [1, 1]} : vector<4x8xf32> to vector<4x2xf32>
    %cst_413 = arith.constant dense<0xFF800000> : vector<4xf32>
    %495 = vector.multi_reduction <maximumf>, %494, %cst_413 [1] : vector<4x2xf32> to vector<4xf32>
    %496 = vector.shape_cast %495 : vector<4xf32> to vector<4x1xf32>
    %c0_414 = arith.constant 0 : index
    %c0_415 = arith.constant 0 : index
    %c47 = arith.constant 47 : index
    %497 = vector.load %arg5[%c0_414, %c0_415, %c47] : memref<1x4x64xf32, #tpu.memory_space<vmem>>, vector<1x4x1xf32>
    %498 = vector.shape_cast %497 : vector<1x4x1xf32> to vector<4x1xf32>
    %499 = vector.shape_cast %496 : vector<4x1xf32> to vector<1x4x1xf32>
    tpu.vector_store %arg5[%c0_414, %c0_415, %c47], %499 {strides = array<i32>} : memref<1x4x64xf32, #tpu.memory_space<vmem>>, vector<1x4x1xf32>,
    %c0_416 = arith.constant 0 : index
    %c0_417 = arith.constant 0 : index
    %c12_418 = arith.constant 12 : index
    %c0_419 = arith.constant 0 : index
    %c0_420 = arith.constant 0 : index
    %500 = vector.load %arg2[%c0_416, %c0_417, %c12_418, %c0_419, %c0_420] : memref<1x4x16x16x8xf32, #tpu.memory_space<vmem>>, vector<1x4x1x16x8xf32>
    %501 = vector.shape_cast %500 : vector<1x4x1x16x8xf32> to vector<4x16x8xf32>
    %c0_421 = arith.constant 0 : index
    %c0_422 = arith.constant 0 : index
    %c13_423 = arith.constant 13 : index
    %c0_424 = arith.constant 0 : index
    %c0_425 = arith.constant 0 : index
    %502 = vector.load %arg2[%c0_421, %c0_422, %c13_423, %c0_424, %c0_425] : memref<1x4x16x16x8xf32, #tpu.memory_space<vmem>>, vector<1x4x1x16x8xf32>
    %503 = vector.shape_cast %502 : vector<1x4x1x16x8xf32> to vector<4x16x8xf32>
    %504 = arith.maximumf %501, %503 : vector<4x16x8xf32>
    %c0_426 = arith.constant 0 : index
    %c0_427 = arith.constant 0 : index
    %c14_428 = arith.constant 14 : index
    %c0_429 = arith.constant 0 : index
    %c0_430 = arith.constant 0 : index
    %505 = vector.load %arg2[%c0_426, %c0_427, %c14_428, %c0_429, %c0_430] : memref<1x4x16x16x8xf32, #tpu.memory_space<vmem>>, vector<1x4x1x16x8xf32>
    %506 = vector.shape_cast %505 : vector<1x4x1x16x8xf32> to vector<4x16x8xf32>
    %507 = arith.maximumf %504, %506 : vector<4x16x8xf32>
    %c0_431 = arith.constant 0 : index
    %c0_432 = arith.constant 0 : index
    %c15_433 = arith.constant 15 : index
    %c0_434 = arith.constant 0 : index
    %c0_435 = arith.constant 0 : index
    %508 = vector.load %arg2[%c0_431, %c0_432, %c15_433, %c0_434, %c0_435] : memref<1x4x16x16x8xf32, #tpu.memory_space<vmem>>, vector<1x4x1x16x8xf32>
    %509 = vector.shape_cast %508 : vector<1x4x1x16x8xf32> to vector<4x16x8xf32>
    %510 = arith.maximumf %507, %509 : vector<4x16x8xf32>
    %511 = vector.extract_strided_slice %510 {offsets = [0, 0, 0], sizes = [4, 4, 8], strides = [1, 1, 1]} : vector<4x16x8xf32> to vector<4x4x8xf32>
    %cst_436 = arith.constant dense<0xFF800000> : vector<4x8xf32>
    %512 = vector.multi_reduction <maximumf>, %511, %cst_436 [1] : vector<4x4x8xf32> to vector<4x8xf32>
    %513 = vector.extract_strided_slice %512 {offsets = [0, 0], sizes = [4, 2], strides = [1, 1]} : vector<4x8xf32> to vector<4x2xf32>
    %cst_437 = arith.constant dense<0xFF800000> : vector<4xf32>
    %514 = vector.multi_reduction <maximumf>, %513, %cst_437 [1] : vector<4x2xf32> to vector<4xf32>
    %515 = vector.shape_cast %514 : vector<4xf32> to vector<4x1xf32>
    %c0_438 = arith.constant 0 : index
    %c0_439 = arith.constant 0 : index
    %c48 = arith.constant 48 : index
    %516 = vector.load %arg5[%c0_438, %c0_439, %c48] : memref<1x4x64xf32, #tpu.memory_space<vmem>>, vector<1x4x1xf32>
    %517 = vector.shape_cast %516 : vector<1x4x1xf32> to vector<4x1xf32>
    %518 = vector.shape_cast %515 : vector<4x1xf32> to vector<1x4x1xf32>
    tpu.vector_store %arg5[%c0_438, %c0_439, %c48], %518 {strides = array<i32>} : memref<1x4x64xf32, #tpu.memory_space<vmem>>, vector<1x4x1xf32>,
    %519 = vector.extract_strided_slice %512 {offsets = [0, 2], sizes = [4, 2], strides = [1, 1]} : vector<4x8xf32> to vector<4x2xf32>
    %cst_440 = arith.constant dense<0xFF800000> : vector<4xf32>
    %520 = vector.multi_reduction <maximumf>, %519, %cst_440 [1] : vector<4x2xf32> to vector<4xf32>
    %521 = vector.shape_cast %520 : vector<4xf32> to vector<4x1xf32>
    %c0_441 = arith.constant 0 : index
    %c0_442 = arith.constant 0 : index
    %c49 = arith.constant 49 : index
    %522 = vector.load %arg5[%c0_441, %c0_442, %c49] : memref<1x4x64xf32, #tpu.memory_space<vmem>>, vector<1x4x1xf32>
    %523 = vector.shape_cast %522 : vector<1x4x1xf32> to vector<4x1xf32>
    %524 = vector.shape_cast %521 : vector<4x1xf32> to vector<1x4x1xf32>
    tpu.vector_store %arg5[%c0_441, %c0_442, %c49], %524 {strides = array<i32>} : memref<1x4x64xf32, #tpu.memory_space<vmem>>, vector<1x4x1xf32>,
    %525 = vector.extract_strided_slice %512 {offsets = [0, 4], sizes = [4, 2], strides = [1, 1]} : vector<4x8xf32> to vector<4x2xf32>
    %cst_443 = arith.constant dense<0xFF800000> : vector<4xf32>
    %526 = vector.multi_reduction <maximumf>, %525, %cst_443 [1] : vector<4x2xf32> to vector<4xf32>
    %527 = vector.shape_cast %526 : vector<4xf32> to vector<4x1xf32>
    %c0_444 = arith.constant 0 : index
    %c0_445 = arith.constant 0 : index
    %c50 = arith.constant 50 : index
    %528 = vector.load %arg5[%c0_444, %c0_445, %c50] : memref<1x4x64xf32, #tpu.memory_space<vmem>>, vector<1x4x1xf32>
    %529 = vector.shape_cast %528 : vector<1x4x1xf32> to vector<4x1xf32>
    %530 = vector.shape_cast %527 : vector<4x1xf32> to vector<1x4x1xf32>
    tpu.vector_store %arg5[%c0_444, %c0_445, %c50], %530 {strides = array<i32>} : memref<1x4x64xf32, #tpu.memory_space<vmem>>, vector<1x4x1xf32>,
    %531 = vector.extract_strided_slice %512 {offsets = [0, 6], sizes = [4, 2], strides = [1, 1]} : vector<4x8xf32> to vector<4x2xf32>
    %cst_446 = arith.constant dense<0xFF800000> : vector<4xf32>
    %532 = vector.multi_reduction <maximumf>, %531, %cst_446 [1] : vector<4x2xf32> to vector<4xf32>
    %533 = vector.shape_cast %532 : vector<4xf32> to vector<4x1xf32>
    %c0_447 = arith.constant 0 : index
    %c0_448 = arith.constant 0 : index
    %c51 = arith.constant 51 : index
    %534 = vector.load %arg5[%c0_447, %c0_448, %c51] : memref<1x4x64xf32, #tpu.memory_space<vmem>>, vector<1x4x1xf32>
    %535 = vector.shape_cast %534 : vector<1x4x1xf32> to vector<4x1xf32>
    %536 = vector.shape_cast %533 : vector<4x1xf32> to vector<1x4x1xf32>
    tpu.vector_store %arg5[%c0_447, %c0_448, %c51], %536 {strides = array<i32>} : memref<1x4x64xf32, #tpu.memory_space<vmem>>, vector<1x4x1xf32>,
    %537 = vector.extract_strided_slice %510 {offsets = [0, 4, 0], sizes = [4, 4, 8], strides = [1, 1, 1]} : vector<4x16x8xf32> to vector<4x4x8xf32>
    %cst_449 = arith.constant dense<0xFF800000> : vector<4x8xf32>
    %538 = vector.multi_reduction <maximumf>, %537, %cst_449 [1] : vector<4x4x8xf32> to vector<4x8xf32>
    %539 = vector.extract_strided_slice %538 {offsets = [0, 0], sizes = [4, 2], strides = [1, 1]} : vector<4x8xf32> to vector<4x2xf32>
    %cst_450 = arith.constant dense<0xFF800000> : vector<4xf32>
    %540 = vector.multi_reduction <maximumf>, %539, %cst_450 [1] : vector<4x2xf32> to vector<4xf32>
    %541 = vector.shape_cast %540 : vector<4xf32> to vector<4x1xf32>
    %c0_451 = arith.constant 0 : index
    %c0_452 = arith.constant 0 : index
    %c52 = arith.constant 52 : index
    %542 = vector.load %arg5[%c0_451, %c0_452, %c52] : memref<1x4x64xf32, #tpu.memory_space<vmem>>, vector<1x4x1xf32>
    %543 = vector.shape_cast %542 : vector<1x4x1xf32> to vector<4x1xf32>
    %544 = vector.shape_cast %541 : vector<4x1xf32> to vector<1x4x1xf32>
    tpu.vector_store %arg5[%c0_451, %c0_452, %c52], %544 {strides = array<i32>} : memref<1x4x64xf32, #tpu.memory_space<vmem>>, vector<1x4x1xf32>,
    %545 = vector.extract_strided_slice %538 {offsets = [0, 2], sizes = [4, 2], strides = [1, 1]} : vector<4x8xf32> to vector<4x2xf32>
    %cst_453 = arith.constant dense<0xFF800000> : vector<4xf32>
    %546 = vector.multi_reduction <maximumf>, %545, %cst_453 [1] : vector<4x2xf32> to vector<4xf32>
    %547 = vector.shape_cast %546 : vector<4xf32> to vector<4x1xf32>
    %c0_454 = arith.constant 0 : index
    %c0_455 = arith.constant 0 : index
    %c53 = arith.constant 53 : index
    %548 = vector.load %arg5[%c0_454, %c0_455, %c53] : memref<1x4x64xf32, #tpu.memory_space<vmem>>, vector<1x4x1xf32>
    %549 = vector.shape_cast %548 : vector<1x4x1xf32> to vector<4x1xf32>
    %550 = vector.shape_cast %547 : vector<4x1xf32> to vector<1x4x1xf32>
    tpu.vector_store %arg5[%c0_454, %c0_455, %c53], %550 {strides = array<i32>} : memref<1x4x64xf32, #tpu.memory_space<vmem>>, vector<1x4x1xf32>,
    %551 = vector.extract_strided_slice %538 {offsets = [0, 4], sizes = [4, 2], strides = [1, 1]} : vector<4x8xf32> to vector<4x2xf32>
    %cst_456 = arith.constant dense<0xFF800000> : vector<4xf32>
    %552 = vector.multi_reduction <maximumf>, %551, %cst_456 [1] : vector<4x2xf32> to vector<4xf32>
    %553 = vector.shape_cast %552 : vector<4xf32> to vector<4x1xf32>
    %c0_457 = arith.constant 0 : index
    %c0_458 = arith.constant 0 : index
    %c54 = arith.constant 54 : index
    %554 = vector.load %arg5[%c0_457, %c0_458, %c54] : memref<1x4x64xf32, #tpu.memory_space<vmem>>, vector<1x4x1xf32>
    %555 = vector.shape_cast %554 : vector<1x4x1xf32> to vector<4x1xf32>
    %556 = vector.shape_cast %553 : vector<4x1xf32> to vector<1x4x1xf32>
    tpu.vector_store %arg5[%c0_457, %c0_458, %c54], %556 {strides = array<i32>} : memref<1x4x64xf32, #tpu.memory_space<vmem>>, vector<1x4x1xf32>,
    %557 = vector.extract_strided_slice %538 {offsets = [0, 6], sizes = [4, 2], strides = [1, 1]} : vector<4x8xf32> to vector<4x2xf32>
    %cst_459 = arith.constant dense<0xFF800000> : vector<4xf32>
    %558 = vector.multi_reduction <maximumf>, %557, %cst_459 [1] : vector<4x2xf32> to vector<4xf32>
    %559 = vector.shape_cast %558 : vector<4xf32> to vector<4x1xf32>
    %c0_460 = arith.constant 0 : index
    %c0_461 = arith.constant 0 : index
    %c55 = arith.constant 55 : index
    %560 = vector.load %arg5[%c0_460, %c0_461, %c55] : memref<1x4x64xf32, #tpu.memory_space<vmem>>, vector<1x4x1xf32>
    %561 = vector.shape_cast %560 : vector<1x4x1xf32> to vector<4x1xf32>
    %562 = vector.shape_cast %559 : vector<4x1xf32> to vector<1x4x1xf32>
    tpu.vector_store %arg5[%c0_460, %c0_461, %c55], %562 {strides = array<i32>} : memref<1x4x64xf32, #tpu.memory_space<vmem>>, vector<1x4x1xf32>,
    %563 = vector.extract_strided_slice %510 {offsets = [0, 8, 0], sizes = [4, 4, 8], strides = [1, 1, 1]} : vector<4x16x8xf32> to vector<4x4x8xf32>
    %cst_462 = arith.constant dense<0xFF800000> : vector<4x8xf32>
    %564 = vector.multi_reduction <maximumf>, %563, %cst_462 [1] : vector<4x4x8xf32> to vector<4x8xf32>
    %565 = vector.extract_strided_slice %564 {offsets = [0, 0], sizes = [4, 2], strides = [1, 1]} : vector<4x8xf32> to vector<4x2xf32>
    %cst_463 = arith.constant dense<0xFF800000> : vector<4xf32>
    %566 = vector.multi_reduction <maximumf>, %565, %cst_463 [1] : vector<4x2xf32> to vector<4xf32>
    %567 = vector.shape_cast %566 : vector<4xf32> to vector<4x1xf32>
    %c0_464 = arith.constant 0 : index
    %c0_465 = arith.constant 0 : index
    %c56 = arith.constant 56 : index
    %568 = vector.load %arg5[%c0_464, %c0_465, %c56] : memref<1x4x64xf32, #tpu.memory_space<vmem>>, vector<1x4x1xf32>
    %569 = vector.shape_cast %568 : vector<1x4x1xf32> to vector<4x1xf32>
    %570 = vector.shape_cast %567 : vector<4x1xf32> to vector<1x4x1xf32>
    tpu.vector_store %arg5[%c0_464, %c0_465, %c56], %570 {strides = array<i32>} : memref<1x4x64xf32, #tpu.memory_space<vmem>>, vector<1x4x1xf32>,
    %571 = vector.extract_strided_slice %564 {offsets = [0, 2], sizes = [4, 2], strides = [1, 1]} : vector<4x8xf32> to vector<4x2xf32>
    %cst_466 = arith.constant dense<0xFF800000> : vector<4xf32>
    %572 = vector.multi_reduction <maximumf>, %571, %cst_466 [1] : vector<4x2xf32> to vector<4xf32>
    %573 = vector.shape_cast %572 : vector<4xf32> to vector<4x1xf32>
    %c0_467 = arith.constant 0 : index
    %c0_468 = arith.constant 0 : index
    %c57 = arith.constant 57 : index
    %574 = vector.load %arg5[%c0_467, %c0_468, %c57] : memref<1x4x64xf32, #tpu.memory_space<vmem>>, vector<1x4x1xf32>
    %575 = vector.shape_cast %574 : vector<1x4x1xf32> to vector<4x1xf32>
    %576 = vector.shape_cast %573 : vector<4x1xf32> to vector<1x4x1xf32>
    tpu.vector_store %arg5[%c0_467, %c0_468, %c57], %576 {strides = array<i32>} : memref<1x4x64xf32, #tpu.memory_space<vmem>>, vector<1x4x1xf32>,
    %577 = vector.extract_strided_slice %564 {offsets = [0, 4], sizes = [4, 2], strides = [1, 1]} : vector<4x8xf32> to vector<4x2xf32>
    %cst_469 = arith.constant dense<0xFF800000> : vector<4xf32>
    %578 = vector.multi_reduction <maximumf>, %577, %cst_469 [1] : vector<4x2xf32> to vector<4xf32>
    %579 = vector.shape_cast %578 : vector<4xf32> to vector<4x1xf32>
    %c0_470 = arith.constant 0 : index
    %c0_471 = arith.constant 0 : index
    %c58 = arith.constant 58 : index
    %580 = vector.load %arg5[%c0_470, %c0_471, %c58] : memref<1x4x64xf32, #tpu.memory_space<vmem>>, vector<1x4x1xf32>
    %581 = vector.shape_cast %580 : vector<1x4x1xf32> to vector<4x1xf32>
    %582 = vector.shape_cast %579 : vector<4x1xf32> to vector<1x4x1xf32>
    tpu.vector_store %arg5[%c0_470, %c0_471, %c58], %582 {strides = array<i32>} : memref<1x4x64xf32, #tpu.memory_space<vmem>>, vector<1x4x1xf32>,
    %583 = vector.extract_strided_slice %564 {offsets = [0, 6], sizes = [4, 2], strides = [1, 1]} : vector<4x8xf32> to vector<4x2xf32>
    %cst_472 = arith.constant dense<0xFF800000> : vector<4xf32>
    %584 = vector.multi_reduction <maximumf>, %583, %cst_472 [1] : vector<4x2xf32> to vector<4xf32>
    %585 = vector.shape_cast %584 : vector<4xf32> to vector<4x1xf32>
    %c0_473 = arith.constant 0 : index
    %c0_474 = arith.constant 0 : index
    %c59 = arith.constant 59 : index
    %586 = vector.load %arg5[%c0_473, %c0_474, %c59] : memref<1x4x64xf32, #tpu.memory_space<vmem>>, vector<1x4x1xf32>
    %587 = vector.shape_cast %586 : vector<1x4x1xf32> to vector<4x1xf32>
    %588 = vector.shape_cast %585 : vector<4x1xf32> to vector<1x4x1xf32>
    tpu.vector_store %arg5[%c0_473, %c0_474, %c59], %588 {strides = array<i32>} : memref<1x4x64xf32, #tpu.memory_space<vmem>>, vector<1x4x1xf32>,
    %589 = vector.extract_strided_slice %510 {offsets = [0, 12, 0], sizes = [4, 4, 8], strides = [1, 1, 1]} : vector<4x16x8xf32> to vector<4x4x8xf32>
    %cst_475 = arith.constant dense<0xFF800000> : vector<4x8xf32>
    %590 = vector.multi_reduction <maximumf>, %589, %cst_475 [1] : vector<4x4x8xf32> to vector<4x8xf32>
    %591 = vector.extract_strided_slice %590 {offsets = [0, 0], sizes = [4, 2], strides = [1, 1]} : vector<4x8xf32> to vector<4x2xf32>
    %cst_476 = arith.constant dense<0xFF800000> : vector<4xf32>
    %592 = vector.multi_reduction <maximumf>, %591, %cst_476 [1] : vector<4x2xf32> to vector<4xf32>
    %593 = vector.shape_cast %592 : vector<4xf32> to vector<4x1xf32>
    %c0_477 = arith.constant 0 : index
    %c0_478 = arith.constant 0 : index
    %c60 = arith.constant 60 : index
    %594 = vector.load %arg5[%c0_477, %c0_478, %c60] : memref<1x4x64xf32, #tpu.memory_space<vmem>>, vector<1x4x1xf32>
    %595 = vector.shape_cast %594 : vector<1x4x1xf32> to vector<4x1xf32>
    %596 = vector.shape_cast %593 : vector<4x1xf32> to vector<1x4x1xf32>
    tpu.vector_store %arg5[%c0_477, %c0_478, %c60], %596 {strides = array<i32>} : memref<1x4x64xf32, #tpu.memory_space<vmem>>, vector<1x4x1xf32>,
    %597 = vector.extract_strided_slice %590 {offsets = [0, 2], sizes = [4, 2], strides = [1, 1]} : vector<4x8xf32> to vector<4x2xf32>
    %cst_479 = arith.constant dense<0xFF800000> : vector<4xf32>
    %598 = vector.multi_reduction <maximumf>, %597, %cst_479 [1] : vector<4x2xf32> to vector<4xf32>
    %599 = vector.shape_cast %598 : vector<4xf32> to vector<4x1xf32>
    %c0_480 = arith.constant 0 : index
    %c0_481 = arith.constant 0 : index
    %c61 = arith.constant 61 : index
    %600 = vector.load %arg5[%c0_480, %c0_481, %c61] : memref<1x4x64xf32, #tpu.memory_space<vmem>>, vector<1x4x1xf32>
    %601 = vector.shape_cast %600 : vector<1x4x1xf32> to vector<4x1xf32>
    %602 = vector.shape_cast %599 : vector<4x1xf32> to vector<1x4x1xf32>
    tpu.vector_store %arg5[%c0_480, %c0_481, %c61], %602 {strides = array<i32>} : memref<1x4x64xf32, #tpu.memory_space<vmem>>, vector<1x4x1xf32>,
    %603 = vector.extract_strided_slice %590 {offsets = [0, 4], sizes = [4, 2], strides = [1, 1]} : vector<4x8xf32> to vector<4x2xf32>
    %cst_482 = arith.constant dense<0xFF800000> : vector<4xf32>
    %604 = vector.multi_reduction <maximumf>, %603, %cst_482 [1] : vector<4x2xf32> to vector<4xf32>
    %605 = vector.shape_cast %604 : vector<4xf32> to vector<4x1xf32>
    %c0_483 = arith.constant 0 : index
    %c0_484 = arith.constant 0 : index
    %c62 = arith.constant 62 : index
    %606 = vector.load %arg5[%c0_483, %c0_484, %c62] : memref<1x4x64xf32, #tpu.memory_space<vmem>>, vector<1x4x1xf32>
    %607 = vector.shape_cast %606 : vector<1x4x1xf32> to vector<4x1xf32>
    %608 = vector.shape_cast %605 : vector<4x1xf32> to vector<1x4x1xf32>
    tpu.vector_store %arg5[%c0_483, %c0_484, %c62], %608 {strides = array<i32>} : memref<1x4x64xf32, #tpu.memory_space<vmem>>, vector<1x4x1xf32>,
    %609 = vector.extract_strided_slice %590 {offsets = [0, 6], sizes = [4, 2], strides = [1, 1]} : vector<4x8xf32> to vector<4x2xf32>
    %cst_485 = arith.constant dense<0xFF800000> : vector<4xf32>
    %610 = vector.multi_reduction <maximumf>, %609, %cst_485 [1] : vector<4x2xf32> to vector<4xf32>
    %611 = vector.shape_cast %610 : vector<4xf32> to vector<4x1xf32>
    %c0_486 = arith.constant 0 : index
    %c0_487 = arith.constant 0 : index
    %c63 = arith.constant 63 : index
    %612 = vector.load %arg5[%c0_486, %c0_487, %c63] : memref<1x4x64xf32, #tpu.memory_space<vmem>>, vector<1x4x1xf32>
    %613 = vector.shape_cast %612 : vector<1x4x1xf32> to vector<4x1xf32>
    %614 = vector.shape_cast %611 : vector<4x1xf32> to vector<1x4x1xf32>
    tpu.vector_store %arg5[%c0_486, %c0_487, %c63], %614 {strides = array<i32>} : memref<1x4x64xf32, #tpu.memory_space<vmem>>, vector<1x4x1xf32>,
    return
  }
  func.func @transform_0(%arg0: i32, %arg1: i32) -> (i32, i32, i32, i32, i32) {
    %c0_i32 = arith.constant 0 : i32
    %c0_i32_0 = arith.constant 0 : i32
    %c0_i32_1 = arith.constant 0 : i32
    %c0_i32_2 = arith.constant 0 : i32
    return %arg0, %arg1, %c0_i32, %c0_i32_0, %c0_i32_1 : i32, i32, i32, i32, i32
  }
  func.func @transform_1(%arg0: i32, %arg1: i32) -> (i32, i32, i32) {
    %c0_i32 = arith.constant 0 : i32
    %c0_i32_0 = arith.constant 0 : i32
    return %arg0, %arg1, %c0_i32 : i32, i32, i32
  }
  func.func @transform_2(%arg0: i32, %arg1: i32) -> (i32, i32, i32) {
    %c0_i32 = arith.constant 0 : i32
    %c0_i32_0 = arith.constant 0 : i32
    return %arg0, %arg1, %c0_i32 : i32, i32, i32
  }
  func.func @transform_3(%arg0: i32, %arg1: i32) -> (i32, i32, i32) {
    %c0_i32 = arith.constant 0 : i32
    %c0_i32_0 = arith.constant 0 : i32
    return %arg0, %arg1, %c0_i32 : i32, i32, i32
  }
}

</mosaic_0001>

<bundles_post_ra>
// kernel: spp3d_forward.1
= control target key start
LH: loop header
LB: loop body
LE: loop exit
PB: predicated region body
PF: predicated region fallthrough
CT: control target
= control target key end

     0   :  { %s2707_s12 = smov 0   ;;  %s2709_s13 = smov 0   ;;  %s3840_s0 = inlined_call_operand.vmem [shape: f32[2,4,16,16,8], index: 0, kind: input, shape index: {}]   ;;  %s3841_s1 = inlined_call_operand.vmem [shape: f32[2,4,1], index: 1, kind: output, shape index: {0}]   ;;  %s3842_s2 = inlined_call_operand.vmem [shape: f32[2,4,8], index: 2, kind: output, shape index: {1}]   ;;  %s3843_s3 = inlined_call_operand.vmem [shape: f32[2,4,64], index: 3, kind: output, shape index: {2}]  }
   0x1   :  { %s2711_s14 = smov 0  }
   0x2 LB: > { %s26_s15 = sadd.s32 1, %s2681_s13  ;;  %p2270_p0 = scmp.ge.s32.totalorder %s2685_s14, 1  ;;  %s2685_s14 = sphi %s2711_s14, %s14_s14   ;;  %s2681_s13 = sphi %s2709_s13, %s3880_s13   ;;  %s2677_s12 = sphi %s2707_s12, %s3879_s12  }
   0x3   : > { %p28_p1 = scmp.ge.s32.totalorder %s26_s15, 2  ;;  %p168_p2 = scmp.lt.s32.totalorder %s2685_s14, 3 }
   0x5   : > { %s3882_s15 = smov (%p28_p1, %s26_s15), 0  ;;  %p169_p3 = pnand %p2270_p0, %p168_p2 }
   0x7   : > { %172 = sbr.rel (%p169_p3) target bundleno = 443 (0x1bb), region = 24 }
   0xe   : > { %p214_p4 = scmp.lt.s32.totalorder %s2677_s12, 1  ;;  %vm556_vm0 = vcmask 60416   ;;  %vm1099_vm1 = vcmask 64516   ;;  %vm549_vm2 = vcmask 1041409   ;;  %vm551_vm3 = vcmask 1042434  }
   0xf   : > { %vm553_vm4 = vcmask 1043459   ;;  %vm1084_vm5 = vcmask 27664   ;;  %vm1079_vm6 = vcmask 11264   ;;  %vm1094_vm7 = vcmask 60464  }
  0x10   : > { %s3884_s12 = smov (!%p214_p4, %s2677_s12), 1  ;;  %vm1089_vm8 = vcmask 44064   ;;  %vm508_vm9 = vcmask 64512   ;;  %vm723_vm10 = vcmask 60448   ;;  %vm718_vm11 = vcmask 27648  }
  0x11   : > { %s2638_s16 = sshll.u32 %s3884_s12, 10  ;;  %s3526_s20 = sshll.u32 %s3884_s12, 2  ;;  %vm560_vm12 = vcmask 3072   ;;  %vm727_vm13 = vcmask 11272   ;;  %vm768_vm14 = vcmask 19472   ;;  %vm773_vm15 = vcmask 27672  }
  0x12   : > { %s2731_s19 = scalar_lea.vmem %s3840_s0, %s2638_s16  ;;  %s3546_s23 = scalar_lea.vmem %s3843_s3, %s3526_s20 }
  0x13   : > { %v987_v0 = vld [vmem:[%s2731_s19] sm:$0xff]  ;;  %v2516_v4 = vld [vmem:[%s2731_s19 + $0x10] sm:$0xff]  ;;  %v2750_v24 = vld [vmem:[%s2731_s19 + $0x8] sm:$0xff]  ;;  %s3587_s26 = scalar_lea.vmem %s3842_s2, %s3526_s20  ;;  %s230_s29 = scalar_lea.vmem %s3841_s1, %s3526_s20 }
  0x14   : > { %v989_v1 = vld [vmem:[%s2731_s19 + $0x100] sm:$0xff]  ;;  %v2518_v5 = vld [vmem:[%s2731_s19 + $0x110] sm:$0xff]  ;;  %v1003_v8 = vmax.f32 %v987_v0, %v2516_v4  ;;  %v2757_v27 = vld [vmem:[%s2731_s19 + $0x18] sm:$0xff] }
  0x15   : > { %v991_v2 = vld [vmem:[%s2731_s19 + $0x200] sm:$0xff]  ;;  %v2520_v6 = vld [vmem:[%s2731_s19 + $0x210] sm:$0xff]  ;;  %v1005_v9 = vmax.f32 %v989_v1, %v2518_v5  ;;  %v1004_v30 = vmax.f32 %v2750_v24, %v2757_v27 }
  0x16   : > { %v993_v3 = vld [vmem:[%s2731_s19 + $0x300] sm:$0xff]  ;;  %v2522_v7 = vld [vmem:[%s2731_s19 + $0x310] sm:$0xff]  ;;  %v1007_v11 = vmax.f32 %v991_v2, %v2520_v6 }
  0x17   : > { %v2524_v10 = vld [vmem:[%s2731_s19 + $0x20] sm:$0xff]  ;;  %v1009_v12 = vmax.f32 %v993_v3, %v2522_v7  ;;  %v2532_v18 = vld [vmem:[%s2731_s19 + $0x30] sm:$0xff]  ;;  %v990_v7 = vld [vmem:[%s2731_s19 + $0x108] sm:$0xff] }
  0x18   : > { %v2526_v13 = vld [vmem:[%s2731_s19 + $0x120] sm:$0xff]  ;;  %v1019_v16 = vmax.f32 %v1003_v8, %v2524_v10  ;;  %v2534_v19 = vld [vmem:[%s2731_s19 + $0x130] sm:$0xff] }
  0x19   : > { %v2528_v14 = vld [vmem:[%s2731_s19 + $0x220] sm:$0xff]  ;;  %v1021_v17 = vmax.f32 %v1005_v9, %v2526_v13  ;;  %v2536_v20 = vld [vmem:[%s2731_s19 + $0x230] sm:$0xff]  ;;  %v2519_v13 = vld [vmem:[%s2731_s19 + $0x118] sm:$0xff] }
  0x1a   : > { %v2530_v15 = vld [vmem:[%s2731_s19 + $0x320] sm:$0xff]  ;;  %v1023_v21 = vmax.f32 %v1007_v11, %v2528_v14  ;;  %v2538_v23 = vld [vmem:[%s2731_s19 + $0x330] sm:$0xff]  ;;  %v2752_v25 = vmax.f32 %v1019_v16, %v2532_v18  ;;  %v994_v18 = vld [vmem:[%s2731_s19 + $0x308] sm:$0xff] }
  0x1b   : > { %v1025_v22 = vmax.f32 %v1009_v12, %v2530_v15  ;;  %v2754_v26 = vmax.f32 %v1021_v17, %v2534_v19  ;;  %v992_v12 = vld [vmem:[%s2731_s19 + $0x208] sm:$0xff]  ;;  %v2521_v19 = vld [vmem:[%s2731_s19 + $0x218] sm:$0xff] }
  0x1c   : > { %v2759_v28 = vmax.f32 %v1023_v21, %v2536_v20  ;;  %v1043_v31 = vsel %vm556_vm0, %v2752_v25, -inf  ;;  %v1100_v33 = vsel %vm1099_vm1, %v2752_v25, -inf  ;;  %v2523_v20 = vld [vmem:[%s2731_s19 + $0x318] sm:$0xff] }
  0x1d   : > { %v2761_v29 = vmax.f32 %v1025_v22, %v2538_v23  ;;  %v1050_v32 = vsel %vm556_vm0, %v2754_v26, -inf  ;;  %v1107_v34 = vsel %vm1099_vm1, %v2754_v26, -inf  ;;  %v1044_v35 = vrot.slane %v1043_v31, 4 }
  0x1e   : > { %v1051_v36 = vrot.slane %v1050_v32, 4  ;;  %v1057_v37 = vsel %vm556_vm0, %v2759_v28, -inf  ;;  %v1101_v41 = vrot.slane %v1100_v33, 4  ;;  %v1108_v42 = vrot.slane %v1107_v34, 4 }
  0x1f   : > { %v1064_v38 = vsel %vm556_vm0, %v2761_v29, -inf  ;;  %v1058_v39 = vrot.slane %v1057_v37, 4  ;;  %v1045_v43 = vmax.f32 %v1043_v31, %v1044_v35  ;;  %v1114_v45 = vsel %vm1099_vm1, %v2759_v28, -inf }
  0x20   : > { %v1065_v40 = vrot.slane %v1064_v38, 4  ;;  %v1052_v44 = vmax.f32 %v1050_v32, %v1051_v36  ;;  %v1121_v46 = vsel %vm1099_vm1, %v2761_v29, -inf  ;;  %v1102_v49 = vmax.f32 %v1100_v33, %v1101_v41  ;;  %v2525_v32 = vld [vmem:[%s2731_s19 + $0x28] sm:$0xff] }
  0x21   : > { %v1059_v47 = vmax.f32 %v1057_v37, %v1058_v39  ;;  %v1109_v50 = vmax.f32 %v1107_v34, %v1108_v42  ;;  %v1046_v51 = vrot.slane %v1045_v43, 2  ;;  %v1115_v53 = vrot.slane %v1114_v45, 4  ;;  %v2527_v41 = vld [vmem:[%s2731_s19 + $0x128] sm:$0xff] }
  0x22   : > { %v1066_v48 = vmax.f32 %v1064_v38, %v1065_v40  ;;  %v1053_v52 = vrot.slane %v1052_v44, 2  ;;  %v1122_v54 = vrot.slane %v1121_v46, 4  ;;  %v1103_v57 = vrot.slane %v1102_v49, 2  ;;  %v2529_v42 = vld [vmem:[%s2731_s19 + $0x228] sm:$0xff] }
  0x23   : > { %v1060_v55 = vrot.slane %v1059_v47, 2  ;;  %v1110_v58 = vrot.slane %v1109_v50, 2  ;;  %v1047_v59 = vmax.f32 %v1045_v43, %v1046_v51  ;;  %v1116_v61 = vmax.f32 %v1114_v45, %v1115_v53 }
  0x24   : > { %v1067_v56 = vrot.slane %v1066_v48, 2  ;;  %v1054_v60 = vmax.f32 %v1052_v44, %v1053_v52  ;;  %v1123_v62 = vmax.f32 %v1121_v46, %v1122_v54  ;;  %v1104_v1 = vmax.f32 %v1102_v49, %v1103_v57  ;;  %v2531_v46 = vld [vmem:[%s2731_s19 + $0x328] sm:$0xff]  ;;  %v2802_v49 = vld [vmem:[%s2731_s19 + $0x40] sm:$0xff] }
  0x25   : > { %v1061_v63 = vmax.f32 %v1059_v47, %v1060_v55  ;;  %v1111_v2 = vmax.f32 %v1109_v50, %v1110_v58  ;;  %v1048_v3 = vrot.slane %v1047_v59, 1  ;;  %v1117_v5 = vrot.slane %v1116_v61, 2  ;;  %v2537_v55 = vld [vmem:[%s2731_s19 + $0x238] sm:$0xff] }
  0x26   : > { %v1068_v0 = vmax.f32 %v1066_v48, %v1067_v56  ;;  %v1055_v4 = vrot.slane %v1054_v60, 1  ;;  %v1124_v6 = vrot.slane %v1123_v62, 2  ;;  %v1105_v10 = vrot.slane %v1104_v1, 1  ;;  %v2533_v48 = vld [vmem:[%s2731_s19 + $0x38] sm:$0xff] }
  0x27   : > { %v1062_v8 = vrot.slane %v1061_v63, 1  ;;  %v1112_v11 = vrot.slane %v1111_v2, 1  ;;  %v1049_v14 = vmax.f32 %v1047_v59, %v1048_v3  ;;  %v1118_v16 = vmax.f32 %v1116_v61, %v1117_v5  ;;  %v2539_v56 = vld [vmem:[%s2731_s19 + $0x338] sm:$0xff]  ;;  %v2826_v61 = vld [vmem:[%s2731_s19 + $0x240] sm:$0xff] }
  0x28   : > { %v1069_v9 = vrot.slane %v1068_v0, 1  ;;  %v1056_v15 = vmax.f32 %v1054_v60, %v1055_v4  ;;  %v1125_v17 = vmax.f32 %v1123_v62, %v1124_v6  ;;  %v1106_v23 = vmax.f32 %v1104_v1, %v1105_v10  ;;  %v2823_v60 = vld [vmem:[%s2731_s19 + $0x140] sm:$0xff] }
  0x29   : > { %v1063_v21 = vmax.f32 %v1061_v63, %v1062_v8  ;;  %v1113_v31 = vmax.f32 %v1111_v2, %v1112_v11  ;;  %v1119_v34 = vrot.slane %v1118_v16, 1  ;;  %v1006_v36 = vmax.f32 %v990_v7, %v2519_v13 }
  0x2a   : > { %v1070_v22 = vmax.f32 %v1068_v0, %v1069_v9  ;;  %v1075_v33 = vsel %vm549_vm2, %v1056_v15, %v1049_v14  ;;  %v1126_v35 = vrot.slane %v1125_v17, 1  ;;  %v1008_v39 = vmax.f32 %v992_v12, %v2521_v19 }
  0x2b   : > { %v1076_v37 = vsel %vm551_vm3, %v1063_v21, %v1075_v33  ;;  %v1132_v38 = vsel %vm549_vm2, %v1113_v31, %v1106_v23  ;;  %v1010_v40 = vmax.f32 %v994_v18, %v2523_v20  ;;  %v1120_v44 = vmax.f32 %v1118_v16, %v1119_v34 }
  0x2c   : > { %v1077_v43 = vsel %vm553_vm4, %v1070_v22, %v1076_v37  ;;  %v1127_v45 = vmax.f32 %v1125_v17, %v1126_v35  ;;  %v2798_v47 = vmax.f32 %v1004_v30, %v2525_v32  ;;  %v2809_v24 = vmax.f32 %v1006_v36, %v2527_v41  ;;  %v2535_v30 = vld [vmem:[%s2731_s19 + $0x138] sm:$0xff] }
  0x2d   : > { %v1085_v50 = vsel %vm1084_vm5, %v1077_v43, -inf  ;;  %v1080_v51 = vsel %vm1079_vm6, %v1077_v43, -inf  ;;  %v1095_v52 = vsel %vm1094_vm7, %v1077_v43, -inf  ;;  %v1090_v53 = vsel %vm1089_vm8, %v1077_v43, -inf }
  0x2e   : > { %1086 = vmax.xlane.f32.xlu1 %v1085_v50  ;;  %1081 = vmax.xlane.f32.xlu0 %v1080_v51  ;;  %v1133_v54 = vsel %vm551_vm3, %v1120_v44, %v1132_v38  ;;  %v2811_v27 = vmax.f32 %v1008_v39, %v2529_v42  ;;  %v2817_v58 = vmax.f32 %v1010_v40, %v2531_v46 }
  0x2f   : > { %v1134_v57 = vsel %vm553_vm4, %v1127_v45, %v1133_v54  ;;  %v2820_v59 = vmax.f32 %v2798_v47, %v2533_v48  ;;  %v626_v62 = vmax.f32 %v2752_v25, %v2802_v49  ;;  %v2835_v3 = vmax.f32 %v2809_v24, %v2535_v30  ;;  %v2907_v25 = vld [vmem:[%s2731_s19 + $0x60] sm:$0xff] }
  0x30   : > { %v1140_v63 = vsel %vm1084_vm5, %v1134_v57, -inf  ;;  %v1136_v0 = vsel %vm1079_vm6, %v1134_v57, -inf  ;;  %v1148_v1 = vsel %vm1094_vm7, %v1134_v57, -inf  ;;  %v1144_v2 = vsel %vm1089_vm8, %v1134_v57, -inf }
  0x31   : > { %v2838_v4 = vmax.f32 %v2811_v27, %v2537_v55  ;;  %v2841_v5 = vmax.f32 %v2817_v58, %v2539_v56  ;;  %v1152_v6 = vsel %vm556_vm0, %v2820_v59, -inf  ;;  %v1208_v8 = vsel %vm1099_vm1, %v2820_v59, -inf  ;;  %v2864_v55 = vld [vmem:[%s2731_s19 + $0x340] sm:$0xff] }
  0x32   : > { %1096 = vmax.xlane.f32.xlu1 %v1095_v52  ;;  %1091 = vmax.xlane.f32.xlu0 %v1090_v53  ;;  %v1153_v7 = vrot.slane %v1152_v6, 4  ;;  %v628_v9 = vmax.f32 %v2754_v26, %v2823_v60  ;;  %v630_v10 = vmax.f32 %v2759_v28, %v2826_v61  ;;  %v1159_v11 = vsel %vm556_vm0, %v2835_v3, -inf }
  0x33   : > { %v1166_v12 = vsel %vm556_vm0, %v2838_v4, -inf  ;;  %v1173_v13 = vsel %vm556_vm0, %v2841_v5, -inf  ;;  %v1209_v14 = vrot.slane %v1208_v8, 4  ;;  %v1160_v16 = vrot.slane %v1159_v11, 4 }
  0x34   : > { %v1154_v15 = vmax.f32 %v1152_v6, %v1153_v7  ;;  %v1167_v17 = vrot.slane %v1166_v12, 4  ;;  %v1174_v18 = vrot.slane %v1173_v13, 4  ;;  %v1215_v20 = vsel %vm1099_vm1, %v2835_v3, -inf }
  0x35   : > { %v1210_v19 = vmax.f32 %v1208_v8, %v1209_v14  ;;  %v1222_v21 = vsel %vm1099_vm1, %v2838_v4, -inf  ;;  %v1229_v22 = vsel %vm1099_vm1, %v2841_v5, -inf  ;;  %v1161_v31 = vmax.f32 %v1159_v11, %v1160_v16  ;;  %v2869_v14 = vld [vmem:[%s2731_s19 + $0x50] sm:$0xff] }
  0x36   : > { %1141 = vmax.xlane.f32.xlu1 %v1140_v63  ;;  %1137 = vmax.xlane.f32.xlu0 %v1136_v0  ;;  %v1155_v23 = vrot.slane %v1154_v15, 2  ;;  %v1168_v32 = vmax.f32 %v1166_v12, %v1167_v17  ;;  %v1175_v33 = vmax.f32 %v1173_v13, %v1174_v18  ;;  %v1216_v35 = vrot.slane %v1215_v20, 4 }
  0x37   : > { %v1211_v34 = vrot.slane %v1210_v19, 2  ;;  %v1223_v36 = vrot.slane %v1222_v21, 4  ;;  %v1230_v37 = vrot.slane %v1229_v22, 4  ;;  %v1162_v39 = vrot.slane %v1161_v31, 2 }
  0x38   : > { %v1156_v38 = vmax.f32 %v1154_v15, %v1155_v23  ;;  %v1169_v40 = vrot.slane %v1168_v32, 2  ;;  %v1176_v41 = vrot.slane %v1175_v33, 2  ;;  %v1217_v43 = vmax.f32 %v1215_v20, %v1216_v35  ;;  %v2877_v20 = vld [vmem:[%s2731_s19 + $0x250] sm:$0xff] }
  0x39   : > { %v1212_v42 = vmax.f32 %v1210_v19, %v1211_v34  ;;  %v1224_v44 = vmax.f32 %v1222_v21, %v1223_v36  ;;  %v1231_v45 = vmax.f32 %v1229_v22, %v1230_v37  ;;  %v1163_v48 = vmax.f32 %v1161_v31, %v1162_v39  ;;  %v2874_v19 = vld [vmem:[%s2731_s19 + $0x150] sm:$0xff] }
  0x3a   : > { %1149 = vmax.xlane.f32.xlu1 %v1148_v1  ;;  %1145 = vmax.xlane.f32.xlu0 %v1144_v2  ;;  %v1157_v46 = vrot.slane %v1156_v38, 1  ;;  %v1170_v50 = vmax.f32 %v1168_v32, %v1169_v40  ;;  %v1177_v51 = vmax.f32 %v1175_v33, %v1176_v41  ;;  %v1218_v53 = vrot.slane %v1217_v43, 2  ;;  %v2880_v21 = vld [vmem:[%s2731_s19 + $0x350] sm:$0xff] }
  0x3b   : > { %v1213_v52 = vrot.slane %v1212_v42, 1  ;;  %v1225_v54 = vrot.slane %v1224_v44, 2  ;;  %v1232_v30 = vrot.slane %v1231_v45, 2  ;;  %v1164_v57 = vrot.slane %v1163_v48, 1 }
  0x3c   : > { %v1158_v56 = vmax.f32 %v1156_v38, %v1157_v46  ;;  %v1171_v63 = vrot.slane %v1170_v50, 1  ;;  %v1178_v0 = vrot.slane %v1177_v51, 1  ;;  %v1219_v2 = vmax.f32 %v1217_v43, %v1218_v53  ;;  %v2913_v43 = vld [vmem:[%s2731_s19 + $0x260] sm:$0xff] }
  0x3d   : > { %v1214_v1 = vmax.f32 %v1212_v42, %v1213_v52  ;;  %v1226_v6 = vmax.f32 %v1224_v44, %v1225_v54  ;;  %v1233_v7 = vmax.f32 %v1231_v45, %v1232_v30  ;;  %v1165_v8 = vmax.f32 %v1163_v48, %v1164_v57  ;;  %v2922_v44 = vld [vmem:[%s2731_s19 + $0x360] sm:$0xff]  ;;  %v2938_v52 = vld [vmem:[%s2731_s19 + $0x170] sm:$0xff] }
  0x3e   : > { %v1172_v11 = vmax.f32 %v1170_v50, %v1171_v63  ;;  %v1179_v12 = vmax.f32 %v1177_v51, %v1178_v0  ;;  %v632_v13 = vmax.f32 %v2761_v29, %v2864_v55  ;;  %v1220_v15 = vrot.slane %v1219_v2, 1  ;;  %v2935_v51 = vld [vmem:[%s2731_s19 + $0x70] sm:$0xff]  ;;  %v2953_v0 = vld [vmem:[%s2731_s19 + $0x48] sm:$0xff] }
  0x3f   : > { %v1227_v16 = vrot.slane %v1226_v6, 1  ;;  %v1234_v17 = vrot.slane %v1233_v7, 1  ;;  %v313_v18 = vmax.f32 %v2869_v14, %v2802_v49  ;;  %v1184_v22 = vsel %vm549_vm2, %v1165_v8, %v1158_v56  ;;  %v2947_v57 = vld [vmem:[%s2731_s19 + $0x270] sm:$0xff]  ;;  %v2964_v8 = vld [vmem:[%s2731_s19 + $0x248] sm:$0xff] }
  0x40   : > { %v315_v29 = vmax.f32 %v2874_v19, %v2823_v60  ;;  %v317_v23 = vmax.f32 %v2877_v20, %v2826_v61  ;;  %v319_v31 = vmax.f32 %v2880_v21, %v2864_v55  ;;  %v1185_v32 = vsel %vm551_vm3, %v1172_v11, %v1184_v22  ;;  %v2950_v63 = vld [vmem:[%s2731_s19 + $0x370] sm:$0xff]  ;;  %v2967_v11 = vld [vmem:[%s2731_s19 + $0x348] sm:$0xff] }
  0x41   : > { %v1221_v33 = vmax.f32 %v1219_v2, %v1220_v15  ;;  %v1228_v34 = vmax.f32 %v1226_v6, %v1227_v16  ;;  %v1235_v35 = vmax.f32 %v1233_v7, %v1234_v17  ;;  %v1186_v36 = vsel %vm553_vm4, %v1179_v12, %v1185_v32  ;;  %v2961_v7 = vld [vmem:[%s2731_s19 + $0x148] sm:$0xff]  ;;  %v3031_v16 = vld [vmem:[%s2731_s19 + $0x378] sm:$0xff] }
  0x42   : > { %v642_v37 = vmax.f32 %v626_v62, %v2869_v14  ;;  %v644_v38 = vmax.f32 %v628_v9, %v2874_v19  ;;  %v646_v39 = vmax.f32 %v630_v10, %v2877_v20  ;;  %v1193_v40 = vsel %vm1084_vm5, %v1186_v36, -inf  ;;  %v2910_v62 = vld [vmem:[%s2731_s19 + $0x160] sm:$0xff]  ;;  %3863 = vst [vmem:[#allocation10_spill] sm:$0xff] %v3031_v16 }
  0x43   : > { %v1188_v41 = vsel %vm1079_vm6, %v1186_v36, -inf  ;;  %v1203_v42 = vsel %vm1094_vm7, %v1186_v36, -inf  ;;  %1194 = vmax.xlane.f32.xlu1 %v1193_v40  ;;  %v1198_v26 = vsel %vm1089_vm8, %v1186_v36, -inf  ;;  %v1240_v28 = vsel %vm549_vm2, %v1221_v33, %v1214_v1  ;;  %v2996_v36 = vld [vmem:[%s2731_s19 + $0x258] sm:$0xff] }
  0x44   : > { %1189 = vmax.xlane.f32.xlu0 %v1188_v41  ;;  %v648_v9 = vmax.f32 %v632_v13, %v2880_v21  ;;  %v2919_v10 = vmax.f32 %v313_v18, %v2907_v25  ;;  %v1241_v45 = vsel %vm551_vm3, %v1228_v34, %v1240_v28  ;;  %v2926_v46 = vmax.f32 %v315_v29, %v2910_v62  ;;  %v3012_v28 = vld [vmem:[%s2731_s19 + $0x268] sm:$0xff] }
  0x45   : > { %v2929_v48 = vmax.f32 %v317_v23, %v2913_v43  ;;  %v2932_v50 = vmax.f32 %v319_v31, %v2922_v44  ;;  %v2941_v53 = vsel %vm553_vm4, %v1235_v35, %v1241_v45  ;;  %v658_v54 = vmax.f32 %v642_v37, %v2907_v25  ;;  %v2982_v23 = vld [vmem:[%s2731_s19 + $0x58] sm:$0xff]  ;;  %3858 = vst [vmem:[#allocation5_spill] sm:$0xff] %v3012_v28 }
  0x46   : > { %v660_v30 = vmax.f32 %v644_v38, %v2910_v62  ;;  %v662_v56 = vmax.f32 %v646_v39, %v2913_v43  ;;  %v1249_v1 = vsel %vm1084_vm5, %v2941_v53, -inf  ;;  %v664_v2 = vmax.f32 %v648_v9, %v2922_v44  ;;  %v2993_v35 = vld [vmem:[%s2731_s19 + $0x158] sm:$0xff]  ;;  %v3006_v39 = vld [vmem:[%s2731_s19 + $0x68] sm:$0xff] }
  0x47   : > { %1204 = vmax.xlane.f32.xlu1 %v1203_v42  ;;  %v1244_v12 = vsel %vm1079_vm6, %v2941_v53, -inf  ;;  %v674_v17 = vmax.f32 %v658_v54, %v2935_v51  ;;  %v627_v31 = vmax.f32 %v2820_v59, %v2953_v0  ;;  %v629_v32 = vmax.f32 %v2835_v3, %v2961_v7  ;;  %v2999_v37 = vld [vmem:[%s2731_s19 + $0x358] sm:$0xff]  ;;  %3856 = vst [vmem:[#allocation3_spill] sm:$0xff] %v3006_v39  ;;  %v3015_v9 = vld [vmem:[%s2731_s19 + $0x368] sm:$0xff] }
  0x48   : > { %1199 = vmax.xlane.f32.xlu0 %v1198_v26  ;;  %v676_v18 = vmax.f32 %v660_v30, %v2938_v52  ;;  %v678_v22 = vmax.f32 %v662_v56, %v2947_v57  ;;  %v680_v29 = vmax.f32 %v664_v2, %v2950_v63  ;;  %v631_v33 = vmax.f32 %v2838_v4, %v2964_v8 }
  0x49   : > { %v633_v34 = vmax.f32 %v2841_v5, %v2967_v11  ;;  %3855 = vst [vmem:[#allocation2_spill] sm:$0xff] %v2999_v37  ;;  %v682_v38 = vsel %vm508_vm9, %v674_v17, -inf  ;;  %v3009_v5 = vld [vmem:[%s2731_s19 + $0x168] sm:$0xff]  ;;  %3859 = vst [vmem:[#allocation6_spill] sm:$0xff] %v3015_v9  ;;  %v643_v45 = vmax.f32 %v627_v31, %v2982_v23  ;;  %v645_v54 = vmax.f32 %v629_v32, %v2993_v35 }
  0x4a   : > { %v689_v59 = vsel %vm508_vm9, %v676_v18, -inf  ;;  %v696_v3 = vsel %vm508_vm9, %v678_v22, -inf  ;;  %v703_v4 = vsel %vm508_vm9, %v680_v29, -inf  ;;  %3857 = vst [vmem:[#allocation4_spill] sm:$0xff] %v3009_v5  ;;  %v683_v40 = vrot.slane %v682_v38, 4  ;;  %v3025_v22 = vld [vmem:[%s2731_s19 + $0x178] sm:$0xff] }
  0x4b   : > { %1250 = vmax.xlane.f32.xlu1 %v1249_v1  ;;  %v690_v41 = vrot.slane %v689_v59, 4  ;;  %v697_v42 = vrot.slane %v696_v3, 4  ;;  %v704_v26 = vrot.slane %v703_v4, 4  ;;  %v647_v30 = vmax.f32 %v631_v33, %v2996_v36  ;;  %v3022_v1 = vld [vmem:[%s2731_s19 + $0x78] sm:$0xff]  ;;  %3861 = vst [vmem:[#allocation8_spill] sm:$0xff] %v3025_v22 }
  0x4c   : > { %1245 = vmax.xlane.f32.xlu0 %v1244_v12  ;;  %v649_v56 = vmax.f32 %v633_v34, %v2999_v37  ;;  %3860 = vst [vmem:[#allocation7_spill] sm:$0xff] %v3022_v1  ;;  %v684_v2 = vmax.f32 %v682_v38, %v683_v40  ;;  %v3028_v29 = vld [vmem:[%s2731_s19 + $0x278] sm:$0xff]  ;;  %v659_v31 = vmax.f32 %v643_v45, %v3006_v39 }
  0x4d   : > { %v691_v12 = vmax.f32 %v689_v59, %v690_v41  ;;  %v698_v17 = vmax.f32 %v696_v3, %v697_v42  ;;  %v705_v18 = vmax.f32 %v703_v4, %v704_v26  ;;  %3862 = vst [vmem:[#allocation9_spill] sm:$0xff] %v3028_v29  ;;  %v661_v32 = vmax.f32 %v645_v54, %v3009_v5 }
  0x4e   : > { %v663_v33 = vmax.f32 %v647_v30, %v3012_v28  ;;  %v665_v34 = vmax.f32 %v649_v56, %v3015_v9  ;;  %v685_v15 = vrot.slane %v684_v2, 2  ;;  %v675_v3 = vmax.f32 %v659_v31, %v3022_v1 }
  0x4f   : > { %v692_v13 = vrot.slane %v691_v12, 2  ;;  %v699_v38 = vrot.slane %v698_v17, 2  ;;  %v706_v59 = vrot.slane %v705_v18, 2  ;;  %v677_v4 = vmax.f32 %v661_v32, %v3025_v22 }
  0x50   : > { %v679_v40 = vmax.f32 %v663_v33, %v3028_v29  ;;  %v681_v41 = vmax.f32 %v665_v34, %v3031_v16  ;;  %v686_v42 = vmax.f32 %v684_v2, %v685_v15  ;;  %v729_v30 = vsel %vm508_vm9, %v675_v3, -inf  ;;  %v2454_v16 = vld [vmem:[%s2731_s19 + $0x180] sm:$0xff] }
  0x51   : > { %v693_v26 = vmax.f32 %v691_v12, %v692_v13  ;;  %v700_v45 = vmax.f32 %v698_v17, %v699_v38  ;;  %v707_v54 = vmax.f32 %v705_v18, %v706_v59  ;;  %v736_v56 = vsel %vm508_vm9, %v677_v4, -inf  ;;  %v2456_v29 = vld [vmem:[%s2731_s19 + $0x280] sm:$0xff] }
  0x52   : > { %v743_v6 = vsel %vm508_vm9, %v679_v40, -inf  ;;  %v750_v9 = vsel %vm508_vm9, %v681_v41, -inf  ;;  %v687_v28 = vrot.slane %v686_v42, 1  ;;  %v730_v34 = vrot.slane %v729_v30, 4  ;;  %v2452_v41 = vld [vmem:[%s2731_s19 + $0x80] sm:$0xff] }
  0x53   : > { %v694_v31 = vrot.slane %v693_v26, 1  ;;  %v701_v32 = vrot.slane %v700_v45, 1  ;;  %v708_v33 = vrot.slane %v707_v54, 1  ;;  %v737_v15 = vrot.slane %v736_v56, 4 }
  0x54   : > { %v744_v13 = vrot.slane %v743_v6, 4  ;;  %v751_v2 = vrot.slane %v750_v9, 4  ;;  %v688_v12 = vmax.f32 %v686_v42, %v687_v28  ;;  %v731_v59 = vmax.f32 %v729_v30, %v730_v34 }
  0x55   : > { %v695_v17 = vmax.f32 %v693_v26, %v694_v31  ;;  %v702_v18 = vmax.f32 %v700_v45, %v701_v32  ;;  %v709_v38 = vmax.f32 %v707_v54, %v708_v33  ;;  %v738_v3 = vmax.f32 %v736_v56, %v737_v15  ;;  %v2458_v56 = vld [vmem:[%s2731_s19 + $0x380] sm:$0xff]  ;;  %v2460_v31 = vld [vmem:[%s2731_s19 + $0x90] sm:$0xff] }
  0x56   : > { %v745_v4 = vmax.f32 %v743_v6, %v744_v13  ;;  %v752_v40 = vmax.f32 %v750_v9, %v751_v2  ;;  %v3864_v1 = vmax.f32 %v2919_v10, %v2935_v51  ;;  %v3865_v28 = vmax.f32 %v2926_v46, %v2938_v52  ;;  %v2462_v13 = vld [vmem:[%s2731_s19 + $0x190] sm:$0xff] }
  0x57   : > { %v714_v22 = vsel %vm549_vm2, %v695_v17, %v688_v12  ;;  %v3866_v26 = vmax.f32 %v2929_v48, %v2947_v57  ;;  %v732_v9 = vrot.slane %v731_v59, 2  ;;  %v739_v54 = vrot.slane %v738_v3, 2 }
  0x58   : > { %v364_v5 = vmax.f32 %v3864_v1, %v2452_v41  ;;  %v366_v42 = vmax.f32 %v3865_v28, %v2454_v16  ;;  %v715_v6 = vsel %vm551_vm3, %v702_v18, %v714_v22  ;;  %v746_v30 = vrot.slane %v745_v4, 2  ;;  %v2464_v18 = vld [vmem:[%s2731_s19 + $0x290] sm:$0xff] }
  0x59   : > { %v368_v45 = vmax.f32 %v3866_v26, %v2456_v29  ;;  %v716_v10 = vsel %vm553_vm4, %v709_v38, %v715_v6  ;;  %v753_v1 = vrot.slane %v752_v40, 2  ;;  %v3867_v46 = vmax.f32 %v2932_v50, %v2950_v63  ;;  %v2466_v38 = vld [vmem:[%s2731_s19 + $0x390] sm:$0xff] }
  0x5a   : > { %v381_v33 = vmax.f32 %v364_v5, %v2460_v31  ;;  %v724_v48 = vsel %vm723_vm10, %v716_v10, -inf  ;;  %v719_v34 = vsel %vm718_vm11, %v716_v10, -inf  ;;  %v733_v22 = vmax.f32 %v731_v59, %v732_v9 }
  0x5b   : > { %v370_v32 = vmax.f32 %v3867_v46, %v2458_v56  ;;  %v740_v15 = vmax.f32 %v738_v3, %v739_v54  ;;  %725 = vmax.xlane.f32.xlu1 %v724_v48  ;;  %720 = vmax.xlane.f32.xlu0 %v719_v34  ;;  %v747_v2 = vmax.f32 %v745_v4, %v746_v30  ;;  %v3072_v50 = vsel %vm1089_vm8, %v2941_v53, -inf  ;;  %v2468_v4 = vld [vmem:[%s2731_s19 + $0xa0] sm:$0xff] }
  0x5c   : > { %v754_v12 = vmax.f32 %v752_v40, %v753_v1  ;;  %v383_v17 = vmax.f32 %v366_v42, %v2462_v13  ;;  %v734_v5 = vrot.slane %v733_v22, 1  ;;  %v385_v59 = vmax.f32 %v368_v45, %v2464_v18  ;;  %v2470_v1 = vld [vmem:[%s2731_s19 + $0x1a0] sm:$0xff] }
  0x5d   : > { %v741_v28 = vrot.slane %v740_v15, 1  ;;  %v387_v3 = vmax.f32 %v370_v32, %v2466_v38  ;;  %v748_v26 = vrot.slane %v747_v2, 1  ;;  %v791_v9 = vmax.f32 %v2452_v41, %v2460_v31  ;;  %v2472_v46 = vld [vmem:[%s2731_s19 + $0x2a0] sm:$0xff] }
  0x5e   : > { %v755_v6 = vrot.slane %v754_v12, 1  ;;  %v793_v54 = vmax.f32 %v2454_v16, %v2462_v13  ;;  %v735_v40 = vmax.f32 %v733_v22, %v734_v5  ;;  %v795_v30 = vmax.f32 %v2456_v29, %v2464_v18  ;;  %v2474_v48 = vld [vmem:[%s2731_s19 + $0x3a0] sm:$0xff]  ;;  %v2476_v22 = vld [vmem:[%s2731_s19 + $0xb0] sm:$0xff] }
  0x5f   : > { %v742_v42 = vmax.f32 %v740_v15, %v741_v28  ;;  %v797_v10 = vmax.f32 %v2458_v56, %v2466_v38  ;;  %v749_v34 = vmax.f32 %v747_v2, %v748_v26  ;;  %v398_v45 = vmax.f32 %v381_v33, %v2468_v4  ;;  %v2478_v18 = vld [vmem:[%s2731_s19 + $0x1b0] sm:$0xff]  ;;  %v2484_v28 = vld [vmem:[%s2731_s19 + $0xc0] sm:$0xff] }
  0x60   : > { %v756_v39 = vmax.f32 %v754_v12, %v755_v6  ;;  %v400_v32 = vmax.f32 %v383_v17, %v2470_v1  ;;  %v402_v16 = vmax.f32 %v385_v59, %v2472_v46  ;;  %v404_v41 = vmax.f32 %v387_v3, %v2474_v48  ;;  %v2480_v2 = vld [vmem:[%s2731_s19 + $0x2b0] sm:$0xff]  ;;  %v2486_v6 = vld [vmem:[%s2731_s19 + $0x1c0] sm:$0xff] }
  0x61   : > { %v761_v37 = vsel %vm549_vm2, %v742_v42, %v735_v40  ;;  %v807_v31 = vmax.f32 %v791_v9, %v2468_v4  ;;  %v809_v56 = vmax.f32 %v793_v54, %v2470_v1  ;;  %v811_v15 = vmax.f32 %v795_v30, %v2472_v46  ;;  %v2482_v12 = vld [vmem:[%s2731_s19 + $0x3b0] sm:$0xff]  ;;  %v2488_v9 = vld [vmem:[%s2731_s19 + $0x2c0] sm:$0xff] }
  0x62   : > { %v762_v29 = vsel %vm551_vm3, %v749_v34, %v761_v37  ;;  %v813_v13 = vmax.f32 %v797_v10, %v2474_v48  ;;  %v415_v17 = vmax.f32 %v398_v45, %v2476_v22  ;;  %v417_v38 = vmax.f32 %v400_v32, %v2478_v18  ;;  %v2490_v54 = vld [vmem:[%s2731_s19 + $0x3c0] sm:$0xff]  ;;  %v2492_v42 = vld [vmem:[%s2731_s19 + $0xd0] sm:$0xff] }
  0x63   : > { %v763_v33 = vsel %vm553_vm4, %v756_v39, %v762_v29  ;;  %v419_v5 = vmax.f32 %v402_v16, %v2480_v2  ;;  %v421_v3 = vmax.f32 %v404_v41, %v2482_v12  ;;  %v823_v26 = vmax.f32 %v807_v31, %v2476_v22  ;;  %v2494_v34 = vld [vmem:[%s2731_s19 + $0x1d0] sm:$0xff]  ;;  %v2500_v29 = vld [vmem:[%s2731_s19 + $0xe0] sm:$0xff] }
  0x64   : > { %v765_v59 = vsel %vm718_vm11, %v763_v33, -inf  ;;  %v770_v37 = vsel %vm723_vm10, %v763_v33, -inf  ;;  %v825_v39 = vmax.f32 %v809_v56, %v2478_v18  ;;  %v827_v4 = vmax.f32 %v811_v15, %v2480_v2  ;;  %v2496_v45 = vld [vmem:[%s2731_s19 + $0x2d0] sm:$0xff]  ;;  %v2502_v18 = vld [vmem:[%s2731_s19 + $0x1e0] sm:$0xff] }
  0x65   : > { %766 = vmax.xlane.f32.xlu1 %v765_v59  ;;  %771 = vmax.xlane.f32.xlu0 %v770_v37  ;;  %v829_v40 = vmax.f32 %v813_v13, %v2482_v12  ;;  %v3094_v30 = vsel %vm1094_vm7, %v2941_v53, -inf  ;;  %v432_v10 = vmax.f32 %v415_v17, %v2484_v28  ;;  %v434_v1 = vmax.f32 %v417_v38, %v2486_v6  ;;  %v2498_v32 = vld [vmem:[%s2731_s19 + $0x3d0] sm:$0xff]  ;;  %v2504_v2 = vld [vmem:[%s2731_s19 + $0x2e0] sm:$0xff] }
  0x66   : > { %v436_v46 = vmax.f32 %v419_v5, %v2488_v9  ;;  %v438_v48 = vmax.f32 %v421_v3, %v2490_v54  ;;  %v839_v16 = vmax.f32 %v823_v26, %v2484_v28  ;;  %v841_v41 = vmax.f32 %v825_v39, %v2486_v6  ;;  %v2506_v12 = vld [vmem:[%s2731_s19 + $0x3e0] sm:$0xff]  ;;  %v3104_v28 = vld [vmem:[%s2731_s19 + $0xf0] sm:$0xff] }
  0x67   : > { %v843_v31 = vmax.f32 %v827_v4, %v2488_v9  ;;  %v845_v22 = vmax.f32 %v829_v40, %v2490_v54  ;;  %v449_v56 = vmax.f32 %v432_v10, %v2492_v42  ;;  %v451_v15 = vmax.f32 %v434_v1, %v2494_v34  ;;  %v3116_v6 = vld [vmem:[%s2731_s19 + $0x1f0] sm:$0xff] }
  0x68   : > { %v453_v53 = vmax.f32 %v436_v46, %v2496_v45  ;;  %v455_v13 = vmax.f32 %v438_v48, %v2498_v32  ;;  %v855_v33 = vmax.f32 %v839_v16, %v2492_v42  ;;  %v857_v17 = vmax.f32 %v841_v41, %v2494_v34  ;;  %v3119_v9 = vld [vmem:[%s2731_s19 + $0x2f0] sm:$0xff] }
  0x69   : > { %v859_v38 = vmax.f32 %v843_v31, %v2496_v45  ;;  %v861_v5 = vmax.f32 %v845_v22, %v2498_v32  ;;  %1255 = vmax.xlane.f32.xlu0 %v3072_v50  ;;  %v3107_v59 = vmax.f32 %v449_v56, %v2500_v29  ;;  %v3109_v37 = vmax.f32 %v451_v15, %v2502_v18  ;;  %v3122_v54 = vld [vmem:[%s2731_s19 + $0x3f0] sm:$0xff] }
  0x6a   : > { %v3111_v3 = vmax.f32 %v453_v53, %v2504_v2  ;;  %v3113_v26 = vmax.f32 %v455_v13, %v2506_v12  ;;  %v871_v39 = vmax.f32 %v855_v33, %v2500_v29  ;;  %v873_v4 = vmax.f32 %v857_v17, %v2502_v18 }
  0x6b   : > { %v875_v40 = vmax.f32 %v859_v38, %v2504_v2  ;;  %v877_v42 = vmax.f32 %v861_v5, %v2506_v12  ;;  %v483_v50 = vmax.f32 %v3107_v59, %v3104_v28  ;;  %v485_v10 = vmax.f32 %v3109_v37, %v3116_v6 }
  0x6c   : > { %v487_v1 = vmax.f32 %v3111_v3, %v3119_v9  ;;  %v489_v46 = vmax.f32 %v3113_v26, %v3122_v54  ;;  %v887_v48 = vmax.f32 %v871_v39, %v3104_v28  ;;  %v889_v34 = vmax.f32 %v873_v4, %v3116_v6  ;;  %v2541_v6 = vld [vmem:[%s2731_s19 + $0x48] sm:$0xff]  ;;  %v2551_v26 = vld [vmem:[%s2731_s19 + $0x158] sm:$0xff] }
  0x6d   : > { %v891_v45 = vmax.f32 %v875_v40, %v3119_v9  ;;  %v893_v32 = vmax.f32 %v877_v42, %v3122_v54  ;;  %v1280_v16 = vmax.f32 %v2802_v49, %v2869_v14  ;;  %v1282_v41 = vmax.f32 %v2823_v60, %v2874_v19  ;;  %v2543_v9 = vld [vmem:[%s2731_s19 + $0x148] sm:$0xff]  ;;  %v2553_v54 = vld [vmem:[%s2731_s19 + $0x258] sm:$0xff] }
  0x6e   : > { %v1284_v31 = vmax.f32 %v2826_v61, %v2877_v20  ;;  %v1286_v22 = vmax.f32 %v2864_v55, %v2880_v21  ;;  %v895_v29 = vsel %vm508_vm9, %v887_v48, -inf  ;;  %v902_v56 = vsel %vm508_vm9, %v889_v34, -inf }
  0x6f   : > { %v909_v15 = vsel %vm508_vm9, %v891_v45, -inf  ;;  %v916_v53 = vsel %vm508_vm9, %v893_v32, -inf  ;;  %v896_v13 = vrot.slane %v895_v29, 4  ;;  %v903_v18 = vrot.slane %v902_v56, 4 }
  0x70   : > { %v910_v49 = vrot.slane %v909_v15, 4  ;;  %v917_v14 = vrot.slane %v916_v53, 4  ;;  %v1296_v60 = vmax.f32 %v1280_v16, %v2907_v25  ;;  %v1298_v19 = vmax.f32 %v1282_v41, %v2910_v62 }
  0x71   : > { %v1300_v61 = vmax.f32 %v1284_v31, %v2913_v43  ;;  %v1302_v55 = vmax.f32 %v1286_v22, %v2922_v44  ;;  %v897_v20 = vmax.f32 %v895_v29, %v896_v13  ;;  %v904_v21 = vmax.f32 %v902_v56, %v903_v18 }
  0x72   : > { %v911_v2 = vmax.f32 %v909_v15, %v910_v49  ;;  %v918_v12 = vmax.f32 %v916_v53, %v917_v14  ;;  %v1312_v33 = vmax.f32 %v1296_v60, %v2935_v51  ;;  %v1314_v17 = vmax.f32 %v1298_v19, %v2938_v52 }
  0x73   : > { %v1316_v38 = vmax.f32 %v1300_v61, %v2947_v57  ;;  %v1318_v5 = vmax.f32 %v1302_v55, %v2950_v63  ;;  %v898_v39 = vrot.slane %v897_v20, 2  ;;  %v905_v25 = vrot.slane %v904_v21, 2 }
  0x74   : > { %v912_v4 = vrot.slane %v911_v2, 2  ;;  %v919_v62 = vrot.slane %v918_v12, 2  ;;  %v1320_v43 = vsel %vm556_vm0, %v1312_v33, -inf  ;;  %v1327_v44 = vsel %vm556_vm0, %v1314_v17, -inf }
  0x75   : > { %v1334_v40 = vsel %vm556_vm0, %v1316_v38, -inf  ;;  %v1341_v42 = vsel %vm556_vm0, %v1318_v5, -inf  ;;  %v899_v48 = vmax.f32 %v897_v20, %v898_v39  ;;  %v906_v51 = vmax.f32 %v904_v21, %v905_v25 }
  0x76   : > { %v913_v34 = vmax.f32 %v911_v2, %v912_v4  ;;  %v920_v52 = vmax.f32 %v918_v12, %v919_v62  ;;  %v1321_v45 = vrot.slane %v1320_v43, 4  ;;  %v1328_v57 = vrot.slane %v1327_v44, 4 }
  0x77   : > { %v1335_v32 = vrot.slane %v1334_v40, 4  ;;  %v1342_v63 = vrot.slane %v1341_v42, 4  ;;  %v900_v16 = vrot.slane %v899_v48, 1  ;;  %v907_v41 = vrot.slane %v906_v51, 1 }
  0x78   : > { %v914_v31 = vrot.slane %v913_v34, 1  ;;  %v921_v22 = vrot.slane %v920_v52, 1  ;;  %v1322_v29 = vmax.f32 %v1320_v43, %v1321_v45  ;;  %v1329_v56 = vmax.f32 %v1327_v44, %v1328_v57 }
  0x79   : > { %v1336_v15 = vmax.f32 %v1334_v40, %v1335_v32  ;;  %v1343_v53 = vmax.f32 %v1341_v42, %v1342_v63  ;;  %v901_v13 = vmax.f32 %v899_v48, %v900_v16  ;;  %v908_v18 = vmax.f32 %v906_v51, %v907_v41  ;;  %v245_v51 = vld [vmem:[%s2731_s19] sm:$0xff]  ;;  %v2276_v63 = vld [vmem:[%s2731_s19 + $0x10] sm:$0xff] }
  0x7a   : > { %v915_v49 = vmax.f32 %v913_v34, %v914_v31  ;;  %v922_v14 = vmax.f32 %v920_v52, %v921_v22  ;;  %v1323_v60 = vrot.slane %v1322_v29, 2  ;;  %v1330_v19 = vrot.slane %v1329_v56, 2  ;;  %v247_v32 = vld [vmem:[%s2731_s19 + $0x100] sm:$0xff]  ;;  %v2278_v16 = vld [vmem:[%s2731_s19 + $0x110] sm:$0xff] }
  0x7b   : > { %v1337_v61 = vrot.slane %v1336_v15, 2  ;;  %v1344_v55 = vrot.slane %v1343_v53, 2  ;;  %v927_v20 = vsel %vm549_vm2, %v908_v18, %v901_v13  ;;  %v1376_v21 = vsel %vm1099_vm1, %v1312_v33, -inf }
  0x7c   : > { %v1383_v2 = vsel %vm1099_vm1, %v1314_v17, -inf  ;;  %v1390_v12 = vsel %vm1099_vm1, %v1316_v38, -inf  ;;  %v928_v39 = vsel %vm551_vm3, %v915_v49, %v927_v20  ;;  %v1324_v25 = vmax.f32 %v1322_v29, %v1323_v60  ;;  %v251_v49 = vld [vmem:[%s2731_s19 + $0x300] sm:$0xff]  ;;  %v2282_v60 = vld [vmem:[%s2731_s19 + $0x310] sm:$0xff] }
  0x7d   : > { %v1331_v4 = vmax.f32 %v1329_v56, %v1330_v19  ;;  %v1338_v62 = vmax.f32 %v1336_v15, %v1337_v61  ;;  %v3166_v43 = vsel %vm553_vm4, %v922_v14, %v928_v39  ;;  %v1345_v44 = vmax.f32 %v1343_v53, %v1344_v55  ;;  %v249_v56 = vld [vmem:[%s2731_s19 + $0x200] sm:$0xff]  ;;  %v2280_v14 = vld [vmem:[%s2731_s19 + $0x210] sm:$0xff] }
  0x7e   : > { %v1377_v40 = vrot.slane %v1376_v21, 4  ;;  %v1384_v42 = vrot.slane %v1383_v2, 4  ;;  %v931_v33 = vsel %vm718_vm11, %v3166_v43, -inf  ;;  %v1325_v17 = vrot.slane %v1324_v25, 1 }
  0x7f   : > { %v1332_v38 = vrot.slane %v1331_v4, 1  ;;  %v1339_v48 = vrot.slane %v1338_v62, 1  ;;  %932 = vmax.xlane.f32.xlu1 %v931_v33  ;;  %v1346_v34 = vrot.slane %v1345_v44, 1  ;;  %v1391_v57 = vrot.slane %v1390_v12, 4 }
  0x80   : > { %v1378_v52 = vmax.f32 %v1376_v21, %v1377_v40  ;;  %v1385_v45 = vmax.f32 %v1383_v2, %v1384_v42  ;;  %v1326_v41 = vmax.f32 %v1324_v25, %v1325_v17  ;;  %v1397_v29 = vsel %vm1099_vm1, %v1318_v5, -inf  ;;  %v2286_v40 = vld [vmem:[%s2731_s19 + $0x120] sm:$0xff] }
  0x81   : > { %v1333_v31 = vmax.f32 %v1331_v4, %v1332_v38  ;;  %v1340_v22 = vmax.f32 %v1338_v62, %v1339_v48  ;;  %v1347_v15 = vmax.f32 %v1345_v44, %v1346_v34  ;;  %v1392_v18 = vmax.f32 %v1390_v12, %v1391_v57  ;;  %v2284_v44 = vld [vmem:[%s2731_s19 + $0x20] sm:$0xff] }
  0x82   : > { %v1379_v53 = vrot.slane %v1378_v52, 2  ;;  %v1386_v13 = vrot.slane %v1385_v45, 2  ;;  %v1398_v61 = vrot.slane %v1397_v29, 4  ;;  %v262_v55 = vmax.f32 %v245_v51, %v2276_v63  ;;  %v2292_v63 = vld [vmem:[%s2731_s19 + $0x30] sm:$0xff] }
  0x83   : > { %v1352_v19 = vsel %vm549_vm2, %v1333_v31, %v1326_v41  ;;  %v264_v20 = vmax.f32 %v247_v32, %v2278_v16  ;;  %1260 = vmax.xlane.f32.xlu1 %v3094_v30  ;;  %v1393_v39 = vrot.slane %v1392_v18, 2  ;;  %v266_v4 = vmax.f32 %v249_v56, %v2280_v14  ;;  %v2293_v16 = vld [vmem:[%s2731_s19 + $0x38] sm:$0xff]  ;;  %v2294_v56 = vld [vmem:[%s2731_s19 + $0x130] sm:$0xff] }
  0x84   : > { %v1353_v21 = vsel %vm551_vm3, %v1340_v22, %v1352_v19  ;;  %v1380_v5 = vmax.f32 %v1378_v52, %v1379_v53  ;;  %v1387_v2 = vmax.f32 %v1385_v45, %v1386_v13  ;;  %v1399_v25 = vmax.f32 %v1397_v29, %v1398_v61  ;;  %v2288_v52 = vld [vmem:[%s2731_s19 + $0x220] sm:$0xff]  ;;  %v2296_v53 = vld [vmem:[%s2731_s19 + $0x230] sm:$0xff] }
  0x85   : > { %v1354_v12 = vsel %vm553_vm4, %v1347_v15, %v1353_v21  ;;  %v268_v62 = vmax.f32 %v251_v49, %v2282_v60  ;;  %v1394_v51 = vmax.f32 %v1392_v18, %v1393_v39  ;;  %v2290_v45 = vld [vmem:[%s2731_s19 + $0x320] sm:$0xff]  ;;  %v279_v57 = vmax.f32 %v262_v55, %v2284_v44  ;;  %v2295_v15 = vld [vmem:[%s2731_s19 + $0x138] sm:$0xff]  ;;  %v2298_v61 = vld [vmem:[%s2731_s19 + $0x330] sm:$0xff] }
  0x86   : > { %v1356_v42 = vsel %vm1079_vm6, %v1354_v12, -inf  ;;  %v1361_v30 = vsel %vm1084_vm5, %v1354_v12, -inf  ;;  %v1366_v33 = vsel %vm1089_vm8, %v1354_v12, -inf  ;;  %v1371_v17 = vsel %vm1094_vm7, %v1354_v12, -inf  ;;  %v2297_v49 = vld [vmem:[%s2731_s19 + $0x238] sm:$0xff] }
  0x87   : > { %1357 = vmax.xlane.f32.xlu0 %v1356_v42  ;;  %v1381_v38 = vrot.slane %v1380_v5, 1  ;;  %v1388_v48 = vrot.slane %v1387_v2, 1  ;;  %v1400_v34 = vrot.slane %v1399_v25, 2  ;;  %1362 = vmax.xlane.f32.xlu1 %v1361_v30  ;;  %v281_v32 = vmax.f32 %v264_v20, %v2286_v40  ;;  %v2299_v55 = vld [vmem:[%s2731_s19 + $0x338] sm:$0xff]  ;;  %v3235_v30 = vld [vmem:[%s2731_s19 + $0x88] sm:$0xff] }
  0x88   : > { %v1395_v22 = vrot.slane %v1394_v51, 1  ;;  %v283_v13 = vmax.f32 %v266_v4, %v2288_v52  ;;  %v285_v18 = vmax.f32 %v268_v62, %v2290_v45  ;;  %v296_v20 = vmax.f32 %v279_v57, %v2292_v63  ;;  %v2555_v57 = vld [vmem:[%s2731_s19 + $0x358] sm:$0xff]  ;;  %v2559_v63 = vld [vmem:[%s2731_s19 + $0x168] sm:$0xff] }
  0x89   : > { %v1382_v41 = vmax.f32 %v1380_v5, %v1381_v38  ;;  %v1389_v31 = vmax.f32 %v1387_v2, %v1388_v48  ;;  %v1401_v29 = vmax.f32 %v1399_v25, %v1400_v34  ;;  %v297_v21 = vmax.f32 %v2798_v47, %v2293_v16  ;;  %v3868_v38 = vld [vmem:[#allocation2_spill] sm:$0xff]  ;;  %v3870_v34 = vld [vmem:[#allocation4_spill] sm:$0xff]  ;;  %v3871_v16 = vld [vmem:[#allocation5_spill] sm:$0xff] }
  0x8a   : > { %v1396_v14 = vmax.f32 %v1394_v51, %v1395_v22  ;;  %v298_v5 = vmax.f32 %v281_v32, %v2294_v56  ;;  %v299_v2 = vmax.f32 %v2809_v24, %v2295_v15  ;;  %v300_v39 = vmax.f32 %v283_v13, %v2296_v53  ;;  %v3869_v51 = vld [vmem:[#allocation3_spill] sm:$0xff]  ;;  %v3872_v13 = vld [vmem:[#allocation6_spill] sm:$0xff] }
  0x8b   : > { %1367 = vmax.xlane.f32.xlu0 %v1366_v33  ;;  %v1402_v60 = vrot.slane %v1401_v29, 1  ;;  %v1408_v19 = vsel %vm549_vm2, %v1389_v31, %v1382_v41  ;;  %1372 = vmax.xlane.f32.xlu1 %v1371_v17  ;;  %v500_v4 = vmax.f32 %v483_v50, %v296_v20  ;;  %v301_v62 = vmax.f32 %v2811_v27, %v2297_v49  ;;  %v2545_v50 = vld [vmem:[%s2731_s19 + $0x248] sm:$0xff]  ;;  %v2565_v20 = vld [vmem:[%s2731_s19 + $0x78] sm:$0xff] }
  0x8c   : > { %v1409_v25 = vsel %vm551_vm3, %v1396_v14, %v1408_v19  ;;  %v502_v47 = vmax.f32 %v485_v10, %v298_v5  ;;  %v504_v24 = vmax.f32 %v487_v1, %v300_v39  ;;  %v302_v44 = vmax.f32 %v285_v18, %v2298_v61  ;;  %v2549_v1 = vld [vmem:[%s2731_s19 + $0x58] sm:$0xff]  ;;  %v3238_v33 = vld [vmem:[%s2731_s19 + $0x188] sm:$0xff] }
  0x8d   : > { %v1403_v12 = vmax.f32 %v1401_v29, %v1402_v60  ;;  %v303_v40 = vmax.f32 %v2817_v58, %v2299_v55  ;;  %v314_v28 = vmax.f32 %v297_v21, %v2953_v0  ;;  %v316_v59 = vmax.f32 %v299_v2, %v2961_v7  ;;  %v2547_v17 = vld [vmem:[%s2731_s19 + $0x348] sm:$0xff]  ;;  %v3874_v60 = vld [vmem:[#allocation8_spill] sm:$0xff]  ;;  %v2567_v21 = vld [vmem:[%s2731_s19 + $0x178] sm:$0xff] }
  0x8e   : > { %v318_v27 = vmax.f32 %v301_v62, %v2964_v8  ;;  %v506_v58 = vmax.f32 %v489_v46, %v302_v44  ;;  %v2557_v32 = vld [vmem:[%s2731_s19 + $0x68] sm:$0xff]  ;;  %v1281_v29 = vmax.f32 %v2541_v6, %v2549_v1  ;;  %v1283_v56 = vmax.f32 %v2543_v9, %v2551_v26  ;;  %v3875_v5 = vld [vmem:[#allocation9_spill] sm:$0xff] }
  0x8f   : > { %v1410_v42 = vsel %vm553_vm4, %v1403_v12, %v1409_v25  ;;  %v320_v7 = vmax.f32 %v303_v40, %v2967_v11  ;;  %v331_v8 = vmax.f32 %v314_v28, %v2982_v23  ;;  %v333_v10 = vmax.f32 %v316_v59, %v2993_v35  ;;  %v3259_v31 = vld [vmem:[%s2731_s19 + $0x288] sm:$0xff]  ;;  %v3276_v39 = vld [vmem:[%s2731_s19 + $0x98] sm:$0xff] }
  0x90   : > { %v1412_v37 = vsel %vm1079_vm6, %v1410_v42, -inf  ;;  %v1417_v3 = vsel %vm1084_vm5, %v1410_v42, -inf  ;;  %v1422_v0 = vsel %vm1089_vm8, %v1410_v42, -inf  ;;  %v335_v46 = vmax.f32 %v318_v27, %v2996_v36  ;;  %v3262_v22 = vld [vmem:[%s2731_s19 + $0x388] sm:$0xff]  ;;  %v3279_v12 = vld [vmem:[%s2731_s19 + $0x198] sm:$0xff] }
  0x91   : > { %1413 = vmax.xlane.f32.xlu0 %v1412_v37  ;;  %1418 = vmax.xlane.f32.xlu1 %v1417_v3  ;;  %v3241_v11 = vsel %vm508_vm9, %v500_v4, -inf  ;;  %v3244_v23 = vsel %vm508_vm9, %v502_v47, -inf  ;;  %v3247_v35 = vsel %vm508_vm9, %v504_v24, -inf  ;;  %v337_v48 = vmax.f32 %v320_v7, %v3868_v38  ;;  %v2561_v53 = vld [vmem:[%s2731_s19 + $0x268] sm:$0xff]  ;;  %v2569_v47 = vld [vmem:[%s2731_s19 + $0x278] sm:$0xff]  ;;  %v3876_v24 = vld [vmem:[#allocation10_spill] sm:$0xff] }
  0x92   : > { %v348_v36 = vmax.f32 %v331_v8, %v3869_v51  ;;  %v350_v52 = vmax.f32 %v333_v10, %v3870_v34  ;;  %v1427_v45 = vsel %vm1094_vm7, %v1410_v42, -inf  ;;  %v352_v41 = vmax.f32 %v335_v46, %v3871_v16  ;;  %v3873_v49 = vld [vmem:[#allocation7_spill] sm:$0xff]  ;;  %v3286_v28 = vld [vmem:[%s2731_s19 + $0x298] sm:$0xff] }
  0x93   : > { %v1285_v15 = vmax.f32 %v2545_v50, %v2553_v54  ;;  %v354_v18 = vmax.f32 %v337_v48, %v3872_v13  ;;  %v3269_v61 = vsel %vm508_vm9, %v506_v58, -inf  ;;  %v2563_v55 = vld [vmem:[%s2731_s19 + $0x368] sm:$0xff]  ;;  %v1287_v25 = vmax.f32 %v2547_v17, %v2555_v57  ;;  %v2571_v27 = vld [vmem:[%s2731_s19 + $0x378] sm:$0xff] }
  0x94   : > { %v365_v14 = vmax.f32 %v348_v36, %v3873_v49  ;;  %v367_v19 = vmax.f32 %v350_v52, %v3874_v60  ;;  %v369_v2 = vmax.f32 %v352_v41, %v3875_v5  ;;  %v1297_v4 = vmax.f32 %v1281_v29, %v2557_v32  ;;  %v3291_v3 = vld [vmem:[%s2731_s19 + $0x398] sm:$0xff]  ;;  %v3294_v58 = vld [vmem:[%s2731_s19 + $0xa8] sm:$0xff] }
  0x95   : > { %1423 = vmax.xlane.f32.xlu0 %v1422_v0  ;;  %1428 = vmax.xlane.f32.xlu1 %v1427_v45  ;;  %v1299_v62 = vmax.f32 %v1283_v56, %v2559_v63  ;;  %v371_v44 = vmax.f32 %v354_v18, %v3876_v24  ;;  %v1301_v59 = vmax.f32 %v1285_v15, %v2561_v53  ;;  %v3297_v6 = vld [vmem:[%s2731_s19 + $0x1a8] sm:$0xff]  ;;  %v3316_v17 = vld [vmem:[%s2731_s19 + $0xb8] sm:$0xff] }
  0x96   : > { %v382_v40 = vmax.f32 %v365_v14, %v3235_v30  ;;  %v384_v42 = vmax.f32 %v367_v19, %v3238_v33  ;;  %v386_v37 = vmax.f32 %v369_v2, %v3259_v31  ;;  %v1303_v9 = vmax.f32 %v1287_v25, %v2563_v55  ;;  %v3307_v1 = vld [vmem:[%s2731_s19 + $0x2a8] sm:$0xff]  ;;  %v3319_v38 = vld [vmem:[%s2731_s19 + $0x1b8] sm:$0xff] }
  0x97   : > { %v3299_v50 = vmax.f32 %v1297_v4, %v2565_v20  ;;  %v3301_v0 = vmax.f32 %v1299_v62, %v2567_v21  ;;  %v388_v7 = vmax.f32 %v371_v44, %v3262_v22  ;;  %v3309_v26 = vmax.f32 %v1301_v59, %v2569_v47  ;;  %v3313_v46 = vld [vmem:[%s2731_s19 + $0x3a8] sm:$0xff]  ;;  %v3331_v57 = vld [vmem:[%s2731_s19 + $0x2b8] sm:$0xff] }
  0x98   : > { %v399_v8 = vmax.f32 %v382_v40, %v3276_v39  ;;  %v401_v10 = vmax.f32 %v384_v42, %v3279_v12  ;;  %v403_v54 = vmax.f32 %v386_v37, %v3286_v28  ;;  %v3321_v48 = vmax.f32 %v1303_v9, %v2571_v27  ;;  %v3335_v16 = vld [vmem:[%s2731_s19 + $0x3b8] sm:$0xff]  ;;  %v2365_v41 = vld [vmem:[%s2731_s19 + $0xc8] sm:$0xff] }
  0x99   : > { %v1432_v51 = vsel %vm556_vm0, %v3299_v50, -inf  ;;  %v1439_v36 = vsel %vm556_vm0, %v3301_v0, -inf  ;;  %v405_v34 = vmax.f32 %v388_v7, %v3291_v3  ;;  %v2367_v29 = vld [vmem:[%s2731_s19 + $0x1c8] sm:$0xff]  ;;  %v1446_v15 = vsel %vm556_vm0, %v3309_v26, -inf  ;;  %v2373_v20 = vld [vmem:[%s2731_s19 + $0xd8] sm:$0xff] }
  0x9a   : > { %v416_v52 = vmax.f32 %v399_v8, %v3294_v58  ;;  %v418_v45 = vmax.f32 %v401_v10, %v3297_v6  ;;  %v1433_v32 = vrot.slane %v1432_v51, 4  ;;  %v420_v63 = vmax.f32 %v403_v54, %v3307_v1  ;;  %v2369_v14 = vld [vmem:[%s2731_s19 + $0x2c8] sm:$0xff]  ;;  %v2375_v21 = vld [vmem:[%s2731_s19 + $0x1d8] sm:$0xff] }
  0x9b   : > { %v1440_v56 = vrot.slane %v1439_v36, 4  ;;  %v1453_v53 = vsel %vm556_vm0, %v3321_v48, -inf  ;;  %v422_v13 = vmax.f32 %v405_v34, %v3313_v46  ;;  %v2371_v55 = vld [vmem:[%s2731_s19 + $0x3c8] sm:$0xff]  ;;  %v1447_v2 = vrot.slane %v1446_v15, 4  ;;  %v2377_v24 = vld [vmem:[%s2731_s19 + $0x2d8] sm:$0xff] }
  0x9c   : > { %v433_v18 = vmax.f32 %v416_v52, %v3316_v17  ;;  %v435_v49 = vmax.f32 %v418_v45, %v3319_v38  ;;  %v1434_v60 = vmax.f32 %v1432_v51, %v1433_v32  ;;  %v437_v19 = vmax.f32 %v420_v63, %v3331_v57  ;;  %v2379_v42 = vld [vmem:[%s2731_s19 + $0x3d8] sm:$0xff]  ;;  %v3355_v59 = vld [vmem:[%s2731_s19 + $0xe8] sm:$0xff] }
  0x9d   : > { %v1441_v5 = vmax.f32 %v1439_v36, %v1440_v56  ;;  %v1454_v25 = vrot.slane %v1453_v53, 4  ;;  %v439_v4 = vmax.f32 %v422_v13, %v3335_v16  ;;  %v3358_v27 = vld [vmem:[%s2731_s19 + $0x1e8] sm:$0xff]  ;;  %v1448_v9 = vmax.f32 %v1446_v15, %v1447_v2  ;;  %v3367_v45 = vld [vmem:[%s2731_s19 + $0xf8] sm:$0xff] }
  0x9e   : > { %v450_v62 = vmax.f32 %v433_v18, %v2365_v41  ;;  %v452_v47 = vmax.f32 %v435_v49, %v2367_v29  ;;  %v1435_v44 = vrot.slane %v1434_v60, 2  ;;  %v454_v40 = vmax.f32 %v437_v19, %v2369_v14  ;;  %v3361_v51 = vld [vmem:[%s2731_s19 + $0x2e8] sm:$0xff]  ;;  %v3370_v32 = vld [vmem:[%s2731_s19 + $0x1f8] sm:$0xff] }
  0x9f   : > { %v1442_v37 = vrot.slane %v1441_v5, 2  ;;  %v1455_v7 = vmax.f32 %v1453_v53, %v1454_v25  ;;  %v456_v8 = vmax.f32 %v439_v4, %v2371_v55  ;;  %v3364_v52 = vld [vmem:[%s2731_s19 + $0x3e8] sm:$0xff]  ;;  %v1449_v41 = vrot.slane %v1448_v9, 2  ;;  %v3375_v13 = vld [vmem:[%s2731_s19 + $0x2f8] sm:$0xff] }
  0xa0   : > { %v467_v10 = vmax.f32 %v450_v62, %v2373_v20  ;;  %v469_v54 = vmax.f32 %v452_v47, %v2375_v21  ;;  %v1436_v36 = vmax.f32 %v1434_v60, %v1435_v44  ;;  %v471_v34 = vmax.f32 %v454_v40, %v2377_v24  ;;  %v3379_v14 = vld [vmem:[%s2731_s19 + $0x3f8] sm:$0xff] }
  0xa1   : > { %v1443_v63 = vmax.f32 %v1441_v5, %v1442_v37  ;;  %v1456_v29 = vrot.slane %v1455_v7, 2  ;;  %v473_v56 = vmax.f32 %v456_v8, %v2379_v42  ;;  %v1450_v19 = vmax.f32 %v1448_v9, %v1449_v41 }
  0xa2   : > { %v484_v15 = vmax.f32 %v467_v10, %v3355_v59  ;;  %v486_v53 = vmax.f32 %v469_v54, %v3358_v27  ;;  %v1437_v18 = vrot.slane %v1436_v36, 1  ;;  %v488_v49 = vmax.f32 %v471_v34, %v3361_v51 }
  0xa3   : > { %v1444_v60 = vrot.slane %v1443_v63, 1  ;;  %v1457_v55 = vmax.f32 %v1455_v7, %v1456_v29  ;;  %v490_v20 = vmax.f32 %v473_v56, %v3364_v52  ;;  %v1451_v62 = vrot.slane %v1450_v19, 1 }
  0xa4   : > { %v501_v21 = vmax.f32 %v484_v15, %v3367_v45  ;;  %v503_v5 = vmax.f32 %v486_v53, %v3370_v32  ;;  %v1438_v2 = vmax.f32 %v1436_v36, %v1437_v18  ;;  %v505_v25 = vmax.f32 %v488_v49, %v3375_v13 }
  0xa5   : > { %v1445_v4 = vmax.f32 %v1443_v63, %v1444_v60  ;;  %v1458_v47 = vrot.slane %v1457_v55, 1  ;;  %v507_v24 = vmax.f32 %v490_v20, %v3379_v14  ;;  %v1488_v42 = vsel %vm1099_vm1, %v3299_v50, -inf }
  0xa6   : > { %v510_v44 = vsel %vm508_vm9, %v501_v21, -inf  ;;  %v519_v40 = vsel %vm508_vm9, %v503_v5, -inf  ;;  %v528_v7 = vsel %vm508_vm9, %v505_v25, -inf  ;;  %v1452_v8 = vmax.f32 %v1450_v19, %v1451_v62 }
  0xa7   : > { %v511_v37 = vmax.f32 %v3241_v11, %v510_v44  ;;  %v520_v9 = vmax.f32 %v3244_v23, %v519_v40  ;;  %v529_v10 = vmax.f32 %v3247_v35, %v528_v7  ;;  %v537_v54 = vsel %vm508_vm9, %v507_v24, -inf }
  0xa8   : > { %v1459_v36 = vmax.f32 %v1457_v55, %v1458_v47  ;;  %v1464_v34 = vsel %vm549_vm2, %v1445_v4, %v1438_v2  ;;  %v538_v29 = vmax.f32 %v3269_v61, %v537_v54  ;;  %v1489_v23 = vrot.slane %v1488_v42, 4 }
  0xa9   : > { %v512_v63 = vrot.slane %v511_v37, 4  ;;  %v521_v41 = vrot.slane %v520_v9, 4  ;;  %v1465_v50 = vsel %vm551_vm3, %v1452_v8, %v1464_v34  ;;  %v530_v56 = vrot.slane %v529_v10, 4 }
  0xaa   : > { %v1466_v11 = vsel %vm553_vm4, %v1459_v36, %v1465_v50  ;;  %v1495_v15 = vsel %vm1099_vm1, %v3301_v0, -inf  ;;  %v539_v18 = vrot.slane %v538_v29, 4  ;;  %v1490_v2 = vmax.f32 %v1488_v42, %v1489_v23 }
  0xab   : > { %v513_v53 = vmax.f32 %v511_v37, %v512_v63  ;;  %v522_v35 = vmax.f32 %v520_v9, %v521_v41  ;;  %v3402_v49 = vsel %vm1079_vm6, %v1466_v11, -inf  ;;  %v531_v60 = vmax.f32 %v529_v10, %v530_v56  ;;  %v2572_v41 = vld [vmem:[%s2731_s19 + $0x80] sm:$0xff] }
  0xac   : > { %v1473_v19 = vsel %vm1084_vm5, %v1466_v11, -inf  ;;  %v3406_v61 = vsel %vm1089_vm8, %v1466_v11, -inf  ;;  %v1483_v55 = vsel %vm1094_vm7, %v1466_v11, -inf  ;;  %v540_v5 = vmax.f32 %v538_v29, %v539_v18  ;;  %v2580_v29 = vld [vmem:[%s2731_s19 + $0x90] sm:$0xff] }
  0xad   : > { %v514_v20 = vrot.slane %v513_v53, 2  ;;  %v523_v21 = vrot.slane %v522_v35, 2  ;;  %1474 = vmax.xlane.f32.xlu1 %v1473_v19  ;;  %v532_v0 = vrot.slane %v531_v60, 2  ;;  %v1496_v25 = vrot.slane %v1495_v15, 4 }
  0xae   : > { %v1502_v4 = vsel %vm1099_vm1, %v3309_v26, -inf  ;;  %v1509_v62 = vsel %vm1099_vm1, %v3321_v48, -inf  ;;  %v541_v44 = vrot.slane %v540_v5, 2  ;;  %v1491_v40 = vrot.slane %v1490_v2, 2 }
  0xaf   : > { %v515_v47 = vmax.f32 %v513_v53, %v514_v20  ;;  %v524_v24 = vmax.f32 %v522_v35, %v523_v21  ;;  %v533_v37 = vmax.f32 %v531_v60, %v532_v0  ;;  %v1497_v9 = vmax.f32 %v1495_v15, %v1496_v25  ;;  %v2574_v15 = vld [vmem:[%s2731_s19 + $0x180] sm:$0xff]  ;;  %v2582_v20 = vld [vmem:[%s2731_s19 + $0x190] sm:$0xff] }
  0xb0   : > { %v1503_v7 = vrot.slane %v1502_v4, 4  ;;  %v1510_v8 = vrot.slane %v1509_v62, 4  ;;  %v542_v54 = vmax.f32 %v540_v5, %v541_v44  ;;  %v1492_v26 = vmax.f32 %v1490_v2, %v1491_v40  ;;  %v2576_v53 = vld [vmem:[%s2731_s19 + $0x280] sm:$0xff]  ;;  %v2584_v21 = vld [vmem:[%s2731_s19 + $0x290] sm:$0xff] }
  0xb1   : > { %v516_v42 = vrot.slane %v515_v47, 1  ;;  %v525_v10 = vrot.slane %v524_v24, 1  ;;  %1484 = vmax.xlane.f32.xlu1 %v1483_v55  ;;  %v534_v36 = vrot.slane %v533_v37, 1  ;;  %v1498_v48 = vrot.slane %v1497_v9, 2  ;;  %v2578_v35 = vld [vmem:[%s2731_s19 + $0x380] sm:$0xff]  ;;  %v2586_v5 = vld [vmem:[%s2731_s19 + $0x390] sm:$0xff] }
  0xb2   : > { %v1504_v34 = vmax.f32 %v1502_v4, %v1503_v7  ;;  %v1511_v63 = vmax.f32 %v1509_v62, %v1510_v8  ;;  %v543_v11 = vrot.slane %v542_v54, 1  ;;  %v1493_v23 = vrot.slane %v1492_v26, 1  ;;  %v2588_v62 = vld [vmem:[%s2731_s19 + $0xa0] sm:$0xff] }
  0xb3   : > { %v517_v50 = vmax.f32 %v515_v47, %v516_v42  ;;  %v526_v56 = vmax.f32 %v524_v24, %v525_v10  ;;  %v535_v18 = vmax.f32 %v533_v37, %v534_v36  ;;  %v1499_v60 = vmax.f32 %v1497_v9, %v1498_v48  ;;  %v2590_v37 = vld [vmem:[%s2731_s19 + $0x1a0] sm:$0xff]  ;;  %v2596_v36 = vld [vmem:[%s2731_s19 + $0xb0] sm:$0xff] }
  0xb4   : > { %v1505_v19 = vrot.slane %v1504_v34, 2  ;;  %v1512_v55 = vrot.slane %v1511_v63, 2  ;;  %v544_v2 = vmax.f32 %v542_v54, %v543_v11  ;;  %v1494_v25 = vmax.f32 %v1492_v26, %v1493_v23  ;;  %v2592_v9 = vld [vmem:[%s2731_s19 + $0x2a0] sm:$0xff]  ;;  %v2602_v11 = vld [vmem:[%s2731_s19 + $0x3b0] sm:$0xff] }
  0xb5   : > { %v550_v0 = vsel %vm549_vm2, %v526_v56, %v517_v50  ;;  %v1560_v4 = vmax.f32 %v2572_v41, %v2580_v29  ;;  %v1500_v24 = vrot.slane %v1499_v60, 1  ;;  %v2594_v7 = vld [vmem:[%s2731_s19 + $0x3a0] sm:$0xff]  ;;  %v1562_v42 = vmax.f32 %v2574_v15, %v2582_v20  ;;  %v2598_v50 = vld [vmem:[%s2731_s19 + $0x1b0] sm:$0xff] }
  0xb6   : > { %v552_v47 = vsel %vm551_vm3, %v535_v18, %v550_v0  ;;  %v1506_v44 = vmax.f32 %v1504_v34, %v1505_v19  ;;  %v1513_v40 = vmax.f32 %v1511_v63, %v1512_v55  ;;  %v1564_v10 = vmax.f32 %v2576_v53, %v2584_v21  ;;  %v2600_v56 = vld [vmem:[%s2731_s19 + $0x2b0] sm:$0xff] }
  0xb7   : > { %v554_v8 = vsel %vm553_vm4, %v544_v2, %v552_v47  ;;  %v1566_v54 = vmax.f32 %v2578_v35, %v2586_v5  ;;  %v1501_v48 = vmax.f32 %v1499_v60, %v1500_v24  ;;  %v1576_v34 = vmax.f32 %v1560_v4, %v2588_v62 }
  0xb8   : > { %v557_v26 = vsel %vm556_vm0, %v554_v8, -inf  ;;  %v1507_v41 = vrot.slane %v1506_v44, 1  ;;  %v1514_v29 = vrot.slane %v1513_v40, 1  ;;  %v1578_v63 = vmax.f32 %v1562_v42, %v2590_v37 }
  0xb9   : > { %558 = vmax.xlane.f32.xlu0 %v557_v26  ;;  %v1580_v23 = vmax.f32 %v1564_v10, %v2592_v9  ;;  %v1582_v18 = vmax.f32 %v1566_v54, %v2594_v7  ;;  %v1520_v15 = vsel %vm549_vm2, %v1501_v48, %v1494_v25  ;;  %v1561_v53 = vmax.f32 %v3235_v30, %v3276_v39 }
  0xba   : > { %v1508_v19 = vmax.f32 %v1506_v44, %v1507_v41  ;;  %v1515_v55 = vmax.f32 %v1513_v40, %v1514_v29  ;;  %v1592_v35 = vmax.f32 %v1576_v34, %v2596_v36  ;;  %v1594_v20 = vmax.f32 %v1578_v63, %v2598_v50 }
  0xbb   : > { %v1596_v60 = vmax.f32 %v1580_v23, %v2600_v56  ;;  %v1598_v21 = vmax.f32 %v1582_v18, %v2602_v11  ;;  %v1563_v2 = vmax.f32 %v3238_v33, %v3279_v12  ;;  %v1565_v0 = vmax.f32 %v3259_v31, %v3286_v28  ;;  %v3452_v7 = vpop.xlane.xlu0 %1081 }
  0xbc   : > { %v1521_v5 = vsel %vm551_vm3, %v1508_v19, %v1520_v15  ;;  %v1567_v4 = vmax.f32 %v3262_v22, %v3291_v3  ;;  %v1600_v62 = vsel %vm556_vm0, %v1592_v35, -inf  ;;  %v1607_v47 = vsel %vm556_vm0, %v1594_v20, -inf  ;;  %1083 = vst.msk [vmem:[%s3546_s23] sm:$0xf] %vm560_vm12, %v3452_v7 }
  0xbd   : > { %1469 = vmax.xlane.f32.xlu0 %v3402_v49  ;;  %v1522_v25 = vsel %vm553_vm4, %v1515_v55, %v1521_v5  ;;  %v1614_v24 = vsel %vm556_vm0, %v1596_v60, -inf  ;;  %v1601_v49 = vrot.slane %v1600_v62, 4  ;;  %v1608_v8 = vrot.slane %v1607_v47, 4 }
  0xbe   : > { %v1524_v44 = vsel %vm1079_vm6, %v1522_v25, -inf  ;;  %v1529_v40 = vsel %vm1084_vm5, %v1522_v25, -inf  ;;  %v1534_v37 = vsel %vm1089_vm8, %v1522_v25, -inf  ;;  %v1539_v9 = vsel %vm1094_vm7, %v1522_v25, -inf }
  0xbf   : > { %1530 = vmax.xlane.f32.xlu1 %v1529_v40  ;;  %v1615_v42 = vrot.slane %v1614_v24, 4  ;;  %v1621_v10 = vsel %vm556_vm0, %v1598_v21, -inf  ;;  %v1656_v36 = vsel %vm1099_vm1, %v1592_v35, -inf  ;;  %v1663_v26 = vsel %vm1099_vm1, %v1594_v20, -inf  ;;  %v3460_v25 = vpop.xlane.xlu0 %1091 }
  0xc0   : > { %v1622_v54 = vrot.slane %v1621_v10, 4  ;;  %v1670_v48 = vsel %vm1099_vm1, %v1596_v60, -inf  ;;  %v1602_v41 = vmax.f32 %v1600_v62, %v1601_v49  ;;  %v1609_v29 = vmax.f32 %v1607_v47, %v1608_v8 }
  0xc1   : > { %1479 = vmax.xlane.f32.xlu0 %v3406_v61  ;;  %v1616_v50 = vmax.f32 %v1614_v24, %v1615_v42  ;;  %v1657_v56 = vrot.slane %v1656_v36, 4  ;;  %v1664_v34 = vrot.slane %v1663_v26, 4  ;;  %v1671_v63 = vrot.slane %v1670_v48, 4 }
  0xc2   : > { %v1623_v11 = vmax.f32 %v1621_v10, %v1622_v54  ;;  %v1677_v23 = vsel %vm1099_vm1, %v1598_v21, -inf  ;;  %v1603_v18 = vrot.slane %v1602_v41, 2  ;;  %v1610_v19 = vrot.slane %v1609_v29, 2 }
  0xc3   : > { %1540 = vmax.xlane.f32.xlu1 %v1539_v9  ;;  %v1617_v55 = vrot.slane %v1616_v50, 2  ;;  %v1658_v15 = vmax.f32 %v1656_v36, %v1657_v56  ;;  %v1665_v20 = vmax.f32 %v1663_v26, %v1664_v34  ;;  %v1672_v5 = vmax.f32 %v1670_v48, %v1671_v63 }
  0xc4   : > { %v1624_v35 = vrot.slane %v1623_v11, 2  ;;  %v1678_v60 = vrot.slane %v1677_v23, 4  ;;  %v1604_v61 = vmax.f32 %v1602_v41, %v1603_v18  ;;  %v1611_v62 = vmax.f32 %v1609_v29, %v1610_v19  ;;  %v3462_v19 = vpop.xlane.xlu0 %1137 }
  0xc5   : > { %1525 = vmax.xlane.f32.xlu0 %v1524_v44  ;;  %v1618_v47 = vmax.f32 %v1616_v50, %v1617_v55  ;;  %v1659_v24 = vrot.slane %v1658_v15, 2  ;;  %v1666_v49 = vrot.slane %v1665_v20, 2  ;;  %v1673_v8 = vrot.slane %v1672_v5, 2 }
  0xc6   : > { %v1625_v40 = vmax.f32 %v1623_v11, %v1624_v35  ;;  %v1679_v21 = vmax.f32 %v1677_v23, %v1678_v60  ;;  %v1605_v9 = vrot.slane %v1604_v61, 1  ;;  %v1612_v42 = vrot.slane %v1611_v62, 1 }
  0xc7   : > { %v1619_v10 = vrot.slane %v1618_v47, 1  ;;  %v1660_v54 = vmax.f32 %v1658_v15, %v1659_v24  ;;  %v1667_v56 = vmax.f32 %v1665_v20, %v1666_v49  ;;  %v1674_v26 = vmax.f32 %v1672_v5, %v1673_v8 }
  0xc8   : > { %v1626_v36 = vrot.slane %v1625_v40, 1  ;;  %v1680_v48 = vrot.slane %v1679_v21, 2  ;;  %v1606_v34 = vmax.f32 %v1604_v61, %v1605_v9  ;;  %v1613_v63 = vmax.f32 %v1611_v62, %v1612_v42 }
  0xc9   : > { %1535 = vmax.xlane.f32.xlu0 %v1534_v37  ;;  %v1620_v44 = vmax.f32 %v1618_v47, %v1619_v10  ;;  %v1661_v41 = vrot.slane %v1660_v54, 1  ;;  %v1668_v50 = vrot.slane %v1667_v56, 1  ;;  %v1675_v18 = vrot.slane %v1674_v26, 1 }
  0xca   : > { %v1627_v29 = vmax.f32 %v1625_v40, %v1626_v36  ;;  %v1681_v11 = vmax.f32 %v1679_v21, %v1680_v48  ;;  %v1632_v23 = vsel %vm549_vm2, %v1613_v63, %v1606_v34  ;;  %v1577_v15 = vmax.f32 %v1561_v53, %v3294_v58 }
  0xcb   : > { %v1662_v55 = vmax.f32 %v1660_v54, %v1661_v41  ;;  %v1579_v37 = vmax.f32 %v1563_v2, %v3297_v6  ;;  %v1633_v35 = vsel %vm551_vm3, %v1620_v44, %v1632_v23  ;;  %v1669_v20 = vmax.f32 %v1667_v56, %v1668_v50  ;;  %v3494_v2 = vpop.xlane.xlu0 %1145  ;;  %v3508_v50 = vpop.xlane.xlu1 %1086 }
  0xcc   : > { %v1676_v5 = vmax.f32 %v1674_v26, %v1675_v18  ;;  %v1682_v60 = vrot.slane %v1681_v11, 1  ;;  %v1634_v61 = vsel %vm553_vm4, %v1627_v29, %v1633_v35  ;;  %v1581_v62 = vmax.f32 %v1565_v0, %v3307_v1  ;;  %1088 = vst.msk [vmem:[%s3546_s23] sm:$0xf] %vm727_vm13, %v3508_v50 }
  0xcd   : > { %v1583_v30 = vmax.f32 %v1567_v4, %v3313_v46  ;;  %v1593_v33 = vmax.f32 %v1577_v15, %v3316_v17  ;;  %v1636_v39 = vsel %vm1079_vm6, %v1634_v61, -inf  ;;  %v1641_v12 = vsel %vm1084_vm5, %v1634_v61, -inf  ;;  %1093 = vst.msk [vmem:[%s3546_s23] sm:$0xf] %vm768_vm14, %v3460_v25 }
  0xce   : > { %v1646_v58 = vsel %vm1089_vm8, %v1634_v61, -inf  ;;  %v1651_v6 = vsel %vm1094_vm7, %v1634_v61, -inf  ;;  %1637 = vmax.xlane.f32.xlu0 %v1636_v39  ;;  %1642 = vmax.xlane.f32.xlu1 %v1641_v12  ;;  %v1683_v53 = vmax.f32 %v1681_v11, %v1682_v60  ;;  %v1688_v31 = vsel %vm549_vm2, %v1669_v20, %v1662_v55 }
  0xcf   : > { %v1595_v28 = vmax.f32 %v1579_v37, %v3319_v38  ;;  %v1712_v22 = vsel %vm556_vm0, %v1593_v33, -inf  ;;  %v1689_v3 = vsel %vm551_vm3, %v1676_v5, %v1688_v31  ;;  %v1597_v1 = vmax.f32 %v1581_v62, %v3331_v57 }
  0xd0   : > { %v1599_v46 = vmax.f32 %v1583_v30, %v3335_v16  ;;  %v1713_v17 = vrot.slane %v1712_v22, 4  ;;  %v1690_v0 = vsel %vm553_vm4, %v1683_v53, %v1689_v3  ;;  %v1768_v47 = vsel %vm1099_vm1, %v1593_v33, -inf  ;;  %v2612_v53 = vld [vmem:[%s2731_s19 + $0xd0] sm:$0xff] }
  0xd1   : > { %v1719_v4 = vsel %vm556_vm0, %v1595_v28, -inf  ;;  %v1775_v24 = vsel %vm1099_vm1, %v1595_v28, -inf  ;;  %v1692_v38 = vsel %vm1079_vm6, %v1690_v0, -inf  ;;  %v1697_v40 = vsel %vm1084_vm5, %v1690_v0, -inf  ;;  %v3510_v18 = vpop.xlane.xlu0 %1189 }
  0xd2   : > { %v1702_v49 = vsel %vm1089_vm8, %v1690_v0, -inf  ;;  %v1707_v57 = vsel %vm1094_vm7, %v1690_v0, -inf  ;;  %1647 = vmax.xlane.f32.xlu0 %v1646_v58  ;;  %1652 = vmax.xlane.f32.xlu1 %v1651_v6  ;;  %v1714_v16 = vmax.f32 %v1712_v22, %v1713_v17  ;;  %v1720_v8 = vrot.slane %v1719_v4, 4  ;;  %v2604_v6 = vld [vmem:[%s2731_s19 + $0xc0] sm:$0xff] }
  0xd3   : > { %v1726_v21 = vsel %vm556_vm0, %v1597_v1, -inf  ;;  %v1733_v9 = vsel %vm556_vm0, %v1599_v46, -inf  ;;  %v1769_v54 = vrot.slane %v1768_v47, 4  ;;  %v1776_v36 = vrot.slane %v1775_v24, 4 }
  0xd4   : > { %v1727_v42 = vrot.slane %v1726_v21, 4  ;;  %v1734_v10 = vrot.slane %v1733_v9, 4  ;;  %v1715_v56 = vrot.slane %v1714_v16, 2  ;;  %v1721_v26 = vmax.f32 %v1719_v4, %v1720_v8  ;;  %v2610_v8 = vld [vmem:[%s2731_s19 + $0x3c0] sm:$0xff] }
  0xd5   : > { %v1782_v48 = vsel %vm1099_vm1, %v1597_v1, -inf  ;;  %v1789_v34 = vsel %vm1099_vm1, %v1599_v46, -inf  ;;  %v1770_v41 = vmax.f32 %v1768_v47, %v1769_v54  ;;  %v1777_v29 = vmax.f32 %v1775_v24, %v1776_v36  ;;  %v2606_v1 = vld [vmem:[%s2731_s19 + $0x1c0] sm:$0xff]  ;;  %v2614_v24 = vld [vmem:[%s2731_s19 + $0x1d0] sm:$0xff] }
  0xd6   : > { %v1728_v63 = vmax.f32 %v1726_v21, %v1727_v42  ;;  %v1735_v44 = vmax.f32 %v1733_v9, %v1734_v10  ;;  %1693 = vmax.xlane.f32.xlu0 %v1692_v38  ;;  %1698 = vmax.xlane.f32.xlu1 %v1697_v40  ;;  %v1716_v11 = vmax.f32 %v1714_v16, %v1715_v56  ;;  %v1722_v23 = vrot.slane %v1721_v26, 2  ;;  %v2608_v47 = vld [vmem:[%s2731_s19 + $0x2c0] sm:$0xff]  ;;  %v3517_v38 = vpop.xlane.xlu1 %1096  ;;  %v3519_v40 = vpop.xlane.xlu0 %1199  ;;  %v2616_v21 = vld [vmem:[%s2731_s19 + $0x2d0] sm:$0xff] }
  0xd7   : > { %v1783_v55 = vrot.slane %v1782_v48, 4  ;;  %v1790_v15 = vrot.slane %v1789_v34, 4  ;;  %v1771_v20 = vrot.slane %v1770_v41, 2  ;;  %v1778_v5 = vrot.slane %v1777_v29, 2  ;;  %v2618_v9 = vld [vmem:[%s2731_s19 + $0x3d0] sm:$0xff] }
  0xd8   : > { %v1729_v37 = vrot.slane %v1728_v63, 2  ;;  %v1736_v35 = vrot.slane %v1735_v44, 2  ;;  %v1717_v60 = vrot.slane %v1716_v11, 1  ;;  %v1723_v61 = vmax.f32 %v1721_v26, %v1722_v23  ;;  %v2620_v26 = vld [vmem:[%s2731_s19 + $0xe0] sm:$0xff]  ;;  %1098 = vst.msk [vmem:[%s3546_s23] sm:$0xf] %vm773_vm15, %v3517_v38 }
  0xd9   : > { %v1784_v62 = vmax.f32 %v1782_v48, %v1783_v55  ;;  %v1791_v30 = vmax.f32 %v1789_v34, %v1790_v15  ;;  %v1772_v12 = vmax.f32 %v1770_v41, %v1771_v20  ;;  %v1779_v58 = vmax.f32 %v1777_v29, %v1778_v5  ;;  %v2622_v55 = vld [vmem:[%s2731_s19 + $0x1e0] sm:$0xff] }
  0xda   : > { %v1730_v33 = vmax.f32 %v1728_v63, %v1729_v37  ;;  %v1737_v39 = vmax.f32 %v1735_v44, %v1736_v35  ;;  %1703 = vmax.xlane.f32.xlu0 %v1702_v49  ;;  %1708 = vmax.xlane.f32.xlu1 %v1707_v57  ;;  %v1718_v31 = vmax.f32 %v1716_v11, %v1717_v60  ;;  %v1724_v28 = vrot.slane %v1723_v61, 1  ;;  %v2624_v15 = vld [vmem:[%s2731_s19 + $0x2e0] sm:$0xff] }
  0xdb   : > { %v1785_v22 = vrot.slane %v1784_v62, 2  ;;  %v1792_v3 = vrot.slane %v1791_v30, 2  ;;  %v1773_v0 = vrot.slane %v1772_v12, 1  ;;  %v1780_v4 = vrot.slane %v1779_v58, 1  ;;  %v2626_v37 = vld [vmem:[%s2731_s19 + $0x3e0] sm:$0xff] }
  0xdc   : > { %v1731_v46 = vrot.slane %v1730_v33, 1  ;;  %v1738_v17 = vrot.slane %v1737_v39, 1  ;;  %v1725_v49 = vmax.f32 %v1723_v61, %v1724_v28  ;;  %v1840_v42 = vmax.f32 %v2604_v6, %v2612_v53  ;;  %v2628_v61 = vld [vmem:[%s2731_s19 + $0xf0] sm:$0xff]  ;;  %v3553_v53 = vpop.xlane.xlu1 %1141 }
  0xdd   : > { %v1786_v57 = vmax.f32 %v1784_v62, %v1785_v22  ;;  %v1793_v16 = vmax.f32 %v1791_v30, %v1792_v3  ;;  %v1774_v36 = vmax.f32 %v1772_v12, %v1773_v0  ;;  %v1781_v56 = vmax.f32 %v1779_v58, %v1780_v4  ;;  %v3537_v62 = vld [vmem:[%s2731_s19 + $0xc8] sm:$0xff]  ;;  %v3540_v30 = vld [vmem:[%s2731_s19 + $0xd8] sm:$0xff]  ;;  %v2630_v6 = vld [vmem:[%s2731_s19 + $0x1f0] sm:$0xff] }
  0xde   : > { %v1732_v10 = vmax.f32 %v1730_v33, %v1731_v46  ;;  %v1739_v54 = vmax.f32 %v1737_v39, %v1738_v17  ;;  %v1744_v48 = vsel %vm549_vm2, %v1725_v49, %v1718_v31  ;;  %v1842_v44 = vmax.f32 %v2606_v1, %v2614_v24  ;;  %v3555_v31 = vpop.xlane.xlu0 %1245  ;;  %v2632_v1 = vld [vmem:[%s2731_s19 + $0x2f0] sm:$0xff]  ;;  %v3561_v17 = vld [vmem:[%s2731_s19 + $0x1c8] sm:$0xff]  ;;  %v3568_v49 = vld [vmem:[%s2731_s19 + $0x1d8] sm:$0xff] }
  0xdf   : > { %v1787_v34 = vrot.slane %v1786_v57, 1  ;;  %v1794_v63 = vrot.slane %v1793_v16, 1  ;;  %v1800_v29 = vsel %vm549_vm2, %v1781_v56, %v1774_v36  ;;  %v1844_v11 = vmax.f32 %v2608_v47, %v2616_v21  ;;  %v2634_v46 = vld [vmem:[%s2731_s19 + $0x3f0] sm:$0xff]  ;;  %v3565_v24 = vld [vmem:[%s2731_s19 + $0x2c8] sm:$0xff] }
  0xe0   : > { %v1745_v41 = vsel %vm551_vm3, %v1732_v10, %v1744_v48  ;;  %v1846_v23 = vmax.f32 %v2610_v8, %v2618_v9  ;;  %v1856_v60 = vmax.f32 %v1840_v42, %v2620_v26  ;;  %v1858_v22 = vmax.f32 %v1842_v44, %v2622_v55 }
  0xe1   : > { %v1746_v35 = vsel %vm553_vm4, %v1739_v54, %v1745_v41  ;;  %v1788_v20 = vmax.f32 %v1786_v57, %v1787_v34  ;;  %v1795_v5 = vmax.f32 %v1793_v16, %v1794_v63  ;;  %v1860_v3 = vmax.f32 %v1844_v11, %v2624_v15  ;;  %v3571_v57 = vld [vmem:[%s2731_s19 + $0x2d8] sm:$0xff]  ;;  %v3597_v11 = vpop.xlane.xlu1 %1149 }
  0xe2   : > { %v1748_v33 = vsel %vm1079_vm6, %v1746_v35, -inf  ;;  %v1753_v39 = vsel %vm1084_vm5, %v1746_v35, -inf  ;;  %v1758_v12 = vsel %vm1089_vm8, %v1746_v35, -inf  ;;  %v1763_v58 = vsel %vm1094_vm7, %v1746_v35, -inf }
  0xe3   : > { %1749 = vmax.xlane.f32.xlu0 %v1748_v33  ;;  %1754 = vmax.xlane.f32.xlu1 %v1753_v39  ;;  %v1801_v28 = vsel %vm551_vm3, %v1788_v20, %v1800_v29  ;;  %v1862_v4 = vmax.f32 %v1846_v23, %v2626_v37  ;;  %v1872_v47 = vmax.f32 %v1856_v60, %v2628_v61 }
  0xe4   : > { %v1802_v0 = vsel %vm553_vm4, %v1795_v5, %v1801_v28  ;;  %v1841_v16 = vmax.f32 %v3537_v62, %v3540_v30  ;;  %v1874_v10 = vmax.f32 %v1858_v22, %v2630_v6  ;;  %v1876_v54 = vmax.f32 %v1860_v3, %v2632_v1 }
  0xe5   : > { %v1804_v8 = vsel %vm1079_vm6, %v1802_v0, -inf  ;;  %v1809_v21 = vsel %vm1084_vm5, %v1802_v0, -inf  ;;  %v1814_v9 = vsel %vm1089_vm8, %v1802_v0, -inf  ;;  %v1819_v42 = vsel %vm1094_vm7, %v1802_v0, -inf }
  0xe6   : > { %v1878_v36 = vmax.f32 %v1862_v4, %v2634_v46  ;;  %v1880_v56 = vsel %vm556_vm0, %v1872_v47, -inf  ;;  %v1936_v26 = vsel %vm1099_vm1, %v1872_v47, -inf  ;;  %v1843_v48 = vmax.f32 %v3561_v17, %v3568_v49 }
  0xe7   : > { %1759 = vmax.xlane.f32.xlu0 %v1758_v12  ;;  %1764 = vmax.xlane.f32.xlu1 %v1763_v58  ;;  %v1881_v7 = vrot.slane %v1880_v56, 4  ;;  %v1845_v34 = vmax.f32 %v3565_v24, %v3571_v57  ;;  %v1887_v63 = vsel %vm556_vm0, %v1874_v10, -inf  ;;  %v1894_v44 = vsel %vm556_vm0, %v1876_v54, -inf }
  0xe8   : > { %v1901_v41 = vsel %vm556_vm0, %v1878_v36, -inf  ;;  %v1937_v29 = vrot.slane %v1936_v26, 4  ;;  %v721_v23 = vpop.xlane.xlu0 %720  ;;  %v1888_v15 = vrot.slane %v1887_v63, 4  ;;  %v1895_v37 = vrot.slane %v1894_v44, 4 }
  0xe9   : > { %v1882_v55 = vmax.f32 %v1880_v56, %v1881_v7  ;;  %v1902_v35 = vrot.slane %v1901_v41, 4  ;;  %722 = vst.msk [vmem:[%s3587_s26] sm:$0xf] %vm560_vm12, %v721_v23  ;;  %v1943_v5 = vsel %vm1099_vm1, %v1874_v10, -inf  ;;  %v1950_v60 = vsel %vm1099_vm1, %v1876_v54, -inf  ;;  %v3607_v23 = vld [vmem:[%s2731_s19 + $0x3c8] sm:$0xff] }
  0xea   : > { %v1938_v20 = vmax.f32 %v1936_v26, %v1937_v29  ;;  %v1957_v61 = vsel %vm1099_vm1, %v1878_v36, -inf  ;;  %v1889_v39 = vmax.f32 %v1887_v63, %v1888_v15  ;;  %v1896_v12 = vmax.f32 %v1894_v44, %v1895_v37 }
  0xeb   : > { %1805 = vmax.xlane.f32.xlu0 %v1804_v8  ;;  %1810 = vmax.xlane.f32.xlu1 %v1809_v21  ;;  %v1883_v33 = vrot.slane %v1882_v55, 2  ;;  %v1903_v58 = vmax.f32 %v1901_v41, %v1902_v35  ;;  %v1944_v28 = vrot.slane %v1943_v5, 4  ;;  %v1951_v22 = vrot.slane %v1950_v60, 4  ;;  %v3604_v8 = vpop.xlane.xlu1 %1194 }
  0xec   : > { %v1939_v6 = vrot.slane %v1938_v20, 2  ;;  %v1958_v3 = vrot.slane %v1957_v61, 4  ;;  %v1890_v46 = vrot.slane %v1889_v39, 2  ;;  %v1897_v0 = vrot.slane %v1896_v12, 2 }
  0xed   : > { %v1884_v1 = vmax.f32 %v1882_v55, %v1883_v33  ;;  %v1904_v4 = vrot.slane %v1903_v58, 2  ;;  %v1945_v10 = vmax.f32 %v1943_v5, %v1944_v28  ;;  %v1952_v54 = vmax.f32 %v1950_v60, %v1951_v22  ;;  %v3610_v55 = vld [vmem:[%s2731_s19 + $0x3d8] sm:$0xff] }
  0xee   : > { %v1940_v47 = vmax.f32 %v1938_v20, %v1939_v6  ;;  %v1959_v36 = vmax.f32 %v1957_v61, %v1958_v3  ;;  %v1891_v56 = vmax.f32 %v1889_v39, %v1890_v46  ;;  %v1898_v7 = vmax.f32 %v1896_v12, %v1897_v0 }
  0xef   : > { %1815 = vmax.xlane.f32.xlu0 %v1814_v9  ;;  %1820 = vmax.xlane.f32.xlu1 %v1819_v42  ;;  %v1885_v21 = vrot.slane %v1884_v1, 1  ;;  %v1905_v26 = vmax.f32 %v1903_v58, %v1904_v4  ;;  %v1946_v44 = vrot.slane %v1945_v10, 2  ;;  %v1953_v41 = vrot.slane %v1952_v54, 2  ;;  %v3618_v3 = vpop.xlane.xlu1 %1204 }
  0xf0   : > { %v1941_v63 = vrot.slane %v1940_v47, 1  ;;  %v1960_v29 = vrot.slane %v1959_v36, 2  ;;  %v1892_v37 = vrot.slane %v1891_v56, 1  ;;  %v1899_v35 = vrot.slane %v1898_v7, 1 }
  0xf1   : > { %v1886_v15 = vmax.f32 %v1884_v1, %v1885_v21  ;;  %v1906_v20 = vrot.slane %v1905_v26, 1  ;;  %v1947_v60 = vmax.f32 %v1945_v10, %v1946_v44  ;;  %v1954_v9 = vmax.f32 %v1952_v54, %v1953_v41 }
  0xf2   : > { %v1942_v5 = vmax.f32 %v1940_v47, %v1941_v63  ;;  %v1961_v42 = vmax.f32 %v1959_v36, %v1960_v29  ;;  %v1893_v61 = vmax.f32 %v1891_v56, %v1892_v37  ;;  %v1900_v33 = vmax.f32 %v1898_v7, %v1899_v35 }
  0xf3   : > { %v1907_v39 = vmax.f32 %v1905_v26, %v1906_v20  ;;  %v1847_v12 = vmax.f32 %v3607_v23, %v3610_v55  ;;  %v1948_v58 = vrot.slane %v1947_v60, 1  ;;  %v1955_v6 = vrot.slane %v1954_v9, 1  ;;  %v3645_v41 = vpop.xlane.xlu1 %1250 }
  0xf4   : > { %v1962_v28 = vrot.slane %v1961_v42, 1  ;;  %v1857_v22 = vmax.f32 %v1841_v16, %v3355_v59  ;;  %v1912_v1 = vsel %vm549_vm2, %v1893_v61, %v1886_v15  ;;  %v1859_v46 = vmax.f32 %v1843_v48, %v3358_v27 }
  0xf5   : > { %v1861_v0 = vmax.f32 %v1845_v34, %v3361_v51  ;;  %v1863_v4 = vmax.f32 %v1847_v12, %v3364_v52  ;;  %v1913_v47 = vsel %vm551_vm3, %v1900_v33, %v1912_v1  ;;  %v1949_v10 = vmax.f32 %v1947_v60, %v1948_v58 }
  0xf6   : > { %v1956_v59 = vmax.f32 %v1954_v9, %v1955_v6  ;;  %v1963_v16 = vmax.f32 %v1961_v42, %v1962_v28  ;;  %v1914_v54 = vsel %vm553_vm4, %v1907_v39, %v1913_v47  ;;  %v1873_v36 = vmax.f32 %v1857_v22, %v3367_v45 }
  0xf7   : > { %v1875_v21 = vmax.f32 %v1859_v46, %v3370_v32  ;;  %v1877_v27 = vmax.f32 %v1861_v0, %v3375_v13  ;;  %v1916_v48 = vsel %vm1079_vm6, %v1914_v54, -inf  ;;  %v1921_v56 = vsel %vm1084_vm5, %v1914_v54, -inf }
  0xf8   : > { %v1926_v51 = vsel %vm1089_vm8, %v1914_v54, -inf  ;;  %v1931_v52 = vsel %vm1094_vm7, %v1914_v54, -inf  ;;  %1917 = vmax.xlane.f32.xlu0 %v1916_v48  ;;  %1922 = vmax.xlane.f32.xlu1 %v1921_v56  ;;  %v1968_v34 = vsel %vm549_vm2, %v1949_v10, %v1942_v5  ;;  %v1879_v7 = vmax.f32 %v1863_v4, %v3379_v14 }
  0xf9   : > { %v1992_v45 = vsel %vm556_vm0, %v1873_v36, -inf  ;;  %v1999_v32 = vsel %vm556_vm0, %v1875_v21, -inf  ;;  %v1969_v13 = vsel %vm551_vm3, %v1956_v59, %v1968_v34  ;;  %v2006_v44 = vsel %vm556_vm0, %v1877_v27, -inf  ;;  %v3657_v59 = vpop.xlane.xlu1 %725 }
  0xfa   : > { %v1993_v26 = vrot.slane %v1992_v45, 4  ;;  %v2000_v63 = vrot.slane %v1999_v32, 4  ;;  %v1970_v29 = vsel %vm553_vm4, %v1963_v16, %v1969_v13  ;;  %v2007_v15 = vrot.slane %v2006_v44, 4  ;;  %728 = vst.msk [vmem:[%s3587_s26] sm:$0xf] %vm727_vm13, %v3657_v59 }
  0xfb   : > { %v2013_v37 = vsel %vm556_vm0, %v1879_v7, -inf  ;;  %v2048_v35 = vsel %vm1099_vm1, %v1873_v36, -inf  ;;  %v1972_v14 = vsel %vm1079_vm6, %v1970_v29, -inf  ;;  %v1977_v20 = vsel %vm1084_vm5, %v1970_v29, -inf }
  0xfc   : > { %v1982_v5 = vsel %vm1089_vm8, %v1970_v29, -inf  ;;  %v1987_v60 = vsel %vm1094_vm7, %v1970_v29, -inf  ;;  %1927 = vmax.xlane.f32.xlu0 %v1926_v51  ;;  %1932 = vmax.xlane.f32.xlu1 %v1931_v52  ;;  %v1994_v9 = vmax.f32 %v1992_v45, %v1993_v26  ;;  %v2001_v42 = vmax.f32 %v1999_v32, %v2000_v63  ;;  %v2453_v32 = vld [vmem:[%s2731_s19 + $0x88] sm:$0xff] }
  0xfd   : > { %v2008_v61 = vmax.f32 %v2006_v44, %v2007_v15  ;;  %v2014_v33 = vrot.slane %v2013_v37, 4  ;;  %v2049_v39 = vrot.slane %v2048_v35, 4  ;;  %v2055_v12 = vsel %vm1099_vm1, %v1875_v21, -inf  ;;  %v2455_v29 = vld [vmem:[%s2731_s19 + $0x188] sm:$0xff]  ;;  %v2461_v15 = vld [vmem:[%s2731_s19 + $0x98] sm:$0xff] }
  0xfe   : > { %v2062_v58 = vsel %vm1099_vm1, %v1877_v27, -inf  ;;  %v2069_v6 = vsel %vm1099_vm1, %v1879_v7, -inf  ;;  %v1995_v28 = vrot.slane %v1994_v9, 2  ;;  %v2002_v22 = vrot.slane %v2001_v42, 2 }
  0xff   : > { %v2009_v1 = vrot.slane %v2008_v61, 2  ;;  %v2015_v46 = vmax.f32 %v2013_v37, %v2014_v33  ;;  %v2050_v0 = vmax.f32 %v2048_v35, %v2049_v39  ;;  %v2056_v4 = vrot.slane %v2055_v12, 4  ;;  %v2463_v37 = vld [vmem:[%s2731_s19 + $0x198] sm:$0xff] }
 0x100   : > { %v2063_v47 = vrot.slane %v2062_v58, 4  ;;  %v2070_v10 = vrot.slane %v2069_v6, 4  ;;  %1973 = vmax.xlane.f32.xlu0 %v1972_v14  ;;  %1978 = vmax.xlane.f32.xlu1 %v1977_v20  ;;  %v1996_v16 = vmax.f32 %v1994_v9, %v1995_v28  ;;  %v2003_v54 = vmax.f32 %v2001_v42, %v2002_v22  ;;  %v2457_v42 = vld [vmem:[%s2731_s19 + $0x288] sm:$0xff]  ;;  %v2467_v28 = vld [vmem:[%s2731_s19 + $0x398] sm:$0xff]  ;;  %v767_v22 = vpop.xlane.xlu1 %766 }
 0x101   : > { %v2010_v36 = vmax.f32 %v2008_v61, %v2009_v1  ;;  %v2016_v21 = vrot.slane %v2015_v46, 2  ;;  %v2051_v27 = vrot.slane %v2050_v0, 2  ;;  %v2057_v48 = vmax.f32 %v2055_v12, %v2056_v4  ;;  %769 = vst.msk [vmem:[%s3587_s26] sm:$0xf] %vm768_vm14, %v767_v22 }
 0x102   : > { %v2064_v56 = vmax.f32 %v2062_v58, %v2063_v47  ;;  %v2071_v51 = vmax.f32 %v2069_v6, %v2070_v10  ;;  %v1997_v52 = vrot.slane %v1996_v16, 1  ;;  %v2004_v34 = vrot.slane %v2003_v54, 1  ;;  %v2459_v58 = vld [vmem:[%s2731_s19 + $0x388] sm:$0xff]  ;;  %v2465_v6 = vld [vmem:[%s2731_s19 + $0x298] sm:$0xff] }
 0x103   : > { %v2011_v7 = vrot.slane %v2010_v36, 1  ;;  %v2017_v45 = vmax.f32 %v2015_v46, %v2016_v21  ;;  %v2052_v13 = vmax.f32 %v2050_v0, %v2051_v27  ;;  %v2058_v26 = vrot.slane %v2057_v48, 2  ;;  %v772_v0 = vpop.xlane.xlu0 %771 }
 0x104   : > { %v2065_v63 = vrot.slane %v2064_v56, 2  ;;  %v2072_v44 = vrot.slane %v2071_v51, 2  ;;  %1983 = vmax.xlane.f32.xlu0 %v1982_v5  ;;  %1988 = vmax.xlane.f32.xlu1 %v1987_v60  ;;  %v1998_v35 = vmax.f32 %v1996_v16, %v1997_v52  ;;  %v2005_v14 = vmax.f32 %v2003_v54, %v2004_v34  ;;  %v2469_v54 = vld [vmem:[%s2731_s19 + $0xa8] sm:$0xff]  ;;  %774 = vst.msk [vmem:[%s3587_s26] sm:$0xf] %vm773_vm15, %v772_v0 }
 0x105   : > { %v2012_v20 = vmax.f32 %v2010_v36, %v2011_v7  ;;  %v2018_v9 = vrot.slane %v2017_v45, 1  ;;  %v2053_v61 = vrot.slane %v2052_v13, 1  ;;  %v2059_v33 = vmax.f32 %v2057_v48, %v2058_v26  ;;  %v2475_v52 = vld [vmem:[%s2731_s19 + $0x3a8] sm:$0xff] }
 0x106   : > { %v2066_v39 = vmax.f32 %v2064_v56, %v2065_v63  ;;  %v2073_v12 = vmax.f32 %v2071_v51, %v2072_v44  ;;  %v2024_v5 = vsel %vm549_vm2, %v2005_v14, %v1998_v35  ;;  %v792_v60 = vmax.f32 %v2453_v32, %v2461_v15  ;;  %v2471_v56 = vld [vmem:[%s2731_s19 + $0x1a8] sm:$0xff]  ;;  %v2477_v44 = vld [vmem:[%s2731_s19 + $0xb8] sm:$0xff] }
 0x107   : > { %v2019_v1 = vmax.f32 %v2017_v45, %v2018_v9  ;;  %v794_v46 = vmax.f32 %v2455_v29, %v2463_v37  ;;  %v2025_v4 = vsel %vm551_vm3, %v2012_v20, %v2024_v5  ;;  %v2054_v47 = vmax.f32 %v2052_v13, %v2053_v61  ;;  %v2473_v51 = vld [vmem:[%s2731_s19 + $0x2a8] sm:$0xff]  ;;  %v2479_v29 = vld [vmem:[%s2731_s19 + $0x1b8] sm:$0xff] }
 0x108   : > { %v2060_v10 = vrot.slane %v2059_v33, 1  ;;  %v2067_v16 = vrot.slane %v2066_v39, 1  ;;  %v2074_v21 = vrot.slane %v2073_v12, 1  ;;  %v796_v27 = vmax.f32 %v2457_v42, %v2465_v6  ;;  %v2481_v15 = vld [vmem:[%s2731_s19 + $0x2b8] sm:$0xff]  ;;  %v2507_v0 = vld [vmem:[%s2731_s19 + $0x3e8] sm:$0xff] }
 0x109   : > { %v2026_v36 = vsel %vm553_vm4, %v2019_v1, %v2025_v4  ;;  %v798_v48 = vmax.f32 %v2459_v58, %v2467_v28  ;;  %v808_v37 = vmax.f32 %v792_v60, %v2469_v54  ;;  %v810_v35 = vmax.f32 %v794_v46, %v2471_v56  ;;  %v2483_v9 = vld [vmem:[%s2731_s19 + $0x3b8] sm:$0xff]  ;;  %v2501_v46 = vld [vmem:[%s2731_s19 + $0xe8] sm:$0xff] }
 0x10a   : > { %v2028_v34 = vsel %vm1079_vm6, %v2026_v36, -inf  ;;  %v2033_v7 = vsel %vm1084_vm5, %v2026_v36, -inf  ;;  %v2038_v45 = vsel %vm1089_vm8, %v2026_v36, -inf  ;;  %v2043_v32 = vsel %vm1094_vm7, %v2026_v36, -inf }
 0x10b   : > { %2029 = vmax.xlane.f32.xlu0 %v2028_v34  ;;  %2034 = vmax.xlane.f32.xlu1 %v2033_v7  ;;  %v2061_v13 = vmax.f32 %v2059_v33, %v2060_v10  ;;  %v2068_v26 = vmax.f32 %v2066_v39, %v2067_v16  ;;  %v2075_v63 = vmax.f32 %v2073_v12, %v2074_v21  ;;  %vm934_vm0 = vcmask 35872   ;;  %v3687_v33 = vpop.xlane.xlu0 %1255  ;;  %v2513_v10 = vld [vmem:[%s2731_s19 + $0x2f8] sm:$0xff] }
 0x10c   : > { %v812_v14 = vmax.f32 %v796_v27, %v2473_v51  ;;  %v814_v20 = vmax.f32 %v798_v48, %v2475_v52  ;;  %v933_v42 = vpop.xlane.xlu1 %932  ;;  %v824_v12 = vmax.f32 %v808_v37, %v2477_v44  ;;  %v826_v58 = vmax.f32 %v810_v35, %v2479_v29  ;;  %1139 = vst.msk [vmem:[%s3546_s23] sm:$0xf] %vm934_vm0, %v3462_v19  ;;  %v2515_v16 = vld [vmem:[%s2731_s19 + $0x3f8] sm:$0xff] }
 0x10d   : > { %v2080_v61 = vsel %vm549_vm2, %v2061_v13, %v2054_v47  ;;  %vm939_vm1 = vcmask 44072   ;;  %vm3853_vm13 = vcmask 52272   ;;  %v936_v28 = vsel %vm723_vm10, %v3166_v43, -inf  ;;  %935 = vst.msk [vmem:[%s3587_s26] sm:$0xf] %vm934_vm0, %v933_v42  ;;  %v2503_v43 = vld [vmem:[%s2731_s19 + $0x1e8] sm:$0xff] }
 0x10e   : > { %v2081_v39 = vsel %vm551_vm3, %v2068_v26, %v2080_v61  ;;  %v828_v6 = vmax.f32 %v812_v14, %v2481_v15  ;;  %v830_v59 = vmax.f32 %v814_v20, %v2483_v9  ;;  %v840_v22 = vmax.f32 %v824_v12, %v3537_v62  ;;  %1143 = vst.msk [vmem:[%s3546_s23] sm:$0xf] %vm939_vm1, %v3553_v53 }
 0x10f   : > { %2039 = vmax.xlane.f32.xlu0 %v2038_v45  ;;  %2044 = vmax.xlane.f32.xlu1 %v2043_v32  ;;  %v3694_v50 = vsel %vm553_vm4, %v2075_v63, %v2081_v39  ;;  %v842_v1 = vmax.f32 %v826_v58, %v3561_v17  ;;  %v2505_v17 = vld [vmem:[%s2731_s19 + $0x2e8] sm:$0xff]  ;;  %1147 = vst.msk [vmem:[%s3546_s23] sm:$0xf] %vm3853_vm13, %v3494_v2  ;;  %vm1191_vm14 = vcmask 68672   ;;  %vm1196_vm15 = vcmask 76872  }
 0x110   : > { %v2084_v25 = vsel %vm1079_vm6, %v3694_v50, -inf  ;;  %v3712_v38 = vpop.xlane.xlu1 %1260  ;;  %v844_v5 = vmax.f32 %v828_v6, %v3565_v24  ;;  %v846_v60 = vmax.f32 %v830_v59, %v3607_v23  ;;  %v856_v62 = vmax.f32 %v840_v22, %v3540_v30  ;;  %v2509_v23 = vld [vmem:[%s2731_s19 + $0xf8] sm:$0xff] }
 0x111   : > { %v858_v19 = vmax.f32 %v842_v1, %v3568_v49  ;;  %vm3854_vm6 = vcmask 60472   ;;  %v2511_v30 = vld [vmem:[%s2731_s19 + $0x1f8] sm:$0xff]  ;;  %vm1201_vm0 = vcmask 85072   ;;  %v2089_v2 = vsel %vm1084_vm5, %v3694_v50, -inf }
 0x112   : > { %v860_v24 = vmax.f32 %v844_v5, %v3571_v57  ;;  %v862_v53 = vmax.f32 %v846_v60, %v3610_v55  ;;  %1151 = vst.msk [vmem:[%s3546_s23] sm:$0xf] %vm3854_vm6, %v3597_v11  ;;  %v872_v4 = vmax.f32 %v856_v62, %v2501_v46  ;;  %vm1206_vm13 = vcmask 93272  }
 0x113   : > { %2085 = vmax.xlane.f32.xlu0 %v2084_v25  ;;  %937 = vmax.xlane.f32.xlu1 %v936_v28  ;;  %v874_v47 = vmax.f32 %v858_v19, %v2503_v43  ;;  %1192 = vst.msk [vmem:[%s3546_s23] sm:$0xf] %vm1191_vm14, %v3510_v18  ;;  %vm1247_vm6 = vcmask 101472   ;;  %vm1252_vm5 = vcmask 109672   ;;  %v2094_v18 = vsel %vm1089_vm8, %v3694_v50, -inf }
 0x114   : > { %v1358_v49 = vpop.xlane.xlu0 %1357  ;;  %v1363_v57 = vpop.xlane.xlu1 %1362  ;;  %v876_v55 = vmax.f32 %v860_v24, %v2505_v17  ;;  %v878_v54 = vmax.f32 %v862_v53, %v2507_v0  ;;  %1197 = vst.msk [vmem:[%s3546_s23] sm:$0xf] %vm1196_vm15, %v3604_v8  ;;  %v888_v11 = vmax.f32 %v872_v4, %v2509_v23  ;;  %vm1257_vm14 = vcmask 117872  }
 0x115   : > { %v890_v36 = vmax.f32 %v874_v47, %v2511_v30  ;;  %1202 = vst.msk [vmem:[%s3546_s23] sm:$0xf] %vm1201_vm0, %v3519_v40  ;;  %vm1262_vm15 = vcmask 126072   ;;  %vm1359_vm0 = vcmask 134272   ;;  %vm1364_vm8 = vcmask 142472  }
 0x116   : > { %v892_v21 = vmax.f32 %v876_v55, %v2513_v10  ;;  %v894_v27 = vmax.f32 %v878_v54, %v2515_v16  ;;  %1207 = vst.msk [vmem:[%s3546_s23] sm:$0xf] %vm1206_vm13, %v3618_v3  ;;  %v941_v8 = vsel %vm508_vm9, %v888_v11, -inf  ;;  %vm1369_vm13 = vcmask 150672  }
 0x117   : > { %2090 = vmax.xlane.f32.xlu0 %v2089_v2  ;;  %v948_v56 = vsel %vm508_vm9, %v890_v36, -inf  ;;  %1248 = vst.msk [vmem:[%s3546_s23] sm:$0xf] %vm1247_vm6, %v3555_v31  ;;  %v942_v51 = vrot.slane %v941_v8, 4  ;;  %v2099_v63 = vsel %vm1094_vm7, %v3694_v50, -inf  ;;  %vm1415_vm6 = vcmask 167072  }
 0x118   : > { %v1368_v48 = vpop.xlane.xlu0 %1367  ;;  %v1373_v40 = vpop.xlane.xlu1 %1372  ;;  %v949_v52 = vrot.slane %v948_v56, 4  ;;  %v955_v34 = vsel %vm508_vm9, %v892_v21, -inf  ;;  %v962_v3 = vsel %vm508_vm9, %v894_v27, -inf  ;;  %1253 = vst.msk [vmem:[%s3546_s23] sm:$0xf] %vm1252_vm5, %v3645_v41  ;;  %vm1374_vm9 = vcmask 158872  }
 0x119   : > { %v956_v7 = vrot.slane %v955_v34, 4  ;;  %v963_v45 = vrot.slane %v962_v3, 4  ;;  %1258 = vst.msk [vmem:[%s3546_s23] sm:$0xf] %vm1257_vm14, %v3687_v33  ;;  %v943_v31 = vmax.f32 %v941_v8, %v942_v51  ;;  %vm1420_vm5 = vcmask 175272  }
 0x11a   : > { %v950_v32 = vmax.f32 %v948_v56, %v949_v52  ;;  %1263 = vst.msk [vmem:[%s3546_s23] sm:$0xf] %vm1262_vm15, %v3712_v38  ;;  %vm1425_vm7 = vcmask 183472   ;;  %vm1430_vm14 = vcmask 191672   ;;  %vm1537_vm15 = vcmask 249072  }
 0x11b   : > { %2095 = vmax.xlane.f32.xlu0 %v2094_v18  ;;  %v957_v13 = vmax.f32 %v955_v34, %v956_v7  ;;  %v964_v26 = vmax.f32 %v962_v3, %v963_v45  ;;  %1360 = vst.msk [vmem:[%s3546_s23] sm:$0xf] %vm1359_vm0, %v1358_v49  ;;  %v944_v41 = vrot.slane %v943_v31, 2  ;;  %vm1542_vm0 = vcmask 257272  }
 0x11c   : > { %v951_v44 = vrot.slane %v950_v32, 2  ;;  %1365 = vst.msk [vmem:[%s3546_s23] sm:$0xf] %vm1364_vm8, %v1363_v57  ;;  %vm1639_vm8 = vcmask 265472  }
 0x11d   : > { %v958_v37 = vrot.slane %v957_v13, 2  ;;  %v965_v35 = vrot.slane %v964_v26, 2  ;;  %1370 = vst.msk [vmem:[%s3546_s23] sm:$0xf] %vm1369_vm13, %v1368_v48  ;;  %v945_v14 = vmax.f32 %v943_v31, %v944_v41  ;;  %vm1644_vm13 = vcmask 273672  }
 0x11e   : > { %v1414_v29 = vpop.xlane.xlu0 %1413  ;;  %v1419_v15 = vpop.xlane.xlu1 %1418  ;;  %v952_v20 = vmax.f32 %v950_v32, %v951_v44  ;;  %1375 = vst.msk [vmem:[%s3546_s23] sm:$0xf] %vm1374_vm9, %v1373_v40  ;;  %vm1649_vm9 = vcmask 281872  }
 0x11f   : > { %2100 = vmax.xlane.f32.xlu0 %v2099_v63  ;;  %v959_v9 = vmax.f32 %v957_v13, %v958_v37  ;;  %v966_v42 = vmax.f32 %v964_v26, %v965_v35  ;;  %1416 = vst.msk [vmem:[%s3546_s23] sm:$0xf] %vm1415_vm6, %v1414_v29  ;;  %v946_v61 = vrot.slane %v945_v14, 1  ;;  %vm1654_vm6 = vcmask 290072  }
 0x120   : > { %v953_v33 = vrot.slane %v952_v20, 1  ;;  %1421 = vst.msk [vmem:[%s3546_s23] sm:$0xf] %vm1420_vm5, %v1419_v15  ;;  %vm1695_vm5 = vcmask 298272  }
 0x121   : > { %v960_v58 = vrot.slane %v959_v9, 1  ;;  %v967_v6 = vrot.slane %v966_v42, 1  ;;  %v947_v50 = vmax.f32 %v945_v14, %v946_v61 }
 0x122   : > { %v1424_v39 = vpop.xlane.xlu0 %1423  ;;  %v1429_v12 = vpop.xlane.xlu1 %1428  ;;  %v954_v59 = vmax.f32 %v952_v20, %v953_v33 }
 0x123   : > { %1426 = vst.msk [vmem:[%s3546_s23] sm:$0xf] %vm1425_vm7, %v1424_v39  ;;  %v961_v25 = vmax.f32 %v959_v9, %v960_v58  ;;  %v968_v28 = vmax.f32 %v966_v42, %v967_v6  ;;  %vm1700_vm7 = vcmask 306472  }
 0x124   : > { %1431 = vst.msk [vmem:[%s3546_s23] sm:$0xf] %vm1430_vm14, %v1429_v12  ;;  %v973_v22 = vsel %vm549_vm2, %v954_v59, %v947_v50  ;;  %vm1471_vm2 = vcmask 199872   ;;  %vm1705_vm14 = vcmask 314672  }
 0x125   : > { %v974_v1 = vsel %vm551_vm3, %v961_v25, %v973_v22  ;;  %vm1476_vm3 = vcmask 208072  }
 0x126   : > { %v975_v38 = vsel %vm553_vm4, %v968_v28, %v974_v1  ;;  %vm1481_vm4 = vcmask 216272  }
 0x127   : > { %v977_v5 = vsel %vm718_vm11, %v975_v38, -inf  ;;  %v982_v60 = vsel %vm723_vm10, %v975_v38, -inf  ;;  %vm1486_vm10 = vcmask 224472   ;;  %vm1527_vm11 = vcmask 232672  }
 0x128   : > { %978 = vmax.xlane.f32.xlu1 %v977_v5 }
 0x12c   : > { %983 = vmax.xlane.f32.xlu1 %v982_v60 }
 0x13a   : > { %v1475_v46 = vpop.xlane.xlu1 %1474 }
 0x13e   : > { %v1485_v62 = vpop.xlane.xlu1 %1484 }
 0x146   : > { %v559_v43 = vpop.xlane.xlu0 %558 }
 0x147   : > { %561 = vst.msk [vmem:[%s230_s29] sm:$0xf] %vm560_vm12, %v559_v43  ;;  %vm1532_vm12 = vcmask 240872  }
 0x14a   : > { %v1470_v19 = vpop.xlane.xlu0 %1469 }
 0x14b   : > { %1472 = vst.msk [vmem:[%s3546_s23] sm:$0xf] %vm1471_vm2, %v1470_v19  ;;  %vm1710_vm2 = vcmask 322872  }
 0x14c   : > { %1477 = vst.msk [vmem:[%s3546_s23] sm:$0xf] %vm1476_vm3, %v1475_v46  ;;  %v1531_v0 = vpop.xlane.xlu1 %1530  ;;  %vm1751_vm3 = vcmask 331072  }
 0x14e   : > { %v1480_v17 = vpop.xlane.xlu0 %1479 }
 0x14f   : > { %1482 = vst.msk [vmem:[%s3546_s23] sm:$0xf] %vm1481_vm4, %v1480_v17  ;;  %vm1756_vm4 = vcmask 339272  }
 0x150   : > { %1487 = vst.msk [vmem:[%s3546_s23] sm:$0xf] %vm1486_vm10, %v1485_v62  ;;  %v1541_v53 = vpop.xlane.xlu1 %1540  ;;  %vm1761_vm10 = vcmask 347472  }
 0x152   : > { %v1526_v24 = vpop.xlane.xlu0 %1525 }
 0x153   : > { %1528 = vst.msk [vmem:[%s3546_s23] sm:$0xf] %vm1527_vm11, %v1526_v24  ;;  %vm1766_vm11 = vcmask 355672  }
 0x154   : > { %1533 = vst.msk [vmem:[%s3546_s23] sm:$0xf] %vm1532_vm12, %v1531_v0  ;;  %vm1807_vm12 = vcmask 363872  }
 0x156   : > { %v1536_v23 = vpop.xlane.xlu0 %1535 }
 0x157   : > { %1538 = vst.msk [vmem:[%s3546_s23] sm:$0xf] %vm1537_vm15, %v1536_v23  ;;  %vm1812_vm15 = vcmask 372072  }
 0x158   : > { %1543 = vst.msk [vmem:[%s3546_s23] sm:$0xf] %vm1542_vm0, %v1541_v53  ;;  %vm1817_vm0 = vcmask 380272  }
 0x15b   : > { %v1638_v30 = vpop.xlane.xlu0 %1637  ;;  %v1643_v49 = vpop.xlane.xlu1 %1642 }
 0x15c   : > { %1640 = vst.msk [vmem:[%s3546_s23] sm:$0xf] %vm1639_vm8, %v1638_v30  ;;  %vm1822_vm8 = vcmask 388472  }
 0x15d   : > { %1645 = vst.msk [vmem:[%s3546_s23] sm:$0xf] %vm1644_vm13, %v1643_v49  ;;  %vm1919_vm13 = vcmask 396672  }
 0x15f   : > { %v1648_v2 = vpop.xlane.xlu0 %1647  ;;  %v1653_v4 = vpop.xlane.xlu1 %1652 }
 0x160   : > { %1650 = vst.msk [vmem:[%s3546_s23] sm:$0xf] %vm1649_vm9, %v1648_v2  ;;  %vm1924_vm9 = vcmask 404872  }
 0x161   : > { %1655 = vst.msk [vmem:[%s3546_s23] sm:$0xf] %vm1654_vm6, %v1653_v4  ;;  %vm1929_vm6 = vcmask 413072  }
 0x163   : > { %v1694_v47 = vpop.xlane.xlu0 %1693  ;;  %v1699_v10 = vpop.xlane.xlu1 %1698 }
 0x164   : > { %1696 = vst.msk [vmem:[%s3546_s23] sm:$0xf] %vm1695_vm5, %v1694_v47  ;;  %vm1934_vm5 = vcmask 421272  }
 0x165   : > { %1701 = vst.msk [vmem:[%s3546_s23] sm:$0xf] %vm1700_vm7, %v1699_v10  ;;  %vm1975_vm7 = vcmask 429472  }
 0x167   : > { %v1704_v16 = vpop.xlane.xlu0 %1703  ;;  %v1709_v57 = vpop.xlane.xlu1 %1708 }
 0x168   : > { %1706 = vst.msk [vmem:[%s3546_s23] sm:$0xf] %vm1705_vm14, %v1704_v16  ;;  %vm1980_vm14 = vcmask 437672  }
 0x169   : > { %1711 = vst.msk [vmem:[%s3546_s23] sm:$0xf] %vm1710_vm2, %v1709_v57  ;;  %vm1985_vm2 = vcmask 445872  }
 0x170   : > { %v1750_v55 = vpop.xlane.xlu0 %1749  ;;  %v1755_v54 = vpop.xlane.xlu1 %1754 }
 0x171   : > { %1752 = vst.msk [vmem:[%s3546_s23] sm:$0xf] %vm1751_vm3, %v1750_v55  ;;  %vm1990_vm3 = vcmask 454072  }
 0x172   : > { %1757 = vst.msk [vmem:[%s3546_s23] sm:$0xf] %vm1756_vm4, %v1755_v54  ;;  %vm2031_vm4 = vcmask 462272  }
 0x174   : > { %v1760_v11 = vpop.xlane.xlu0 %1759  ;;  %v1765_v36 = vpop.xlane.xlu1 %1764 }
 0x175   : > { %1762 = vst.msk [vmem:[%s3546_s23] sm:$0xf] %vm1761_vm10, %v1760_v11  ;;  %vm2036_vm10 = vcmask 470472  }
 0x176   : > { %1767 = vst.msk [vmem:[%s3546_s23] sm:$0xf] %vm1766_vm11, %v1765_v36  ;;  %vm2041_vm11 = vcmask 478672  }
 0x178   : > { %v1806_v21 = vpop.xlane.xlu0 %1805  ;;  %v1811_v27 = vpop.xlane.xlu1 %1810 }
 0x179   : > { %1808 = vst.msk [vmem:[%s3546_s23] sm:$0xf] %vm1807_vm12, %v1806_v21  ;;  %vm2046_vm12 = vcmask 486872  }
 0x17a   : > { %1813 = vst.msk [vmem:[%s3546_s23] sm:$0xf] %vm1812_vm15, %v1811_v27  ;;  %vm2087_vm15 = vcmask 495072  }
 0x17c   : > { %v1816_v18 = vpop.xlane.xlu0 %1815  ;;  %v1821_v48 = vpop.xlane.xlu1 %1820 }
 0x17d   : > { %1818 = vst.msk [vmem:[%s3546_s23] sm:$0xf] %vm1817_vm0, %v1816_v18  ;;  %vm2092_vm0 = vcmask 503272  }
 0x17e   : > { %1823 = vst.msk [vmem:[%s3546_s23] sm:$0xf] %vm1822_vm8, %v1821_v48  ;;  %vm2097_vm8 = vcmask 511472  }
 0x185   : > { %v1918_v8 = vpop.xlane.xlu0 %1917  ;;  %v1923_v56 = vpop.xlane.xlu1 %1922 }
 0x186   : > { %1920 = vst.msk [vmem:[%s3546_s23] sm:$0xf] %vm1919_vm13, %v1918_v8  ;;  %vm2102_vm13 = vcmask 519672  }
 0x187   : > { %1925 = vst.msk [vmem:[%s3546_s23] sm:$0xf] %vm1924_vm9, %v1923_v56  ;;  %vm3877_vm9 = vcmask 52272  }
 0x189   : > { %v1928_v40 = vpop.xlane.xlu0 %1927  ;;  %v1933_v51 = vpop.xlane.xlu1 %1932 }
 0x18a   : > { %1930 = vst.msk [vmem:[%s3546_s23] sm:$0xf] %vm1929_vm6, %v1928_v40  ;;  %vm3878_vm6 = vcmask 60472  }
 0x18b   : > { %1935 = vst.msk [vmem:[%s3546_s23] sm:$0xf] %vm1934_vm5, %v1933_v51 }
 0x18d   : > { %v1974_v52 = vpop.xlane.xlu0 %1973  ;;  %v1979_v34 = vpop.xlane.xlu1 %1978 }
 0x18e   : > { %1976 = vst.msk [vmem:[%s3546_s23] sm:$0xf] %vm1975_vm7, %v1974_v52 }
 0x18f   : > { %1981 = vst.msk [vmem:[%s3546_s23] sm:$0xf] %vm1980_vm14, %v1979_v34 }
 0x191   : > { %v1984_v3 = vpop.xlane.xlu0 %1983  ;;  %v1989_v7 = vpop.xlane.xlu1 %1988 }
 0x192   : > { %1986 = vst.msk [vmem:[%s3546_s23] sm:$0xf] %vm1985_vm2, %v1984_v3 }
 0x193   : > { %1991 = vst.msk [vmem:[%s3546_s23] sm:$0xf] %vm1990_vm3, %v1989_v7 }
 0x198   : > { %v2030_v45 = vpop.xlane.xlu0 %2029  ;;  %v2035_v31 = vpop.xlane.xlu1 %2034 }
 0x199   : > { %2032 = vst.msk [vmem:[%s3546_s23] sm:$0xf] %vm2031_vm4, %v2030_v45 }
 0x19a   : > { %2037 = vst.msk [vmem:[%s3546_s23] sm:$0xf] %vm2036_vm10, %v2035_v31 }
 0x19c   : > { %v2040_v32 = vpop.xlane.xlu0 %2039  ;;  %v2045_v13 = vpop.xlane.xlu1 %2044 }
 0x19d   : > { %2042 = vst.msk [vmem:[%s3546_s23] sm:$0xf] %vm2041_vm11, %v2040_v32 }
 0x19e   : > { %2047 = vst.msk [vmem:[%s3546_s23] sm:$0xf] %vm2046_vm12, %v2045_v13 }
 0x1a0   : > { %v2086_v26 = vpop.xlane.xlu0 %2085  ;;  %v938_v63 = vpop.xlane.xlu1 %937 }
 0x1a1   : > { %2088 = vst.msk [vmem:[%s3546_s23] sm:$0xf] %vm2087_vm15, %v2086_v26 }
 0x1a2   : > { %940 = vst.msk [vmem:[%s3587_s26] sm:$0xf] %vm939_vm1, %v938_v63 }
 0x1a4   : > { %v2091_v41 = vpop.xlane.xlu0 %2090 }
 0x1a5   : > { %2093 = vst.msk [vmem:[%s3546_s23] sm:$0xf] %vm2092_vm0, %v2091_v41 }
 0x1a8   : > { %v2096_v44 = vpop.xlane.xlu0 %2095 }
 0x1a9   : > { %2098 = vst.msk [vmem:[%s3546_s23] sm:$0xf] %vm2097_vm8, %v2096_v44 }
 0x1ac   : > { %v2101_v29 = vpop.xlane.xlu0 %2100 }
 0x1ad   : > { %2103 = vst.msk [vmem:[%s3546_s23] sm:$0xf] %vm2102_vm13, %v2101_v29 }
 0x1b5   : > { %v979_v15 = vpop.xlane.xlu1 %978 }
 0x1b6   : > { %981 = vst.msk [vmem:[%s3587_s26] sm:$0xf] %vm3877_vm9, %v979_v15 }
 0x1b9   : > { %v984_v37 = vpop.xlane.xlu1 %983 }
 0x1ba   : > { %986 = vst.msk [vmem:[%s3587_s26] sm:$0xf] %vm3878_vm6, %v984_v37 }
 0x1bb PF: > { %s14_s14 = sadd.s32 1, %s2685_s14   ;;  %s3879_s12 = smov %s2681_s13 }
 0x1bc   : > { %p11_p5 = scmp.ge.s32.totalorder %s14_s14, 4   ;;  %s3880_s13 = smov %s3882_s15 }
 0x1be   :  { %13 = sbr.rel (!%p11_p5) target bundleno = 2 (0x2), region = 93 }

</bundles_post_ra>
